<compile_context>
chip_gen: v6e
topology: v6e:2x2x1
jax: 0.10.0
libtpu: 0.0.40
codegen_flags: <defaults>
</compile_context>

<pallas_src>
import functools

import jax
import jax.numpy as jnp
from jax.experimental import pallas as pl
from jax.experimental.pallas import tpu as pltpu

FEAT_LEN = 32          # conf.feat_len
EPS_BN = 1e-5

_PPN_KEYS = ("w1", "b1", "w2", "b2", "w3", "b3", "w4", "b4", "wm", "bm")
_DEC_KEYS = ("w1s", "w1r", "b1", "w2", "b2", "wtq", "btq")


def _const_spec(arr):
    """Full-array block, constant index map (weight stays VMEM-resident)."""
    nd = arr.ndim
    return pl.BlockSpec(arr.shape, lambda *_: (0,) * nd)


# ----------------------------------------------------------------------------
# Shared PointNet trunk (conv1..conv4, eval-BN folded, ReLU).
#   x_cm: (3, L) f32, coordinate-major (points dense along lanes)
#   returns (L, 128) f32, point-major.
# Layer 1 (K=3) is 3 broadcast FMAs on the VPU in channel-major form; a single
# (64, L) transpose then switches to point-major so the MXU GEMMs stream with
# M = L rows (>=256 at production sizes).
# ----------------------------------------------------------------------------
def _point_mlp(x_cm, w1, b1, w2, b2, w3, b3, w4, b4):
    w1v = w1[...]                                            # (64, 3) f32
    h = jnp.maximum(w1v[:, 0:1] * x_cm[0:1, :]
                    + w1v[:, 1:2] * x_cm[1:2, :]
                    + w1v[:, 2:3] * x_cm[2:3, :]
                    + b1[...], 0.0)                          # (64, L) channel-major
    h = jnp.transpose(h)                                     # (L, 64) point-major
    h = jnp.maximum(jnp.dot(h.astype(jnp.bfloat16), w2[...],
                            preferred_element_type=jnp.float32) + b2[...], 0.0)
    h = jnp.maximum(jnp.dot(h.astype(jnp.bfloat16), w3[...],
                            preferred_element_type=jnp.float32) + b3[...], 0.0)
    h = jnp.maximum(jnp.dot(h.astype(jnp.bfloat16), w4[...],
                            preferred_element_type=jnp.float32) + b4[...], 0.0)
    return h                                                 # (L, 128)


# ----------------------------------------------------------------------------
# Kernel 1: batched per-part PointNet features.
#   x block : (1, 3, ppc*N) coordinate-major points of `ppc` parts
#   out     : (1, ppc, F)
# ----------------------------------------------------------------------------
def _part_feat_kernel(x_ref, w1, b1, w2, b2, w3, b3, w4, b4, wm, bm, out_ref,
                      *, ppc, npts):
    h = _point_mlp(x_ref[0], w1, b1, w2, b2, w3, b3, w4, b4)     # (ppc*npts, 128)
    pooled = jnp.max(h.reshape(ppc, npts, 128), axis=1)          # (ppc, 128)
    f = jnp.maximum(jnp.dot(pooled.astype(jnp.bfloat16), wm[...],
                            preferred_element_type=jnp.float32) + bm[...], 0.0)
    out_ref[0] = f                                               # (ppc, F)


def _parts_per_chunk(num_parts_total, npts):
    # ~<=4096 points per chunk (VMEM), <=32 unrolled parts, big MXU row count.
    return max(1, min(num_parts_total, max(1, 4096 // max(npts, 1)), 32))


def part_features(part_pcs, ppn):
    B, P, N, _ = part_pcs.shape
    BP = B * P
    ppc = _parts_per_chunk(BP, N)
    G = (BP + ppc - 1) // ppc
    BPp = G * ppc
    # coordinate-major packing: (G, 3, ppc*N), lane dim dense
    x = jnp.transpose(part_pcs.reshape(BP, N, 3), (0, 2, 1))     # (BP, 3, N)
    if BPp > BP:
        x = jnp.pad(x, ((0, BPp - BP), (0, 0), (0, 0)))
    x = jnp.transpose(x.reshape(G, ppc, 3, N), (0, 2, 1, 3)).reshape(G, 3, ppc * N)
    ws = tuple(ppn[k] for k in _PPN_KEYS)
    out = pl.pallas_call(
        functools.partial(_part_feat_kernel, ppc=ppc, npts=N),
        out_shape=jax.ShapeDtypeStruct((G, ppc, FEAT_LEN), jnp.float32),
        grid_spec=pltpu.PrefetchScalarGridSpec(
            num_scalar_prefetch=0,
            grid=(G,),
            in_specs=[pl.BlockSpec((1, 3, ppc * N), lambda g: (g, 0, 0))]
                     + [_const_spec(w) for w in ws],
            out_specs=pl.BlockSpec((1, ppc, FEAT_LEN), lambda g: (g, 0, 0)),
        ),
        compiler_params=pltpu.CompilerParams(
            dimension_semantics=("parallel",),
            vmem_limit_bytes=32 * 1024 * 1024),
    )(x, *ws)
    return out.reshape(BPp, FEAT_LEN)[:BP].reshape(B, P, FEAT_LEN)


# ----------------------------------------------------------------------------
# Kernel 2: fused autoregressive assembly loop, grid=(CS, P).
#   pcs block : (1, 3, Bc, N)   selected raw part points (coordinate-major)
#   rest block: (1, Bc, RD)     [part_feat | instance_label | noise]
#   gt block  : (1, Bc, 8)      gt pose (padded to 8 lanes), used at it==0
#   out block : (1, Bc, 8)      predicted pose (trans[3], quat[4], 0)
#   scratch   : acc (Bc,128) running-max pooled shape feature, pose (Bc,8)
# ----------------------------------------------------------------------------
def _assembly_kernel(pcs_ref, rest_ref, gt_ref,
                     w1, b1, w2, b2, w3, b3, w4, b4, wm, bm,
                     dw1s, dw1r, db1, dw2, db2, dwtq, dbtq,
                     out_ref, acc_ref, pose_ref):
    it = pl.program_id(1)
    Bc = pcs_ref.shape[2]

    @pl.when(it == 0)
    def _():
        acc_ref[...] = jnp.full_like(acc_ref, -jnp.inf)   # exact; no ReLU>=0 reliance
        pose_ref[...] = gt_ref[0]                         # (Bc, 8)

    @pl.when(it > 0)
    def _():
        # shape feature straight from the running-max pooled accumulator
        f_shape = jnp.maximum(
            jnp.dot(acc_ref[...].astype(jnp.bfloat16), wm[...],
                    preferred_element_type=jnp.float32) + bm[...], 0.0)   # (Bc, F)
        rest = rest_ref[0]                                                # (Bc, RD)
        # pose decoder (layer 1 split shape/rest -> no in-kernel concat)
        g = (jnp.dot(f_shape.astype(jnp.bfloat16), dw1s[...],
                     preferred_element_type=jnp.float32)
             + jnp.dot(rest.astype(jnp.bfloat16), dw1r[...],
                       preferred_element_type=jnp.float32)
             + db1[...])
        g = jnp.maximum(g, 0.0)                                           # (Bc, 512)
        g = jnp.maximum(jnp.dot(g.astype(jnp.bfloat16), dw2[...],
                                preferred_element_type=jnp.float32)
                        + db2[...], 0.0)                                  # (Bc, 256)
        raw = jnp.dot(g.astype(jnp.bfloat16), dwtq[...],
                      preferred_element_type=jnp.float32) + dbtq[...]     # (Bc, 8)
        lane = jax.lax.broadcasted_iota(jnp.int32, raw.shape, 1)
        quat_mask = jnp.logical_and(lane >= 3, lane < 7)
        q2 = jnp.where(quat_mask, raw * raw, 0.0)
        inv = jax.lax.rsqrt(1e-12 + jnp.sum(q2, axis=-1, keepdims=True))
        pose = jnp.where(lane < 3, jnp.tanh(raw),
                         jnp.where(quat_mask, raw * inv, 0.0))            # (Bc, 8)
        pose_ref[...] = pose

    pose = pose_ref[...]                                                  # (Bc, 8)
    out_ref[0] = pose

    # common tail: pose the newly selected part and max its pooled PointNet
    # feature into the running accumulator (skipped at the last step: unused).
    @pl.when(it + 1 < pl.num_programs(1))
    def _():
        cx, cy, cz = pose[:, 0:1], pose[:, 1:2], pose[:, 2:3]
        qw, qx, qy, qz = pose[:, 3:4], pose[:, 4:5], pose[:, 5:6], pose[:, 6:7]
        vx = pcs_ref[0, 0]                                                # (Bc, N)
        vy = pcs_ref[0, 1]
        vz = pcs_ref[0, 2]
        uvx = qy * vz - qz * vy
        uvy = qz * vx - qx * vz
        uvz = qx * vy - qy * vx
        uuvx = qy * uvz - qz * uvy
        uuvy = qz * uvx - qx * uvz
        uuvz = qx * uvy - qy * uvx
        rx = vx + 2.0 * (qw * uvx + uuvx) + cx
        ry = vy + 2.0 * (qw * uvy + uuvy) + cy
        rz = vz + 2.0 * (qw * uvz + uuvz) + cz
        rows = []
        for b in range(Bc):                                   # Bc is small (<=~32)
            xb = jnp.concatenate([rx[b:b + 1, :], ry[b:b + 1, :],
                                  rz[b:b + 1, :]], axis=0)                # (3, N)
            hb = _point_mlp(xb, w1, b1, w2, b2, w3, b3, w4, b4)           # (N, 128)
            rows.append(jnp.max(hb, axis=0, keepdims=True))               # (1, 128)
        pooled = rows[0] if Bc == 1 else jnp.concatenate(rows, axis=0)    # (Bc, 128)
        acc_ref[...] = jnp.maximum(acc_ref[...], pooled)


def assembly_loop(pcs_k, rest_k, gt_k, params, num_core_splits):
    PCS, _, Bc, N = pcs_k.shape
    CS = num_core_splits
    P = PCS // CS
    RD = rest_k.shape[-1]
    ws = (tuple(params["ppn"][k] for k in _PPN_KEYS)
          + tuple(params["dec"][k] for k in _DEC_KEYS))
    return pl.pallas_call(
        _assembly_kernel,
        out_shape=jax.ShapeDtypeStruct((PCS, Bc, 8), jnp.float32),
        grid_spec=pltpu.PrefetchScalarGridSpec(
            num_scalar_prefetch=0,
            grid=(CS, P),
            in_specs=[pl.BlockSpec((1, 3, Bc, N),
                                   lambda c, it: (it * CS + c, 0, 0, 0)),
                      pl.BlockSpec((1, Bc, RD),
                                   lambda c, it: (it * CS + c, 0, 0)),
                      pl.BlockSpec((1, Bc, 8), lambda c, it: (c, 0, 0))]
                     + [_const_spec(w) for w in ws],
            out_specs=pl.BlockSpec((1, Bc, 8),
                                   lambda c, it: (it * CS + c, 0, 0)),
            scratch_shapes=[pltpu.VMEM((Bc, 128), jnp.float32),   # running max pool
                            pltpu.VMEM((Bc, 8), jnp.float32)],    # current pose
        ),
        compiler_params=pltpu.CompilerParams(
            dimension_semantics=("parallel", "arbitrary"),
            vmem_limit_bytes=32 * 1024 * 1024),
    )(pcs_k, rest_k, gt_k, *ws)


# ----------------------------------------------------------------------------
# Parameter init (deterministic, synthetic).  Eval-mode BN (running stats
# mean=0 / var=1) folded into the preceding linear; GEMM weights in bf16.
# ----------------------------------------------------------------------------
def init_params(key, max_num_part):
    ks = jax.random.split(key, 16)

    def linear(k, din, dout, scale=0.1):
        kw, kb = jax.random.split(k)
        w = jax.random.normal(kw, (din, dout), jnp.float32) * scale
        b = jax.random.normal(kb, (1, dout), jnp.float32) * scale
        return w, b

    def bn(k, c):
        kg, kb = jax.random.split(k)
        gamma = 1.0 + 0.05 * jax.random.normal(kg, (c,), jnp.float32)
        beta = 0.05 * jax.random.normal(kb, (c,), jnp.float32)
        return gamma, beta

    def fold(w, b, g, beta):
        s = g / jnp.sqrt(1.0 + EPS_BN)
        return w * s[None, :], b * s[None, :] + beta[None, :]

    # PartPointNet
    ppn = {}
    dims = [(3, 64), (64, 64), (64, 64), (64, 128)]
    for i, (din, dout) in enumerate(dims, start=1):
        w, b = linear(ks[i - 1], din, dout)
        g, bt = bn(ks[i + 3], dout)
        w, b = fold(w, b, g, bt)
        if i == 1:
            # layer 1 runs channel-major on the VPU -> store transposed, f32
            ppn["w1"], ppn["b1"] = jnp.transpose(w), jnp.transpose(b)  # (64,3),(64,1)
        else:
            ppn[f"w{i}"], ppn[f"b{i}"] = w.astype(jnp.bfloat16), b
    wm, bm = linear(ks[8], 128, FEAT_LEN)
    g6, bt6 = bn(ks[9], FEAT_LEN)
    wm, bm = fold(wm, bm, g6, bt6)
    ppn["wm"], ppn["bm"] = wm.astype(jnp.bfloat16), bm

    # PoseDecoder (input = [shape_feat | part_feat | label | noise]; layer 1
    # split so the shape part can come straight from the in-kernel accumulator)
    F = FEAT_LEN
    rest_dim = F + max_num_part + 16
    dec = {}
    w1s, b1 = linear(ks[10], F, 512)
    w1r, _ = linear(ks[11], rest_dim, 512)
    dec["w1s"], dec["w1r"], dec["b1"] = (w1s.astype(jnp.bfloat16),
                                         w1r.astype(jnp.bfloat16), b1)
    w2, b2 = linear(ks[12], 512, 256)
    dec["w2"], dec["b2"] = w2.astype(jnp.bfloat16), b2
    wt, bt_ = linear(ks[13], 256, 3)
    wq, _ = linear(ks[14], 256, 4)
    # merged heads: [trans(3) | quat(4) | pad(1)]; quat bias zeroed in torch
    # __init__, forward adds [1,0,0,0] -> folded into the merged bias.
    wtq = jnp.concatenate([wt, wq, jnp.zeros((256, 1), jnp.float32)], axis=1)
    btq = jnp.concatenate(
        [bt_, jnp.array([[1.0, 0.0, 0.0, 0.0, 0.0]], jnp.float32)], axis=1)
    dec["wtq"], dec["btq"] = wtq.astype(jnp.bfloat16), btq
    return {"ppn": ppn, "dec": dec}


# ----------------------------------------------------------------------------
# Forward pass (matches Network.forward); gathers/scatters/packing stay in XLA.
# ----------------------------------------------------------------------------
def network_forward(params, seq, part_pcs, part_valids, instance_label,
                    gt_part_pose, random_noise):
    B, P, N, _ = part_pcs.shape
    bidx = jnp.arange(B)[:, None]

    # 1) loop-invariant per-part features, batched in one kernel.
    part_feat = part_features(part_pcs, params["ppn"])            # (B, P, F)

    # 2) gather into assembly order, pack coordinate-major, split the batch
    #    over (up to) two TensorCores for v7x megacore.
    CS = 2 if (B >= 2 and B % 2 == 0) else 1
    Bc = B // CS
    pcs_seq = part_pcs[bidx, seq]                                 # (B, P, N, 3)
    rest_seq = jnp.concatenate(
        [part_feat[bidx, seq], instance_label[bidx, seq],
         random_noise[bidx, seq]], axis=-1)                       # (B, P, F+P+16)
    RD = rest_seq.shape[-1]
    pcs_k = jnp.transpose(pcs_seq, (1, 0, 3, 2))                  # (P, B, 3, N)
    pcs_k = jnp.transpose(pcs_k.reshape(P, CS, Bc, 3, N),
                          (0, 1, 3, 2, 4)).reshape(P * CS, 3, Bc, N)
    rest_k = jnp.transpose(rest_seq, (1, 0, 2)).reshape(P * CS, Bc, RD)
    gt_k = jnp.pad(gt_part_pose, ((0, 0), (0, 1))).reshape(CS, Bc, 8)

    # 3) fused autoregressive kernel -> poses in assembly (sequence) order.
    poses = assembly_loop(pcs_k, rest_k, gt_k, params, CS)        # (P*CS, Bc, 8)
    poses = jnp.transpose(poses.reshape(P, B, 8), (1, 0, 2))[..., :7]   # (B, P, 7)

    # 4) scatter back to part-id order (seq is a permutation per batch).
    pred = jnp.zeros((B, P, 7), jnp.float32).at[bidx, seq].set(poses)
    # (original code casts to double then back to float; x64 not needed here)
    pred = pred * part_valids[:, :, None]
    return pred.astype(jnp.float32)


# ----------------------------------------------------------------------------
if __name__ == "__main__":
    key = jax.random.PRNGKey(0)
    B, P, N = 2, 4, 16        # batch, max_num_part, points per part

    kp, kpc, kseq, kgt, knoise = jax.random.split(key, 5)
    params = init_params(kp, P)

    part_pcs = jax.random.normal(kpc, (B, P, N, 3), jnp.float32)
    seq = jnp.stack([jax.random.permutation(jax.random.fold_in(kseq, b), P)
                     for b in range(B)]).astype(jnp.int32)                 # B x P
    part_valids = jnp.ones((B, P), jnp.float32)
    instance_label = jnp.tile(jnp.eye(P, dtype=jnp.float32)[None], (B, 1, 1))
    gt_trans = 0.1 * jax.random.normal(kgt, (B, 3), jnp.float32)
    gt_quat = jax.random.normal(jax.random.fold_in(kgt, 1), (B, 4), jnp.float32)
    gt_quat = gt_quat / jnp.linalg.norm(gt_quat, axis=-1, keepdims=True)
    gt_part_pose = jnp.concatenate([gt_trans, gt_quat], axis=-1)           # B x 7
    # the torch code draws np.random noise internally; here it is a plain input
    random_noise = jax.random.normal(knoise, (B, P, 16), jnp.float32)

    fwd = jax.jit(network_forward)
    out = fwd(params, seq, part_pcs, part_valids, instance_label,
              gt_part_pose, random_noise)
    jax.block_until_ready(out)
    assert out.shape == (B, P, 7) and out.dtype == jnp.float32
    assert bool(jnp.all(jnp.isfinite(out)))
    print("KERNEL_OK")
</pallas_src>

<mosaic_0001>
module attributes {stable_mosaic.version = 11 : i64} {
  func.func @_part_feat_kernel(%arg0: i32, %arg1: memref<1x3x128xf32, #tpu.memory_space<vmem>>, %arg2: memref<64x3xf32, #tpu.memory_space<vmem>>, %arg3: memref<64x1xf32, #tpu.memory_space<vmem>>, %arg4: memref<64x64xbf16, #tpu.memory_space<vmem>>, %arg5: memref<1x64xf32, #tpu.memory_space<vmem>>, %arg6: memref<64x64xbf16, #tpu.memory_space<vmem>>, %arg7: memref<1x64xf32, #tpu.memory_space<vmem>>, %arg8: memref<64x128xbf16, #tpu.memory_space<vmem>>, %arg9: memref<1x128xf32, #tpu.memory_space<vmem>>, %arg10: memref<128x32xbf16, #tpu.memory_space<vmem>>, %arg11: memref<1x32xf32, #tpu.memory_space<vmem>>, %arg12: memref<1x8x32xf32, #tpu.memory_space<vmem>>) attributes {dimension_semantics = [#tpu.dimension_semantics<parallel>], iteration_bounds = array<i64: 1>, scalar_prefetch = 0 : i64, scratch_operands = 0 : i64, tpu.core_type = #tpu.core_type<tc>, window_params = [{transform_indices = @transform_0, window_bounds = array<i64: 1, 3, 128>}, {pipeline_mode = #tpu.pipeline_mode<synchronous>, transform_indices = @transform_1, window_bounds = array<i64: 64, 3>}, {pipeline_mode = #tpu.pipeline_mode<synchronous>, transform_indices = @transform_2, window_bounds = array<i64: 64, 1>}, {pipeline_mode = #tpu.pipeline_mode<synchronous>, transform_indices = @transform_3, window_bounds = array<i64: 64, 64>}, {pipeline_mode = #tpu.pipeline_mode<synchronous>, transform_indices = @transform_4, window_bounds = array<i64: 1, 64>}, {pipeline_mode = #tpu.pipeline_mode<synchronous>, transform_indices = @transform_5, window_bounds = array<i64: 64, 64>}, {pipeline_mode = #tpu.pipeline_mode<synchronous>, transform_indices = @transform_6, window_bounds = array<i64: 1, 64>}, {pipeline_mode = #tpu.pipeline_mode<synchronous>, transform_indices = @transform_7, window_bounds = array<i64: 64, 128>}, {pipeline_mode = #tpu.pipeline_mode<synchronous>, transform_indices = @transform_8, window_bounds = array<i64: 1, 128>}, {pipeline_mode = #tpu.pipeline_mode<synchronous>, transform_indices = @transform_9, window_bounds = array<i64: 128, 32>}, {pipeline_mode = #tpu.pipeline_mode<synchronous>, transform_indices = @transform_10, window_bounds = array<i64: 1, 32>}, {transform_indices = @transform_11, window_bounds = array<i64: 1, 8, 32>}]} {
    %c0 = arith.constant 0 : index
    %c0_0 = arith.constant 0 : index
    %c0_1 = arith.constant 0 : index
    %0 = vector.load %arg1[%c0, %c0_0, %c0_1] : memref<1x3x128xf32, #tpu.memory_space<vmem>>, vector<1x3x128xf32>
    %1 = vector.shape_cast %0 : vector<1x3x128xf32> to vector<3x128xf32>
    %c0_2 = arith.constant 0 : index
    %c0_3 = arith.constant 0 : index
    %2 = vector.load %arg2[%c0_2, %c0_3] : memref<64x3xf32, #tpu.memory_space<vmem>>, vector<64x3xf32>
    %3 = vector.extract_strided_slice %2 {offsets = [0, 0], sizes = [64, 1], strides = [1, 1]} : vector<64x3xf32> to vector<64x1xf32>
    %4 = vector.extract_strided_slice %1 {offsets = [0, 0], sizes = [1, 128], strides = [1, 1]} : vector<3x128xf32> to vector<1x128xf32>
    %5 = vector.broadcast %3 : vector<64x1xf32> to vector<64x128xf32>
    %6 = vector.broadcast %4 : vector<1x128xf32> to vector<64x128xf32>
    %7 = arith.mulf %5, %6 : vector<64x128xf32>
    %8 = vector.extract_strided_slice %2 {offsets = [0, 1], sizes = [64, 1], strides = [1, 1]} : vector<64x3xf32> to vector<64x1xf32>
    %9 = vector.extract_strided_slice %1 {offsets = [1, 0], sizes = [1, 128], strides = [1, 1]} : vector<3x128xf32> to vector<1x128xf32>
    %10 = vector.broadcast %8 : vector<64x1xf32> to vector<64x128xf32>
    %11 = vector.broadcast %9 : vector<1x128xf32> to vector<64x128xf32>
    %12 = arith.mulf %10, %11 : vector<64x128xf32>
    %13 = arith.addf %7, %12 : vector<64x128xf32>
    %14 = vector.extract_strided_slice %2 {offsets = [0, 2], sizes = [64, 1], strides = [1, 1]} : vector<64x3xf32> to vector<64x1xf32>
    %15 = vector.extract_strided_slice %1 {offsets = [2, 0], sizes = [1, 128], strides = [1, 1]} : vector<3x128xf32> to vector<1x128xf32>
    %16 = vector.broadcast %14 : vector<64x1xf32> to vector<64x128xf32>
    %17 = vector.broadcast %15 : vector<1x128xf32> to vector<64x128xf32>
    %18 = arith.mulf %16, %17 : vector<64x128xf32>
    %19 = arith.addf %13, %18 : vector<64x128xf32>
    %c0_4 = arith.constant 0 : index
    %c0_5 = arith.constant 0 : index
    %20 = vector.load %arg3[%c0_4, %c0_5] : memref<64x1xf32, #tpu.memory_space<vmem>>, vector<64x1xf32>
    %21 = vector.broadcast %20 : vector<64x1xf32> to vector<64x128xf32>
    %22 = arith.addf %19, %21 : vector<64x128xf32>
    %cst = arith.constant 0.000000e+00 : f32
    %23 = vector.broadcast %cst : f32 to vector<64x128xf32>
    %24 = arith.maximumf %22, %23 : vector<64x128xf32>
    %25 = tpu.transpose %24, [1, 0] : vector<64x128xf32> -> vector<128x64xf32>
    %26 = arith.truncf %25 : vector<128x64xf32> to vector<128x64xbf16>
    %c0_6 = arith.constant 0 : index
    %c0_7 = arith.constant 0 : index
    %27 = vector.load %arg4[%c0_6, %c0_7] : memref<64x64xbf16, #tpu.memory_space<vmem>>, vector<64x64xbf16>
    %cst_8 = arith.constant dense<0.000000e+00> : vector<128x64xf32>
    %28 = tpu.matmul %26, %27, %cst_8 {dimension_numbers = #tpu.dot_dimension_numbers<[1], [0], [0], [1], [0, 0, 1, 1], [], []>} : vector<128x64xbf16>, vector<64x64xbf16>, vector<128x64xf32> -> vector<128x64xf32>
    %c0_9 = arith.constant 0 : index
    %c0_10 = arith.constant 0 : index
    %29 = vector.load %arg5[%c0_9, %c0_10] : memref<1x64xf32, #tpu.memory_space<vmem>>, vector<1x64xf32>
    %30 = vector.broadcast %29 : vector<1x64xf32> to vector<128x64xf32>
    %31 = arith.addf %28, %30 : vector<128x64xf32>
    %cst_11 = arith.constant 0.000000e+00 : f32
    %32 = vector.broadcast %cst_11 : f32 to vector<128x64xf32>
    %33 = arith.maximumf %31, %32 : vector<128x64xf32>
    %34 = arith.truncf %33 : vector<128x64xf32> to vector<128x64xbf16>
    %c0_12 = arith.constant 0 : index
    %c0_13 = arith.constant 0 : index
    %35 = vector.load %arg6[%c0_12, %c0_13] : memref<64x64xbf16, #tpu.memory_space<vmem>>, vector<64x64xbf16>
    %cst_14 = arith.constant dense<0.000000e+00> : vector<128x64xf32>
    %36 = tpu.matmul %34, %35, %cst_14 {dimension_numbers = #tpu.dot_dimension_numbers<[1], [0], [0], [1], [0, 0, 1, 1], [], []>} : vector<128x64xbf16>, vector<64x64xbf16>, vector<128x64xf32> -> vector<128x64xf32>
    %c0_15 = arith.constant 0 : index
    %c0_16 = arith.constant 0 : index
    %37 = vector.load %arg7[%c0_15, %c0_16] : memref<1x64xf32, #tpu.memory_space<vmem>>, vector<1x64xf32>
    %38 = vector.broadcast %37 : vector<1x64xf32> to vector<128x64xf32>
    %39 = arith.addf %36, %38 : vector<128x64xf32>
    %cst_17 = arith.constant 0.000000e+00 : f32
    %40 = vector.broadcast %cst_17 : f32 to vector<128x64xf32>
    %41 = arith.maximumf %39, %40 : vector<128x64xf32>
    %42 = arith.truncf %41 : vector<128x64xf32> to vector<128x64xbf16>
    %c0_18 = arith.constant 0 : index
    %c0_19 = arith.constant 0 : index
    %43 = vector.load %arg8[%c0_18, %c0_19] : memref<64x128xbf16, #tpu.memory_space<vmem>>, vector<64x128xbf16>
    %cst_20 = arith.constant dense<0.000000e+00> : vector<128x128xf32>
    %44 = tpu.matmul %42, %43, %cst_20 {dimension_numbers = #tpu.dot_dimension_numbers<[1], [0], [0], [1], [0, 0, 1, 1], [], []>} : vector<128x64xbf16>, vector<64x128xbf16>, vector<128x128xf32> -> vector<128x128xf32>
    %c0_21 = arith.constant 0 : index
    %c0_22 = arith.constant 0 : index
    %45 = vector.load %arg9[%c0_21, %c0_22] : memref<1x128xf32, #tpu.memory_space<vmem>>, vector<1x128xf32>
    %46 = vector.broadcast %45 : vector<1x128xf32> to vector<128x128xf32>
    %47 = arith.addf %44, %46 : vector<128x128xf32>
    %cst_23 = arith.constant 0.000000e+00 : f32
    %48 = vector.broadcast %cst_23 : f32 to vector<128x128xf32>
    %49 = arith.maximumf %47, %48 : vector<128x128xf32>
    %50 = vector.shape_cast %49 : vector<128x128xf32> to vector<8x16x128xf32>
    %cst_24 = arith.constant dense<0xFF800000> : vector<8x128xf32>
    %51 = vector.multi_reduction <maximumf>, %50, %cst_24 [1] : vector<8x16x128xf32> to vector<8x128xf32>
    %52 = arith.truncf %51 : vector<8x128xf32> to vector<8x128xbf16>
    %c0_25 = arith.constant 0 : index
    %c0_26 = arith.constant 0 : index
    %53 = vector.load %arg10[%c0_25, %c0_26] : memref<128x32xbf16, #tpu.memory_space<vmem>>, vector<128x32xbf16>
    %cst_27 = arith.constant dense<0.000000e+00> : vector<8x32xf32>
    %54 = tpu.matmul %52, %53, %cst_27 {dimension_numbers = #tpu.dot_dimension_numbers<[1], [0], [0], [1], [0, 0, 1, 1], [], []>} : vector<8x128xbf16>, vector<128x32xbf16>, vector<8x32xf32> -> vector<8x32xf32>
    %c0_28 = arith.constant 0 : index
    %c0_29 = arith.constant 0 : index
    %55 = vector.load %arg11[%c0_28, %c0_29] : memref<1x32xf32, #tpu.memory_space<vmem>>, vector<1x32xf32>
    %56 = vector.broadcast %55 : vector<1x32xf32> to vector<8x32xf32>
    %57 = arith.addf %54, %56 : vector<8x32xf32>
    %cst_30 = arith.constant 0.000000e+00 : f32
    %58 = vector.broadcast %cst_30 : f32 to vector<8x32xf32>
    %59 = arith.maximumf %57, %58 : vector<8x32xf32>
    %c0_31 = arith.constant 0 : index
    %c0_32 = arith.constant 0 : index
    %c0_33 = arith.constant 0 : index
    %60 = vector.load %arg12[%c0_31, %c0_32, %c0_33] : memref<1x8x32xf32, #tpu.memory_space<vmem>>, vector<1x8x32xf32>
    %61 = vector.shape_cast %60 : vector<1x8x32xf32> to vector<8x32xf32>
    %62 = vector.shape_cast %59 : vector<8x32xf32> to vector<1x8x32xf32>
    tpu.vector_store %arg12[%c0_31, %c0_32, %c0_33], %62 {strides = array<i32>} : memref<1x8x32xf32, #tpu.memory_space<vmem>>, vector<1x8x32xf32>,
    return
  }
  func.func @transform_0(%arg0: i32) -> (i32, i32, i32) {
    %c0_i32 = arith.constant 0 : i32
    %c0_i32_0 = arith.constant 0 : i32
    %c0_i32_1 = arith.constant 0 : i32
    return %arg0, %c0_i32, %c0_i32_0 : i32, i32, i32
  }
  func.func @transform_1(%arg0: i32) -> (i32, i32) {
    %c0_i32 = arith.constant 0 : i32
    %c0_i32_0 = arith.constant 0 : i32
    %c0_i32_1 = arith.constant 0 : i32
    return %c0_i32, %c0_i32_0 : i32, i32
  }
  func.func @transform_2(%arg0: i32) -> (i32, i32) {
    %c0_i32 = arith.constant 0 : i32
    %c0_i32_0 = arith.constant 0 : i32
    %c0_i32_1 = arith.constant 0 : i32
    return %c0_i32, %c0_i32_0 : i32, i32
  }
  func.func @transform_3(%arg0: i32) -> (i32, i32) {
    %c0_i32 = arith.constant 0 : i32
    %c0_i32_0 = arith.constant 0 : i32
    %c0_i32_1 = arith.constant 0 : i32
    return %c0_i32, %c0_i32_0 : i32, i32
  }
  func.func @transform_4(%arg0: i32) -> (i32, i32) {
    %c0_i32 = arith.constant 0 : i32
    %c0_i32_0 = arith.constant 0 : i32
    %c0_i32_1 = arith.constant 0 : i32
    return %c0_i32, %c0_i32_0 : i32, i32
  }
  func.func @transform_5(%arg0: i32) -> (i32, i32) {
    %c0_i32 = arith.constant 0 : i32
    %c0_i32_0 = arith.constant 0 : i32
    %c0_i32_1 = arith.constant 0 : i32
    return %c0_i32, %c0_i32_0 : i32, i32
  }
  func.func @transform_6(%arg0: i32) -> (i32, i32) {
    %c0_i32 = arith.constant 0 : i32
    %c0_i32_0 = arith.constant 0 : i32
    %c0_i32_1 = arith.constant 0 : i32
    return %c0_i32, %c0_i32_0 : i32, i32
  }
  func.func @transform_7(%arg0: i32) -> (i32, i32) {
    %c0_i32 = arith.constant 0 : i32
    %c0_i32_0 = arith.constant 0 : i32
    %c0_i32_1 = arith.constant 0 : i32
    return %c0_i32, %c0_i32_0 : i32, i32
  }
  func.func @transform_8(%arg0: i32) -> (i32, i32) {
    %c0_i32 = arith.constant 0 : i32
    %c0_i32_0 = arith.constant 0 : i32
    %c0_i32_1 = arith.constant 0 : i32
    return %c0_i32, %c0_i32_0 : i32, i32
  }
  func.func @transform_9(%arg0: i32) -> (i32, i32) {
    %c0_i32 = arith.constant 0 : i32
    %c0_i32_0 = arith.constant 0 : i32
    %c0_i32_1 = arith.constant 0 : i32
    return %c0_i32, %c0_i32_0 : i32, i32
  }
  func.func @transform_10(%arg0: i32) -> (i32, i32) {
    %c0_i32 = arith.constant 0 : i32
    %c0_i32_0 = arith.constant 0 : i32
    %c0_i32_1 = arith.constant 0 : i32
    return %c0_i32, %c0_i32_0 : i32, i32
  }
  func.func @transform_11(%arg0: i32) -> (i32, i32, i32) {
    %c0_i32 = arith.constant 0 : i32
    %c0_i32_0 = arith.constant 0 : i32
    %c0_i32_1 = arith.constant 0 : i32
    return %arg0, %c0_i32, %c0_i32_0 : i32, i32, i32
  }
}

module attributes {stable_mosaic.version = 11 : i64} {
  func.func @_assembly_kernel(%arg0: i32, %arg1: i32, %arg2: memref<1x3x1x16xf32, #tpu.memory_space<vmem>>, %arg3: memref<1x1x52xf32, #tpu.memory_space<vmem>>, %arg4: memref<1x1x8xf32, #tpu.memory_space<vmem>>, %arg5: memref<64x3xf32, #tpu.memory_space<vmem>>, %arg6: memref<64x1xf32, #tpu.memory_space<vmem>>, %arg7: memref<64x64xbf16, #tpu.memory_space<vmem>>, %arg8: memref<1x64xf32, #tpu.memory_space<vmem>>, %arg9: memref<64x64xbf16, #tpu.memory_space<vmem>>, %arg10: memref<1x64xf32, #tpu.memory_space<vmem>>, %arg11: memref<64x128xbf16, #tpu.memory_space<vmem>>, %arg12: memref<1x128xf32, #tpu.memory_space<vmem>>, %arg13: memref<128x32xbf16, #tpu.memory_space<vmem>>, %arg14: memref<1x32xf32, #tpu.memory_space<vmem>>, %arg15: memref<32x512xbf16, #tpu.memory_space<vmem>>, %arg16: memref<52x512xbf16, #tpu.memory_space<vmem>>, %arg17: memref<1x512xf32, #tpu.memory_space<vmem>>, %arg18: memref<512x256xbf16, #tpu.memory_space<vmem>>, %arg19: memref<1x256xf32, #tpu.memory_space<vmem>>, %arg20: memref<256x8xbf16, #tpu.memory_space<vmem>>, %arg21: memref<1x8xf32, #tpu.memory_space<vmem>>, %arg22: memref<1x1x8xf32, #tpu.memory_space<vmem>>, %arg23: memref<1x128xf32, #tpu.memory_space<vmem>>, %arg24: memref<1x8xf32, #tpu.memory_space<vmem>>) attributes {dimension_semantics = [#tpu.dimension_semantics<parallel>, #tpu.dimension_semantics<arbitrary>], iteration_bounds = array<i64: 2, 4>, scalar_prefetch = 0 : i64, scratch_operands = 2 : i64, tpu.core_type = #tpu.core_type<tc>, window_params = [{transform_indices = @transform_0, window_bounds = array<i64: 1, 3, 1, 16>}, {transform_indices = @transform_1, window_bounds = array<i64: 1, 1, 52>}, {transform_indices = @transform_2, window_bounds = array<i64: 1, 1, 8>}, {pipeline_mode = #tpu.pipeline_mode<synchronous>, transform_indices = @transform_3, window_bounds = array<i64: 64, 3>}, {pipeline_mode = #tpu.pipeline_mode<synchronous>, transform_indices = @transform_4, window_bounds = array<i64: 64, 1>}, {pipeline_mode = #tpu.pipeline_mode<synchronous>, transform_indices = @transform_5, window_bounds = array<i64: 64, 64>}, {pipeline_mode = #tpu.pipeline_mode<synchronous>, transform_indices = @transform_6, window_bounds = array<i64: 1, 64>}, {pipeline_mode = #tpu.pipeline_mode<synchronous>, transform_indices = @transform_7, window_bounds = array<i64: 64, 64>}, {pipeline_mode = #tpu.pipeline_mode<synchronous>, transform_indices = @transform_8, window_bounds = array<i64: 1, 64>}, {pipeline_mode = #tpu.pipeline_mode<synchronous>, transform_indices = @transform_9, window_bounds = array<i64: 64, 128>}, {pipeline_mode = #tpu.pipeline_mode<synchronous>, transform_indices = @transform_10, window_bounds = array<i64: 1, 128>}, {pipeline_mode = #tpu.pipeline_mode<synchronous>, transform_indices = @transform_11, window_bounds = array<i64: 128, 32>}, {pipeline_mode = #tpu.pipeline_mode<synchronous>, transform_indices = @transform_12, window_bounds = array<i64: 1, 32>}, {pipeline_mode = #tpu.pipeline_mode<synchronous>, transform_indices = @transform_13, window_bounds = array<i64: 32, 512>}, {pipeline_mode = #tpu.pipeline_mode<synchronous>, transform_indices = @transform_14, window_bounds = array<i64: 52, 512>}, {pipeline_mode = #tpu.pipeline_mode<synchronous>, transform_indices = @transform_15, window_bounds = array<i64: 1, 512>}, {pipeline_mode = #tpu.pipeline_mode<synchronous>, transform_indices = @transform_16, window_bounds = array<i64: 512, 256>}, {pipeline_mode = #tpu.pipeline_mode<synchronous>, transform_indices = @transform_17, window_bounds = array<i64: 1, 256>}, {pipeline_mode = #tpu.pipeline_mode<synchronous>, transform_indices = @transform_18, window_bounds = array<i64: 256, 8>}, {pipeline_mode = #tpu.pipeline_mode<synchronous>, transform_indices = @transform_19, window_bounds = array<i64: 1, 8>}, {transform_indices = @transform_20, window_bounds = array<i64: 1, 1, 8>}]} {
    %c0_i32 = arith.constant 0 : i32
    %0 = arith.cmpi eq, %arg1, %c0_i32 : i32
    %1 = arith.extui %0 : i1 to i32
    %c0_i32_0 = arith.constant 0 : i32
    %2 = arith.cmpi ne, %1, %c0_i32_0 : i32
    scf.if %2 {
      %cst = arith.constant 0xFF800000 : f32
      %14 = vector.broadcast %cst : f32 to vector<1x128xf32>
      %c0_8 = arith.constant 0 : index
      %c0_9 = arith.constant 0 : index
      %15 = vector.load %arg23[%c0_8, %c0_9] : memref<1x128xf32, #tpu.memory_space<vmem>>, vector<1x128xf32>
      tpu.vector_store %arg23[%c0_8, %c0_9], %14 {strides = array<i32>} : memref<1x128xf32, #tpu.memory_space<vmem>>, vector<1x128xf32>,
      %c0_10 = arith.constant 0 : index
      %c0_11 = arith.constant 0 : index
      %c0_12 = arith.constant 0 : index
      %16 = vector.load %arg4[%c0_10, %c0_11, %c0_12] : memref<1x1x8xf32, #tpu.memory_space<vmem>>, vector<1x1x8xf32>
      %17 = vector.shape_cast %16 : vector<1x1x8xf32> to vector<1x8xf32>
      %c0_13 = arith.constant 0 : index
      %c0_14 = arith.constant 0 : index
      %18 = vector.load %arg24[%c0_13, %c0_14] : memref<1x8xf32, #tpu.memory_space<vmem>>, vector<1x8xf32>
      tpu.vector_store %arg24[%c0_13, %c0_14], %17 {strides = array<i32>} : memref<1x8xf32, #tpu.memory_space<vmem>>, vector<1x8xf32>,
    } else {
    }
    %c0_i32_1 = arith.constant 0 : i32
    %3 = arith.cmpi sgt, %arg1, %c0_i32_1 : i32
    %4 = arith.extui %3 : i1 to i32
    %c0_i32_2 = arith.constant 0 : i32
    %5 = arith.cmpi ne, %4, %c0_i32_2 : i32
    scf.if %5 {
      %c0_8 = arith.constant 0 : index
      %c0_9 = arith.constant 0 : index
      %14 = vector.load %arg23[%c0_8, %c0_9] : memref<1x128xf32, #tpu.memory_space<vmem>>, vector<1x128xf32>
      %15 = arith.truncf %14 : vector<1x128xf32> to vector<1x128xbf16>
      %c0_10 = arith.constant 0 : index
      %c0_11 = arith.constant 0 : index
      %16 = vector.load %arg13[%c0_10, %c0_11] : memref<128x32xbf16, #tpu.memory_space<vmem>>, vector<128x32xbf16>
      %cst = arith.constant dense<0.000000e+00> : vector<1x32xf32>
      %17 = tpu.matmul %15, %16, %cst {dimension_numbers = #tpu.dot_dimension_numbers<[1], [0], [0], [1], [0, 0, 1, 1], [], []>} : vector<1x128xbf16>, vector<128x32xbf16>, vector<1x32xf32> -> vector<1x32xf32>
      %c0_12 = arith.constant 0 : index
      %c0_13 = arith.constant 0 : index
      %18 = vector.load %arg14[%c0_12, %c0_13] : memref<1x32xf32, #tpu.memory_space<vmem>>, vector<1x32xf32>
      %19 = arith.addf %17, %18 : vector<1x32xf32>
      %cst_14 = arith.constant 0.000000e+00 : f32
      %20 = vector.broadcast %cst_14 : f32 to vector<1x32xf32>
      %21 = arith.maximumf %19, %20 : vector<1x32xf32>
      %c0_15 = arith.constant 0 : index
      %c0_16 = arith.constant 0 : index
      %c0_17 = arith.constant 0 : index
      %22 = vector.load %arg3[%c0_15, %c0_16, %c0_17] : memref<1x1x52xf32, #tpu.memory_space<vmem>>, vector<1x1x52xf32>
      %23 = vector.shape_cast %22 : vector<1x1x52xf32> to vector<1x52xf32>
      %24 = arith.truncf %21 : vector<1x32xf32> to vector<1x32xbf16>
      %c0_18 = arith.constant 0 : index
      %c0_19 = arith.constant 0 : index
      %25 = vector.load %arg15[%c0_18, %c0_19] : memref<32x512xbf16, #tpu.memory_space<vmem>>, vector<32x512xbf16>
      %cst_20 = arith.constant dense<0.000000e+00> : vector<1x512xf32>
      %26 = tpu.matmul %24, %25, %cst_20 {dimension_numbers = #tpu.dot_dimension_numbers<[1], [0], [0], [1], [0, 0, 1, 1], [], []>} : vector<1x32xbf16>, vector<32x512xbf16>, vector<1x512xf32> -> vector<1x512xf32>
      %27 = arith.truncf %23 : vector<1x52xf32> to vector<1x52xbf16>
      %c0_21 = arith.constant 0 : index
      %c0_22 = arith.constant 0 : index
      %28 = vector.load %arg16[%c0_21, %c0_22] : memref<52x512xbf16, #tpu.memory_space<vmem>>, vector<52x512xbf16>
      %cst_23 = arith.constant dense<0.000000e+00> : vector<1x512xf32>
      %29 = tpu.matmul %27, %28, %cst_23 {dimension_numbers = #tpu.dot_dimension_numbers<[1], [0], [0], [1], [0, 0, 1, 1], [], []>} : vector<1x52xbf16>, vector<52x512xbf16>, vector<1x512xf32> -> vector<1x512xf32>
      %30 = arith.addf %26, %29 : vector<1x512xf32>
      %c0_24 = arith.constant 0 : index
      %c0_25 = arith.constant 0 : index
      %31 = vector.load %arg17[%c0_24, %c0_25] : memref<1x512xf32, #tpu.memory_space<vmem>>, vector<1x512xf32>
      %32 = arith.addf %30, %31 : vector<1x512xf32>
      %cst_26 = arith.constant 0.000000e+00 : f32
      %33 = vector.broadcast %cst_26 : f32 to vector<1x512xf32>
      %34 = arith.maximumf %32, %33 : vector<1x512xf32>
      %35 = arith.truncf %34 : vector<1x512xf32> to vector<1x512xbf16>
      %c0_27 = arith.constant 0 : index
      %c0_28 = arith.constant 0 : index
      %36 = vector.load %arg18[%c0_27, %c0_28] : memref<512x256xbf16, #tpu.memory_space<vmem>>, vector<512x256xbf16>
      %cst_29 = arith.constant dense<0.000000e+00> : vector<1x256xf32>
      %37 = tpu.matmul %35, %36, %cst_29 {dimension_numbers = #tpu.dot_dimension_numbers<[1], [0], [0], [1], [0, 0, 1, 1], [], []>} : vector<1x512xbf16>, vector<512x256xbf16>, vector<1x256xf32> -> vector<1x256xf32>
      %c0_30 = arith.constant 0 : index
      %c0_31 = arith.constant 0 : index
      %38 = vector.load %arg19[%c0_30, %c0_31] : memref<1x256xf32, #tpu.memory_space<vmem>>, vector<1x256xf32>
      %39 = arith.addf %37, %38 : vector<1x256xf32>
      %cst_32 = arith.constant 0.000000e+00 : f32
      %40 = vector.broadcast %cst_32 : f32 to vector<1x256xf32>
      %41 = arith.maximumf %39, %40 : vector<1x256xf32>
      %42 = arith.truncf %41 : vector<1x256xf32> to vector<1x256xbf16>
      %c0_33 = arith.constant 0 : index
      %c0_34 = arith.constant 0 : index
      %43 = vector.load %arg20[%c0_33, %c0_34] : memref<256x8xbf16, #tpu.memory_space<vmem>>, vector<256x8xbf16>
      %cst_35 = arith.constant dense<0.000000e+00> : vector<1x8xf32>
      %44 = tpu.matmul %42, %43, %cst_35 {dimension_numbers = #tpu.dot_dimension_numbers<[1], [0], [0], [1], [0, 0, 1, 1], [], []>} : vector<1x256xbf16>, vector<256x8xbf16>, vector<1x8xf32> -> vector<1x8xf32>
      %c0_36 = arith.constant 0 : index
      %c0_37 = arith.constant 0 : index
      %45 = vector.load %arg21[%c0_36, %c0_37] : memref<1x8xf32, #tpu.memory_space<vmem>>, vector<1x8xf32>
      %46 = arith.addf %44, %45 : vector<1x8xf32>
      %47 = tpu.iota {dimensions = array<i32: 1>} : vector<1x8xi32>
      %c3_i32 = arith.constant 3 : i32
      %48 = vector.broadcast %c3_i32 : i32 to vector<1x8xi32>
      %49 = arith.cmpi sge, %47, %48 : vector<1x8xi32>
      %c7_i32 = arith.constant 7 : i32
      %50 = vector.broadcast %c7_i32 : i32 to vector<1x8xi32>
      %51 = arith.cmpi slt, %47, %50 : vector<1x8xi32>
      %52 = arith.andi %49, %51 : vector<1x8xi1>
      %53 = arith.mulf %46, %46 : vector<1x8xf32>
      %cst_38 = arith.constant 0.000000e+00 : f32
      %54 = vector.broadcast %cst_38 : f32 to vector<1x8xf32>
      %55 = arith.select %52, %53, %54 : vector<1x8xi1>, vector<1x8xf32>
      %cst_39 = arith.constant dense<0.000000e+00> : vector<1xf32>
      %56 = vector.multi_reduction <add>, %55, %cst_39 [1] : vector<1x8xf32> to vector<1xf32>
      %57 = vector.shape_cast %56 : vector<1xf32> to vector<1x1xf32>
      %cst_40 = arith.constant 9.99999996E-13 : f32
      %58 = vector.broadcast %cst_40 : f32 to vector<1x1xf32>
      %59 = arith.addf %58, %57 : vector<1x1xf32>
      %60 = math.rsqrt %59 : vector<1x1xf32>
      %c3_i32_41 = arith.constant 3 : i32
      %61 = vector.broadcast %c3_i32_41 : i32 to vector<1x8xi32>
      %62 = arith.cmpi slt, %47, %61 : vector<1x8xi32>
      %63 = math.tanh %46 : vector<1x8xf32>
      %64 = vector.broadcast %60 : vector<1x1xf32> to vector<1x8xf32>
      %65 = arith.mulf %46, %64 : vector<1x8xf32>
      %cst_42 = arith.constant 0.000000e+00 : f32
      %66 = vector.broadcast %cst_42 : f32 to vector<1x8xf32>
      %67 = arith.select %52, %65, %66 : vector<1x8xi1>, vector<1x8xf32>
      %68 = arith.select %62, %63, %67 : vector<1x8xi1>, vector<1x8xf32>
      %c0_43 = arith.constant 0 : index
      %c0_44 = arith.constant 0 : index
      %69 = vector.load %arg24[%c0_43, %c0_44] : memref<1x8xf32, #tpu.memory_space<vmem>>, vector<1x8xf32>
      tpu.vector_store %arg24[%c0_43, %c0_44], %68 {strides = array<i32>} : memref<1x8xf32, #tpu.memory_space<vmem>>, vector<1x8xf32>,
    } else {
    }
    %c0 = arith.constant 0 : index
    %c0_3 = arith.constant 0 : index
    %6 = vector.load %arg24[%c0, %c0_3] : memref<1x8xf32, #tpu.memory_space<vmem>>, vector<1x8xf32>
    %c0_4 = arith.constant 0 : index
    %c0_5 = arith.constant 0 : index
    %c0_6 = arith.constant 0 : index
    %7 = vector.load %arg22[%c0_4, %c0_5, %c0_6] : memref<1x1x8xf32, #tpu.memory_space<vmem>>, vector<1x1x8xf32>
    %8 = vector.shape_cast %7 : vector<1x1x8xf32> to vector<1x8xf32>
    %9 = vector.shape_cast %6 : vector<1x8xf32> to vector<1x1x8xf32>
    tpu.vector_store %arg22[%c0_4, %c0_5, %c0_6], %9 {strides = array<i32>} : memref<1x1x8xf32, #tpu.memory_space<vmem>>, vector<1x1x8xf32>,
    %c1_i32 = arith.constant 1 : i32
    %10 = arith.addi %arg1, %c1_i32 : i32
    %c4_i32 = arith.constant 4 : i32
    %11 = arith.cmpi slt, %10, %c4_i32 : i32
    %12 = arith.extui %11 : i1 to i32
    %c0_i32_7 = arith.constant 0 : i32
    %13 = arith.cmpi ne, %12, %c0_i32_7 : i32
    scf.if %13 {
      %14 = vector.extract_strided_slice %6 {offsets = [0, 0], sizes = [1, 1], strides = [1, 1]} : vector<1x8xf32> to vector<1x1xf32>
      %15 = vector.extract_strided_slice %6 {offsets = [0, 1], sizes = [1, 1], strides = [1, 1]} : vector<1x8xf32> to vector<1x1xf32>
      %16 = vector.extract_strided_slice %6 {offsets = [0, 2], sizes = [1, 1], strides = [1, 1]} : vector<1x8xf32> to vector<1x1xf32>
      %17 = vector.extract_strided_slice %6 {offsets = [0, 3], sizes = [1, 1], strides = [1, 1]} : vector<1x8xf32> to vector<1x1xf32>
      %18 = vector.extract_strided_slice %6 {offsets = [0, 4], sizes = [1, 1], strides = [1, 1]} : vector<1x8xf32> to vector<1x1xf32>
      %19 = vector.extract_strided_slice %6 {offsets = [0, 5], sizes = [1, 1], strides = [1, 1]} : vector<1x8xf32> to vector<1x1xf32>
      %20 = vector.extract_strided_slice %6 {offsets = [0, 6], sizes = [1, 1], strides = [1, 1]} : vector<1x8xf32> to vector<1x1xf32>
      %c0_8 = arith.constant 0 : index
      %c0_9 = arith.constant 0 : index
      %c0_10 = arith.constant 0 : index
      %c0_11 = arith.constant 0 : index
      %21 = vector.load %arg2[%c0_8, %c0_9, %c0_10, %c0_11] : memref<1x3x1x16xf32, #tpu.memory_space<vmem>>, vector<1x1x1x16xf32>
      %22 = vector.shape_cast %21 : vector<1x1x1x16xf32> to vector<1x16xf32>
      %c0_12 = arith.constant 0 : index
      %c1 = arith.constant 1 : index
      %c0_13 = arith.constant 0 : index
      %c0_14 = arith.constant 0 : index
      %23 = vector.load %arg2[%c0_12, %c1, %c0_13, %c0_14] : memref<1x3x1x16xf32, #tpu.memory_space<vmem>>, vector<1x1x1x16xf32>
      %24 = vector.shape_cast %23 : vector<1x1x1x16xf32> to vector<1x16xf32>
      %c0_15 = arith.constant 0 : index
      %c2 = arith.constant 2 : index
      %c0_16 = arith.constant 0 : index
      %c0_17 = arith.constant 0 : index
      %25 = vector.load %arg2[%c0_15, %c2, %c0_16, %c0_17] : memref<1x3x1x16xf32, #tpu.memory_space<vmem>>, vector<1x1x1x16xf32>
      %26 = vector.shape_cast %25 : vector<1x1x1x16xf32> to vector<1x16xf32>
      %27 = vector.broadcast %19 : vector<1x1xf32> to vector<1x16xf32>
      %28 = arith.mulf %27, %26 : vector<1x16xf32>
      %29 = vector.broadcast %20 : vector<1x1xf32> to vector<1x16xf32>
      %30 = arith.mulf %29, %24 : vector<1x16xf32>
      %31 = arith.subf %28, %30 : vector<1x16xf32>
      %32 = vector.broadcast %20 : vector<1x1xf32> to vector<1x16xf32>
      %33 = arith.mulf %32, %22 : vector<1x16xf32>
      %34 = vector.broadcast %18 : vector<1x1xf32> to vector<1x16xf32>
      %35 = arith.mulf %34, %26 : vector<1x16xf32>
      %36 = arith.subf %33, %35 : vector<1x16xf32>
      %37 = vector.broadcast %18 : vector<1x1xf32> to vector<1x16xf32>
      %38 = arith.mulf %37, %24 : vector<1x16xf32>
      %39 = vector.broadcast %19 : vector<1x1xf32> to vector<1x16xf32>
      %40 = arith.mulf %39, %22 : vector<1x16xf32>
      %41 = arith.subf %38, %40 : vector<1x16xf32>
      %42 = vector.broadcast %19 : vector<1x1xf32> to vector<1x16xf32>
      %43 = arith.mulf %42, %41 : vector<1x16xf32>
      %44 = vector.broadcast %20 : vector<1x1xf32> to vector<1x16xf32>
      %45 = arith.mulf %44, %36 : vector<1x16xf32>
      %46 = arith.subf %43, %45 : vector<1x16xf32>
      %47 = vector.broadcast %20 : vector<1x1xf32> to vector<1x16xf32>
      %48 = arith.mulf %47, %31 : vector<1x16xf32>
      %49 = vector.broadcast %18 : vector<1x1xf32> to vector<1x16xf32>
      %50 = arith.mulf %49, %41 : vector<1x16xf32>
      %51 = arith.subf %48, %50 : vector<1x16xf32>
      %52 = vector.broadcast %18 : vector<1x1xf32> to vector<1x16xf32>
      %53 = arith.mulf %52, %36 : vector<1x16xf32>
      %54 = vector.broadcast %19 : vector<1x1xf32> to vector<1x16xf32>
      %55 = arith.mulf %54, %31 : vector<1x16xf32>
      %56 = arith.subf %53, %55 : vector<1x16xf32>
      %57 = vector.broadcast %17 : vector<1x1xf32> to vector<1x16xf32>
      %58 = arith.mulf %57, %31 : vector<1x16xf32>
      %59 = arith.addf %58, %46 : vector<1x16xf32>
      %cst = arith.constant 2.000000e+00 : f32
      %60 = vector.broadcast %cst : f32 to vector<1x16xf32>
      %61 = arith.mulf %60, %59 : vector<1x16xf32>
      %62 = arith.addf %22, %61 : vector<1x16xf32>
      %63 = vector.broadcast %14 : vector<1x1xf32> to vector<1x16xf32>
      %64 = arith.addf %62, %63 : vector<1x16xf32>
      %65 = vector.broadcast %17 : vector<1x1xf32> to vector<1x16xf32>
      %66 = arith.mulf %65, %36 : vector<1x16xf32>
      %67 = arith.addf %66, %51 : vector<1x16xf32>
      %cst_18 = arith.constant 2.000000e+00 : f32
      %68 = vector.broadcast %cst_18 : f32 to vector<1x16xf32>
      %69 = arith.mulf %68, %67 : vector<1x16xf32>
      %70 = arith.addf %24, %69 : vector<1x16xf32>
      %71 = vector.broadcast %15 : vector<1x1xf32> to vector<1x16xf32>
      %72 = arith.addf %70, %71 : vector<1x16xf32>
      %73 = vector.broadcast %17 : vector<1x1xf32> to vector<1x16xf32>
      %74 = arith.mulf %73, %41 : vector<1x16xf32>
      %75 = arith.addf %74, %56 : vector<1x16xf32>
      %cst_19 = arith.constant 2.000000e+00 : f32
      %76 = vector.broadcast %cst_19 : f32 to vector<1x16xf32>
      %77 = arith.mulf %76, %75 : vector<1x16xf32>
      %78 = arith.addf %26, %77 : vector<1x16xf32>
      %79 = vector.broadcast %16 : vector<1x1xf32> to vector<1x16xf32>
      %80 = arith.addf %78, %79 : vector<1x16xf32>
      %81 = tpu.concatenate %64, %72, %80 in 0 : vector<1x16xf32>, vector<1x16xf32>, vector<1x16xf32> -> vector<3x16xf32>
      %c0_20 = arith.constant 0 : index
      %c0_21 = arith.constant 0 : index
      %82 = vector.load %arg5[%c0_20, %c0_21] : memref<64x3xf32, #tpu.memory_space<vmem>>, vector<64x3xf32>
      %83 = vector.extract_strided_slice %82 {offsets = [0, 0], sizes = [64, 1], strides = [1, 1]} : vector<64x3xf32> to vector<64x1xf32>
      %84 = vector.extract_strided_slice %81 {offsets = [0, 0], sizes = [1, 16], strides = [1, 1]} : vector<3x16xf32> to vector<1x16xf32>
      %85 = vector.broadcast %83 : vector<64x1xf32> to vector<64x16xf32>
      %86 = vector.broadcast %84 : vector<1x16xf32> to vector<64x16xf32>
      %87 = arith.mulf %85, %86 : vector<64x16xf32>
      %88 = vector.extract_strided_slice %82 {offsets = [0, 1], sizes = [64, 1], strides = [1, 1]} : vector<64x3xf32> to vector<64x1xf32>
      %89 = vector.extract_strided_slice %81 {offsets = [1, 0], sizes = [1, 16], strides = [1, 1]} : vector<3x16xf32> to vector<1x16xf32>
      %90 = vector.broadcast %88 : vector<64x1xf32> to vector<64x16xf32>
      %91 = vector.broadcast %89 : vector<1x16xf32> to vector<64x16xf32>
      %92 = arith.mulf %90, %91 : vector<64x16xf32>
      %93 = arith.addf %87, %92 : vector<64x16xf32>
      %94 = vector.extract_strided_slice %82 {offsets = [0, 2], sizes = [64, 1], strides = [1, 1]} : vector<64x3xf32> to vector<64x1xf32>
      %95 = vector.extract_strided_slice %81 {offsets = [2, 0], sizes = [1, 16], strides = [1, 1]} : vector<3x16xf32> to vector<1x16xf32>
      %96 = vector.broadcast %94 : vector<64x1xf32> to vector<64x16xf32>
      %97 = vector.broadcast %95 : vector<1x16xf32> to vector<64x16xf32>
      %98 = arith.mulf %96, %97 : vector<64x16xf32>
      %99 = arith.addf %93, %98 : vector<64x16xf32>
      %c0_22 = arith.constant 0 : index
      %c0_23 = arith.constant 0 : index
      %100 = vector.load %arg6[%c0_22, %c0_23] : memref<64x1xf32, #tpu.memory_space<vmem>>, vector<64x1xf32>
      %101 = vector.broadcast %100 : vector<64x1xf32> to vector<64x16xf32>
      %102 = arith.addf %99, %101 : vector<64x16xf32>
      %cst_24 = arith.constant 0.000000e+00 : f32
      %103 = vector.broadcast %cst_24 : f32 to vector<64x16xf32>
      %104 = arith.maximumf %102, %103 : vector<64x16xf32>
      %105 = tpu.transpose %104, [1, 0] : vector<64x16xf32> -> vector<16x64xf32>
      %106 = arith.truncf %105 : vector<16x64xf32> to vector<16x64xbf16>
      %c0_25 = arith.constant 0 : index
      %c0_26 = arith.constant 0 : index
      %107 = vector.load %arg7[%c0_25, %c0_26] : memref<64x64xbf16, #tpu.memory_space<vmem>>, vector<64x64xbf16>
      %cst_27 = arith.constant dense<0.000000e+00> : vector<16x64xf32>
      %108 = tpu.matmul %106, %107, %cst_27 {dimension_numbers = #tpu.dot_dimension_numbers<[1], [0], [0], [1], [0, 0, 1, 1], [], []>} : vector<16x64xbf16>, vector<64x64xbf16>, vector<16x64xf32> -> vector<16x64xf32>
      %c0_28 = arith.constant 0 : index
      %c0_29 = arith.constant 0 : index
      %109 = vector.load %arg8[%c0_28, %c0_29] : memref<1x64xf32, #tpu.memory_space<vmem>>, vector<1x64xf32>
      %110 = vector.broadcast %109 : vector<1x64xf32> to vector<16x64xf32>
      %111 = arith.addf %108, %110 : vector<16x64xf32>
      %cst_30 = arith.constant 0.000000e+00 : f32
      %112 = vector.broadcast %cst_30 : f32 to vector<16x64xf32>
      %113 = arith.maximumf %111, %112 : vector<16x64xf32>
      %114 = arith.truncf %113 : vector<16x64xf32> to vector<16x64xbf16>
      %c0_31 = arith.constant 0 : index
      %c0_32 = arith.constant 0 : index
      %115 = vector.load %arg9[%c0_31, %c0_32] : memref<64x64xbf16, #tpu.memory_space<vmem>>, vector<64x64xbf16>
      %cst_33 = arith.constant dense<0.000000e+00> : vector<16x64xf32>
      %116 = tpu.matmul %114, %115, %cst_33 {dimension_numbers = #tpu.dot_dimension_numbers<[1], [0], [0], [1], [0, 0, 1, 1], [], []>} : vector<16x64xbf16>, vector<64x64xbf16>, vector<16x64xf32> -> vector<16x64xf32>
      %c0_34 = arith.constant 0 : index
      %c0_35 = arith.constant 0 : index
      %117 = vector.load %arg10[%c0_34, %c0_35] : memref<1x64xf32, #tpu.memory_space<vmem>>, vector<1x64xf32>
      %118 = vector.broadcast %117 : vector<1x64xf32> to vector<16x64xf32>
      %119 = arith.addf %116, %118 : vector<16x64xf32>
      %cst_36 = arith.constant 0.000000e+00 : f32
      %120 = vector.broadcast %cst_36 : f32 to vector<16x64xf32>
      %121 = arith.maximumf %119, %120 : vector<16x64xf32>
      %122 = arith.truncf %121 : vector<16x64xf32> to vector<16x64xbf16>
      %c0_37 = arith.constant 0 : index
      %c0_38 = arith.constant 0 : index
      %123 = vector.load %arg11[%c0_37, %c0_38] : memref<64x128xbf16, #tpu.memory_space<vmem>>, vector<64x128xbf16>
      %cst_39 = arith.constant dense<0.000000e+00> : vector<16x128xf32>
      %124 = tpu.matmul %122, %123, %cst_39 {dimension_numbers = #tpu.dot_dimension_numbers<[1], [0], [0], [1], [0, 0, 1, 1], [], []>} : vector<16x64xbf16>, vector<64x128xbf16>, vector<16x128xf32> -> vector<16x128xf32>
      %c0_40 = arith.constant 0 : index
      %c0_41 = arith.constant 0 : index
      %125 = vector.load %arg12[%c0_40, %c0_41] : memref<1x128xf32, #tpu.memory_space<vmem>>, vector<1x128xf32>
      %126 = vector.broadcast %125 : vector<1x128xf32> to vector<16x128xf32>
      %127 = arith.addf %124, %126 : vector<16x128xf32>
      %cst_42 = arith.constant 0.000000e+00 : f32
      %128 = vector.broadcast %cst_42 : f32 to vector<16x128xf32>
      %129 = arith.maximumf %127, %128 : vector<16x128xf32>
      %cst_43 = arith.constant dense<0xFF800000> : vector<128xf32>
      %130 = vector.multi_reduction <maximumf>, %129, %cst_43 [0] : vector<16x128xf32> to vector<128xf32>
      %131 = vector.shape_cast %130 : vector<128xf32> to vector<1x128xf32>
      %c0_44 = arith.constant 0 : index
      %c0_45 = arith.constant 0 : index
      %132 = vector.load %arg23[%c0_44, %c0_45] : memref<1x128xf32, #tpu.memory_space<vmem>>, vector<1x128xf32>
      %133 = arith.maximumf %132, %131 : vector<1x128xf32>
      %c0_46 = arith.constant 0 : index
      %c0_47 = arith.constant 0 : index
      %134 = vector.load %arg23[%c0_46, %c0_47] : memref<1x128xf32, #tpu.memory_space<vmem>>, vector<1x128xf32>
      tpu.vector_store %arg23[%c0_46, %c0_47], %133 {strides = array<i32>} : memref<1x128xf32, #tpu.memory_space<vmem>>, vector<1x128xf32>,
    } else {
    }
    return
  }
  func.func @transform_0(%arg0: i32, %arg1: i32) -> (i32, i32, i32, i32) {
    %c2_i32 = arith.constant 2 : i32
    %0 = arith.muli %arg1, %c2_i32 : i32
    %1 = arith.addi %0, %arg0 : i32
    %c0_i32 = arith.constant 0 : i32
    %c0_i32_0 = arith.constant 0 : i32
    %c0_i32_1 = arith.constant 0 : i32
    %c0_i32_2 = arith.constant 0 : i32
    return %1, %c0_i32, %c0_i32_0, %c0_i32_1 : i32, i32, i32, i32
  }
  func.func @transform_1(%arg0: i32, %arg1: i32) -> (i32, i32, i32) {
    %c2_i32 = arith.constant 2 : i32
    %0 = arith.muli %arg1, %c2_i32 : i32
    %1 = arith.addi %0, %arg0 : i32
    %c0_i32 = arith.constant 0 : i32
    %c0_i32_0 = arith.constant 0 : i32
    %c0_i32_1 = arith.constant 0 : i32
    return %1, %c0_i32, %c0_i32_0 : i32, i32, i32
  }
  func.func @transform_2(%arg0: i32, %arg1: i32) -> (i32, i32, i32) {
    %c0_i32 = arith.constant 0 : i32
    %c0_i32_0 = arith.constant 0 : i32
    %c0_i32_1 = arith.constant 0 : i32
    return %arg0, %c0_i32, %c0_i32_0 : i32, i32, i32
  }
  func.func @transform_3(%arg0: i32, %arg1: i32) -> (i32, i32) {
    %c0_i32 = arith.constant 0 : i32
    %c0_i32_0 = arith.constant 0 : i32
    %c0_i32_1 = arith.constant 0 : i32
    return %c0_i32, %c0_i32_0 : i32, i32
  }
  func.func @transform_4(%arg0: i32, %arg1: i32) -> (i32, i32) {
    %c0_i32 = arith.constant 0 : i32
    %c0_i32_0 = arith.constant 0 : i32
    %c0_i32_1 = arith.constant 0 : i32
    return %c0_i32, %c0_i32_0 : i32, i32
  }
  func.func @transform_5(%arg0: i32, %arg1: i32) -> (i32, i32) {
    %c0_i32 = arith.constant 0 : i32
    %c0_i32_0 = arith.constant 0 : i32
    %c0_i32_1 = arith.constant 0 : i32
    return %c0_i32, %c0_i32_0 : i32, i32
  }
  func.func @transform_6(%arg0: i32, %arg1: i32) -> (i32, i32) {
    %c0_i32 = arith.constant 0 : i32
    %c0_i32_0 = arith.constant 0 : i32
    %c0_i32_1 = arith.constant 0 : i32
    return %c0_i32, %c0_i32_0 : i32, i32
  }
  func.func @transform_7(%arg0: i32, %arg1: i32) -> (i32, i32) {
    %c0_i32 = arith.constant 0 : i32
    %c0_i32_0 = arith.constant 0 : i32
    %c0_i32_1 = arith.constant 0 : i32
    return %c0_i32, %c0_i32_0 : i32, i32
  }
  func.func @transform_8(%arg0: i32, %arg1: i32) -> (i32, i32) {
    %c0_i32 = arith.constant 0 : i32
    %c0_i32_0 = arith.constant 0 : i32
    %c0_i32_1 = arith.constant 0 : i32
    return %c0_i32, %c0_i32_0 : i32, i32
  }
  func.func @transform_9(%arg0: i32, %arg1: i32) -> (i32, i32) {
    %c0_i32 = arith.constant 0 : i32
    %c0_i32_0 = arith.constant 0 : i32
    %c0_i32_1 = arith.constant 0 : i32
    return %c0_i32, %c0_i32_0 : i32, i32
  }
  func.func @transform_10(%arg0: i32, %arg1: i32) -> (i32, i32) {
    %c0_i32 = arith.constant 0 : i32
    %c0_i32_0 = arith.constant 0 : i32
    %c0_i32_1 = arith.constant 0 : i32
    return %c0_i32, %c0_i32_0 : i32, i32
  }
  func.func @transform_11(%arg0: i32, %arg1: i32) -> (i32, i32) {
    %c0_i32 = arith.constant 0 : i32
    %c0_i32_0 = arith.constant 0 : i32
    %c0_i32_1 = arith.constant 0 : i32
    return %c0_i32, %c0_i32_0 : i32, i32
  }
  func.func @transform_12(%arg0: i32, %arg1: i32) -> (i32, i32) {
    %c0_i32 = arith.constant 0 : i32
    %c0_i32_0 = arith.constant 0 : i32
    %c0_i32_1 = arith.constant 0 : i32
    return %c0_i32, %c0_i32_0 : i32, i32
  }
  func.func @transform_13(%arg0: i32, %arg1: i32) -> (i32, i32) {
    %c0_i32 = arith.constant 0 : i32
    %c0_i32_0 = arith.constant 0 : i32
    %c0_i32_1 = arith.constant 0 : i32
    return %c0_i32, %c0_i32_0 : i32, i32
  }
  func.func @transform_14(%arg0: i32, %arg1: i32) -> (i32, i32) {
    %c0_i32 = arith.constant 0 : i32
    %c0_i32_0 = arith.constant 0 : i32
    %c0_i32_1 = arith.constant 0 : i32
    return %c0_i32, %c0_i32_0 : i32, i32
  }
  func.func @transform_15(%arg0: i32, %arg1: i32) -> (i32, i32) {
    %c0_i32 = arith.constant 0 : i32
    %c0_i32_0 = arith.constant 0 : i32
    %c0_i32_1 = arith.constant 0 : i32
    return %c0_i32, %c0_i32_0 : i32, i32
  }
  func.func @transform_16(%arg0: i32, %arg1: i32) -> (i32, i32) {
    %c0_i32 = arith.constant 0 : i32
    %c0_i32_0 = arith.constant 0 : i32
    %c0_i32_1 = arith.constant 0 : i32
    return %c0_i32, %c0_i32_0 : i32, i32
  }
  func.func @transform_17(%arg0: i32, %arg1: i32) -> (i32, i32) {
    %c0_i32 = arith.constant 0 : i32
    %c0_i32_0 = arith.constant 0 : i32
    %c0_i32_1 = arith.constant 0 : i32
    return %c0_i32, %c0_i32_0 : i32, i32
  }
  func.func @transform_18(%arg0: i32, %arg1: i32) -> (i32, i32) {
    %c0_i32 = arith.constant 0 : i32
    %c0_i32_0 = arith.constant 0 : i32
    %c0_i32_1 = arith.constant 0 : i32
    return %c0_i32, %c0_i32_0 : i32, i32
  }
  func.func @transform_19(%arg0: i32, %arg1: i32) -> (i32, i32) {
    %c0_i32 = arith.constant 0 : i32
    %c0_i32_0 = arith.constant 0 : i32
    %c0_i32_1 = arith.constant 0 : i32
    return %c0_i32, %c0_i32_0 : i32, i32
  }
  func.func @transform_20(%arg0: i32, %arg1: i32) -> (i32, i32, i32) {
    %c2_i32 = arith.constant 2 : i32
    %0 = arith.muli %arg1, %c2_i32 : i32
    %1 = arith.addi %0, %arg0 : i32
    %c0_i32 = arith.constant 0 : i32
    %c0_i32_0 = arith.constant 0 : i32
    %c0_i32_1 = arith.constant 0 : i32
    return %1, %c0_i32, %c0_i32_0 : i32, i32, i32
  }
}

</mosaic_0001>

<bundles_post_ra>
// kernel: network_forward.2
= control target key start
LH: loop header
LB: loop body
LE: loop exit
PB: predicated region body
PF: predicated region fallthrough
CT: control target
= control target key end

     0   :  { %v1305_v0 = vmov 2   ;;  %v1306_v1 = vmov 0   ;;  %v1307_v5 = vmov 1   ;;  %v88_v24 = vlaneseq  ;;  %s1585_s1 = inlined_call_operand.vmem [shape: f32[64,3], index: 1, kind: input, shape index: {}]   ;;  %s1586_s2 = inlined_call_operand.vmem [shape: f32[64,1], index: 2, kind: input, shape index: {}]   ;;  %s1587_s3 = inlined_call_operand.vmem [shape: bf16[64,64], index: 3, kind: input, shape index: {}]   ;;  %s1588_s0 = inlined_call_operand.vmem [shape: f32[1,3,128], index: 0, kind: input, shape index: {}]   ;;  %s1589_s5 = inlined_call_operand.vmem [shape: bf16[64,64], index: 5, kind: input, shape index: {}]   ;;  %s1590_s7 = inlined_call_operand.vmem [shape: bf16[64,128], index: 7, kind: input, shape index: {}]   ;;  %s1591_s4 = inlined_call_operand.vmem [shape: f32[1,64], index: 4, kind: input, shape index: {}]   ;;  %s1592_s6 = inlined_call_operand.vmem [shape: f32[1,64], index: 6, kind: input, shape index: {}]   ;;  %s1593_s9 = inlined_call_operand.vmem [shape: bf16[128,32], index: 9, kind: input, shape index: {}]   ;;  %s1594_s8 = inlined_call_operand.vmem [shape: f32[1,128], index: 8, kind: input, shape index: {}]   ;;  %s1595_s10 = inlined_call_operand.vmem [shape: f32[1,32], index: 10, kind: input, shape index: {}]   ;;  %s1596_s11 = inlined_call_operand.vmem [shape: f32[1,8,32], index: 11, kind: output, shape index: {}]  }
   0x1   :  { %1271 = vset.pattern.permute.xlu0 %v1305_v0  ;;  %1265 = vset.pattern.permute.xlu1 %v1306_v1  ;;  %v42_v2 = vld [vmem:[%s1585_s1 + $0x10] sm:$0xff]  ;;  %v41_v3 = vld [vmem:[%s1585_s1 + $0x8] sm:$0xff]  ;;  %v40_v4 = vld [vmem:[%s1585_s1] sm:$0xff]  ;;  %vm347_vm0 = vcmask 523264   ;;  %vm1309_vm1 = vmmov 0   ;;  %vm956_vm2 = vcmask 1041409  }
   0x2   :  { %161 = vperm.xlu0 %1271, %v42_v2   ;;  %55 = vperm.xlu1 %1265, %v41_v3   ;;  %v44_v6 = vld [vmem:[%s1585_s1 + $0x20] sm:$0xff]  ;;  %v46_v7 = vld [vmem:[%s1585_s1 + $0x30] sm:$0xff]  ;;  %v43_v8 = vld [vmem:[%s1585_s1 + $0x18] sm:$0xff]  ;;  %v89_v27 = vshrl.u32 %v88_v24, 7  ;;  %vm958_vm3 = vcmask 1042434   ;;  %vm960_vm4 = vcmask 1043459  }
   0x3   :  { %v45_v9 = vld [vmem:[%s1585_s1 + $0x28] sm:$0xff]  ;;  %v204_v10 = vld [vmem:[%s1586_s2] sm:$0xff]  ;;  %v206_v11 = vld [vmem:[%s1586_s2 + $0x10] sm:$0xff]  ;;  %vm962_vm5 = vcmask 1044484   ;;  %vm964_vm6 = vcmask 1045509   ;;  %vm966_vm7 = vcmask 1046534  }
   0x4   :  { %v47_v12 = vld [vmem:[%s1585_s1 + $0x38] sm:$0xff]  ;;  %v208_v13 = vld [vmem:[%s1586_s2 + $0x20] sm:$0xff]  ;;  %v205_v14 = vld [vmem:[%s1586_s2 + $0x8] sm:$0xff]  ;;  %v90_v29 = vsub.s32 0, %v89_v27  ;;  %v134_v30 = vsub.s32 1, %v89_v27  ;;  %v186_v35 = vsub.s32 2, %v89_v27 }
   0x5   :  { %v209_v15 = vld [vmem:[%s1586_s2 + $0x28] sm:$0xff]  ;;  %v211_v16 = vld [vmem:[%s1586_s2 + $0x38] sm:$0xff]  ;;  %v210_v18 = vld [vmem:[%s1586_s2 + $0x30] sm:$0xff]  ;;  %vm968_vm8 = vcmask 1047559   ;;  %vm1061_vm9 = vcmask 261120  }
   0x6   :  { %1272 = vset.pattern.permute.xlu0 %v1307_v5  ;;  %1266 = vset.pattern.permute.xlu1 %v1307_v5  ;;  %v207_v17 = vld [vmem:[%s1586_s2 + $0x18] sm:$0xff]  ;;  %v39_v32 = vld [vmem:[%s1588_s0] sm:$0x7] }
   0x7   :  { %105 = vperm.xlu1 %1266, %v41_v3   ;;  %101 = vperm.xlu0 %1272, %v40_v4   ;;  %v1285_v19 = vld [vmem:[%s1587_s3 + $0x18] sm:$0xff]   ;;  %v1440_v34 = vrot.slane %v39_v32, %v90_v29  ;;  %v1442_v36 = vrot.slane %v39_v32, %v134_v30  ;;  %v1446_v40 = vrot.slane %v39_v32, %v186_v35  ;;  %v1287_v29 = vld [vmem:[%s1587_s3 + $0x8] sm:$0xff]  }
   0x8   :  { %1160 = vmatprep.subr.bf16.mxu0 %v1285_v19  ;;  %1252 = vmatprep.subr.bf16.mxu1 %v1285_v19 }
   0x9   :  { %1161 = vmatpush3.bf16.msra.mxu0 %v1285_v19  ;;  %1256 = vmatpush3.bf16.msra.mxu1 %v1285_v19 }
   0xb   :  { %1267 = vset.pattern.permute.xlu1 %v1305_v0  ;;  %117 = vperm.xlu0 %1272, %v44_v6  }
   0xc   :  { %153 = vperm.xlu1 %1267, %v40_v4  }
   0xf   :  { %125 = vperm.xlu0 %1272, %v46_v7  }
  0x10   :  { %1268 = vset.pattern.permute.xlu1 %v1307_v5 }
  0x11   :  { %109 = vperm.xlu1 %1268, %v42_v2  }
  0x13   :  { %1279 = vset.pattern.permute.xlu0 %v1306_v1 }
  0x14   :  { %50 = vperm.xlu0 %1279, %v40_v4  }
  0x15   :  { %1269 = vset.pattern.permute.xlu1 %v1305_v0 }
  0x16   :  { %157 = vperm.xlu1 %1269, %v41_v3  }
  0x18   :  { %60 = vperm.xlu0 %1279, %v42_v2  }
  0x1a   :  { %1270 = vset.pattern.permute.xlu1 %v1307_v5 }
  0x1b   :  { %113 = vperm.xlu1 %1270, %v43_v8  }
  0x1c   :  { %65 = vperm.xlu0 %1279, %v43_v8  }
  0x1f   :  { %1273 = vset.pattern.permute.xlu1 %v1306_v1 }
  0x20   :  { %75 = vperm.xlu0 %1279, %v45_v9   ;;  %214 = vperm.xlu1 %1273, %v204_v10  }
  0x24   :  { %224 = vperm.xlu0 %1279, %v206_v11   ;;  %70 = vperm.xlu1 %1273, %v44_v6  }
  0x28   :  { %1274 = vset.pattern.permute.xlu1 %v1305_v0  ;;  %85 = vperm.xlu0 %1279, %v47_v12  }
  0x29   :  { %165 = vperm.xlu1 %1274, %v43_v8  }
  0x2c   :  { %234 = vperm.xlu0 %1279, %v208_v13  }
  0x2d   :  { %1275 = vset.pattern.permute.xlu1 %v1306_v1 }
  0x2e   :  { %219 = vperm.xlu1 %1275, %v205_v14  }
  0x30   :  { %239 = vperm.xlu0 %1279, %v209_v15  }
  0x32   :  { %1276 = vset.pattern.permute.xlu1 %v1307_v5 }
  0x33   :  { %121 = vperm.xlu1 %1276, %v45_v9  }
  0x34   :  { %249 = vperm.xlu0 %1279, %v211_v16   ;;  %v1286_v16 = vld [vmem:[%s1587_s3 + $0x10] sm:$0xff]  }
  0x35   :  { %1162 = vmatprep.subr.bf16.mxu0 %v1286_v16  ;;  %1253 = vmatprep.subr.bf16.mxu1 %v1286_v16 }
  0x36   :  { %1163 = vmatpush3.bf16.msra.mxu0 %v1286_v16  ;;  %1257 = vmatpush3.bf16.msra.mxu1 %v1286_v16 }
  0x37   :  { %1277 = vset.pattern.permute.xlu1 %v1305_v0  ;;  %1164 = vmatprep.subr.bf16.mxu0 %v1287_v29 }
  0x38   :  { %169 = vperm.xlu1 %1277, %v44_v6   ;;  %1254 = vmatprep.subr.bf16.mxu1 %v1287_v29 }
  0x3a   :  { %1165 = vmatpush3.bf16.msra.mxu0 %v1287_v29  ;;  %1258 = vmatpush3.bf16.msra.mxu1 %v1287_v29 }
  0x3c   :  { %1278 = vset.pattern.permute.xlu1 %v1306_v1 }
  0x3d   :  { %80 = vperm.xlu1 %1278, %v46_v7  }
  0x41   :  { %1280 = vset.pattern.permute.xlu1 %v1305_v0 }
  0x42   :  { %173 = vperm.xlu1 %1280, %v45_v9  }
  0x46   :  { %1281 = vset.pattern.permute.xlu1 %v1306_v1 }
  0x47   :  { %229 = vperm.xlu1 %1281, %v207_v17  }
  0x4b   :  { %1282 = vset.pattern.permute.xlu1 %v1307_v5 }
  0x4c   :  { %129 = vperm.xlu1 %1282, %v47_v12  }
  0x50   :  { %1283 = vset.pattern.permute.xlu1 %v1305_v0 }
  0x51   :  { %177 = vperm.xlu1 %1283, %v46_v7  }
  0x55   :  { %181 = vperm.xlu1 %1283, %v47_v12  }
  0x59   :  { %1284 = vset.pattern.permute.xlu1 %v1306_v1 }
  0x5a   :  { %244 = vperm.xlu1 %1284, %v210_v18  }
  0x7d   :  { %v56_v20 = vpop.permute.xlu1 %55  ;;  %v162_v21 = vpop.permute.xlu0 %161 }
  0x7e   :  { %v93_v54 = vmul.f32 %v1440_v34, %v56_v20  ;;  %v190_v58 = vmul.f32 %v1446_v40, %v162_v21 }
  0x82   :  { %v106_v22 = vpop.permute.xlu1 %105  ;;  %v102_v23 = vpop.permute.xlu0 %101 }
  0x83   :  { %v136_v38 = vmul.f32 %v1442_v36, %v102_v23  ;;  %v137_v51 = vmul.f32 %v1442_v36, %v106_v22 }
  0x85   :  { %v145_v59 = vadd.f32 %v137_v51, %v93_v54 }
  0x86   :  { %v118_v25 = vpop.permute.xlu0 %117 }
  0x87   :  { %v154_v26 = vpop.permute.xlu1 %153  ;;  %v140_v8 = vmul.f32 %v1442_v36, %v118_v25 }
  0x88   :  { %v188_v44 = vmul.f32 %v1446_v40, %v154_v26 }
  0x8a   :  { %v1435_v28 = vpop.permute.xlu0 %125 }
  0x8c   :  { %v110_v31 = vpop.permute.xlu1 %109 }
  0x8d   :  { %v138_v55 = vmul.f32 %v1442_v36, %v110_v31 }
  0x8f   :  { %v51_v33 = vpop.permute.xlu0 %50 }
  0x90   :  { %v92_v39 = vmul.f32 %v1440_v34, %v51_v33  ;;  %v1288_v33 = vld [vmem:[%s1587_s3] sm:$0xff]  }
  0x91   :  { %v158_v37 = vpop.permute.xlu1 %157  ;;  %1166 = vmatprep.subr.bf16.mxu0 %v1288_v33  ;;  %1255 = vmatprep.subr.bf16.mxu1 %v1288_v33 }
  0x92   :  { %v144_v41 = vadd.f32 %v136_v38, %v92_v39  ;;  %v189_v56 = vmul.f32 %v1446_v40, %v158_v37  ;;  %1167 = vmatpush3.bf16.msra.mxu0 %v1288_v33  ;;  %1259 = vmatpush3.bf16.msra.mxu1 %v1288_v33 }
  0x93   :  { %v61_v43 = vpop.permute.xlu0 %60 }
  0x94   :  { %v196_v45 = vadd.f32 %v188_v44, %v144_v41  ;;  %v94_v52 = vmul.f32 %v1440_v34, %v61_v43  ;;  %v197_v61 = vadd.f32 %v189_v56, %v145_v59 }
  0x96   :  { %v114_v42 = vpop.permute.xlu1 %113  ;;  %v146_v60 = vadd.f32 %v138_v55, %v94_v52 }
  0x97   :  { %v66_v48 = vpop.permute.xlu0 %65  ;;  %v139_v9 = vmul.f32 %v1442_v36, %v114_v42 }
  0x98   :  { %v198_v0 = vadd.f32 %v190_v58, %v146_v60  ;;  %v95_v10 = vmul.f32 %v1440_v34, %v66_v48 }
  0x9a   :  { %v147_v17 = vadd.f32 %v139_v9, %v95_v10 }
  0x9b   :  { %v215_v46 = vpop.permute.xlu1 %214  ;;  %v76_v53 = vpop.permute.xlu0 %75 }
  0x9c   :  { %v252_v47 = vadd.f32 %v215_v46, %v196_v45  ;;  %v97_v18 = vmul.f32 %v1440_v34, %v76_v53  ;;  %v142_v45 = vmul.f32 %v1442_v36, %v1435_v28  ;;  %v1289_v28 = vld [vmem:[%s1589_s5 + $0x18] sm:$0xff]  }
  0x9d   :  { %1184 = vmatprep.subr.bf16.mxu1 %v1289_v28 }
  0x9e   :  { %v260_v49 = vmax.f32 %v252_v47, 0.0 }
  0x9f   :  { %v71_v50 = vpop.permute.xlu1 %70  ;;  %v225_v62 = vpop.permute.xlu0 %224 }
  0xa0   :  { %268 = vxpose.xlu1.b32.start [1/8] (short) %v260_v49, 128  ;;  %v254_v2 = vadd.f32 %v225_v62, %v198_v0  ;;  %v96_v11 = vmul.f32 %v1440_v34, %v71_v50 }
  0xa2   :  { %v262_v5 = vmax.f32 %v254_v2, 0.0  ;;  %v148_v19 = vadd.f32 %v140_v8, %v96_v11 }
  0xa3   :  { %v86_v12 = vpop.permute.xlu0 %85 }
  0xa4   :  { %v166_v57 = vpop.permute.xlu1 %165  ;;  %v99_v46 = vmul.f32 %v1440_v34, %v86_v12 }
  0xa5   :  { %v191_v13 = vmul.f32 %v1446_v40, %v166_v57 }
  0xa7   :  { %v199_v23 = vadd.f32 %v191_v13, %v147_v17  ;;  %v235_v24 = vpop.permute.xlu0 %234  ;;  %v1290_v17 = vld [vmem:[%s1589_s5 + $0x10] sm:$0xff]  }
  0xa9   :  { %v220_v63 = vpop.permute.xlu1 %219 }
  0xaa   :  { %v253_v1 = vadd.f32 %v220_v63, %v197_v61 }
  0xab   :  { %v240_v37 = vpop.permute.xlu0 %239 }
  0xac   :  { %v261_v3 = vmax.f32 %v253_v1, 0.0 }
  0xae   :  { %v122_v4 = vpop.permute.xlu1 %121  ;;  %269 = vxpose.xlu1.b32.cont [2/8] (short) %v261_v3, 128 }
  0xaf   :  { %v141_v20 = vmul.f32 %v1442_v36, %v122_v4  ;;  %v250_v56 = vpop.permute.xlu0 %249 }
  0xb1   :  { %v149_v26 = vadd.f32 %v141_v20, %v97_v18  ;;  %v1291_v18 = vld [vmem:[%s1589_s5 + $0x8] sm:$0xff]   ;;  %v1293_v20 = vld [vmem:[%s1590_s7 + $0x18] sm:$0xff]  }
  0xb2   :  { %270 = vxpose.xlu1.b32.cont [3/8] (short) %v262_v5, 128  ;;  %1208 = vmatprep.subr.bf16.mxu0 %v1293_v20 }
  0xb3   :  { %v170_v6 = vpop.permute.xlu1 %169 }
  0xb4   :  { %v192_v14 = vmul.f32 %v1446_v40, %v170_v6 }
  0xb6   :  { %v200_v21 = vadd.f32 %v192_v14, %v148_v19  ;;  %v1292_v19 = vld [vmem:[%s1589_s5] sm:$0xff]  }
  0xb8   :  { %v81_v7 = vpop.permute.xlu1 %80  ;;  %v256_v30 = vadd.f32 %v235_v24, %v200_v21 }
  0xb9   :  { %v98_v43 = vmul.f32 %v1440_v34, %v81_v7 }
  0xba   :  { %v264_v38 = vmax.f32 %v256_v30, 0.0 }
  0xbb   :  { %v150_v50 = vadd.f32 %v142_v45, %v98_v43 }
  0xbd   :  { %v174_v15 = vpop.permute.xlu1 %173 }
  0xbe   :  { %v193_v22 = vmul.f32 %v1446_v40, %v174_v15 }
  0xc0   :  { %v201_v31 = vadd.f32 %v193_v22, %v149_v26 }
  0xc2   :  { %v230_v25 = vpop.permute.xlu1 %229  ;;  %v257_v39 = vadd.f32 %v240_v37, %v201_v31 }
  0xc3   :  { %v255_v27 = vadd.f32 %v230_v25, %v199_v23  ;;  %v1067_v23 = vld [vmem:[%s1591_s4] ss:$0 sm:$0xff] }
  0xc4   :  { %v265_v42 = vmax.f32 %v257_v39, 0.0 }
  0xc5   :  { %v263_v32 = vmax.f32 %v255_v27, 0.0 }
  0xc7   :  { %v130_v35 = vpop.permute.xlu1 %129  ;;  %271 = vxpose.xlu1.b32.cont [4/8] (short) %v263_v32, 128 }
  0xc8   :  { %v143_v44 = vmul.f32 %v1442_v36, %v130_v35 }
  0xca   :  { %v151_v51 = vadd.f32 %v143_v44, %v99_v46 }
  0xcb   :  { %272 = vxpose.xlu1.b32.cont [5/8] (short) %v264_v38, 128 }
  0xcc   :  { %v178_v41 = vpop.permute.xlu1 %177 }
  0xcd   :  { %v194_v47 = vmul.f32 %v1446_v40, %v178_v41 }
  0xcf   :  { %273 = vxpose.xlu1.b32.cont [6/8] (short) %v265_v42, 128  ;;  %v202_v53 = vadd.f32 %v194_v47, %v150_v50 }
  0xd0   :  { %v182_v48 = vpop.permute.xlu1 %181 }
  0xd1   :  { %v195_v49 = vmul.f32 %v1446_v40, %v182_v48 }
  0xd3   :  { %v203_v52 = vadd.f32 %v195_v49, %v151_v51 }
  0xd5   :  { %v245_v54 = vpop.permute.xlu1 %244  ;;  %v259_v57 = vadd.f32 %v250_v56, %v203_v52 }
  0xd6   :  { %v258_v55 = vadd.f32 %v245_v54, %v202_v53 }
  0xd7   :  { %v267_v59 = vmax.f32 %v259_v57, 0.0 }
  0xd8   :  { %v266_v58 = vmax.f32 %v258_v55, 0.0 }
  0xda   :  { %274 = vxpose.xlu1.b32.cont [7/8] (short) %v266_v58, 128 }
  0xde   :  { %275 = vxpose.xlu1.b32.end [8/8] (short) %v267_v59, 128 }
 0x13e   :  { %v284_v34 = vpop.trf.xlu1 }
 0x142   :  { %v285_v36 = vpop.trf.xlu1 }
 0x143   :  { %v300_v40 = vpack.c.bf16 %v285_v36, %v284_v34 }
 0x145   :  { %1168 = vmatprep.mubr.msk.bf16.mxu0 %vm347_vm0, %v300_v40 }
 0x146   :  { %v286_v60 = vpop.trf.xlu1 }
 0x14a   :  { %v287_v61 = vpop.trf.xlu1 }
 0x14b   :  { %v301_v62 = vpack.c.bf16 %v287_v61, %v286_v60 }
 0x14d   :  { %1169 = vmatmul.mubr.msk.bf16.vlgmr.msra.gmra.mxu0 %vm347_vm0, %v301_v62 }
 0x14e   :  { %v288_v63 = vpop.trf.xlu1  ;;  %1209 = vmatpush3.bf16.msra.mxu0 %v1293_v20 }
 0x152   :  { %v289_v0 = vpop.trf.xlu1 }
 0x153   :  { %v302_v1 = vpack.c.bf16 %v289_v0, %v288_v63 }
 0x155   :  { %1172 = vmatprep.mubr.msk.bf16.mxu0 %vm347_vm0, %v302_v1 }
 0x156   :  { %v290_v2 = vpop.trf.xlu1 }
 0x15a   :  { %v291_v3 = vpop.trf.xlu1 }
 0x15b   :  { %v303_v4 = vpack.c.bf16 %v291_v3, %v290_v2 }
 0x15d   :  { %1173 = vmatmul.mubr.msk.bf16.gmra.mxu0 %vm347_vm0, %v303_v4 }
 0x15e   :  { %v292_v5 = vpop.trf.xlu1 }
 0x162   :  { %v293_v6 = vpop.trf.xlu1 }
 0x163   :  { %v304_v7 = vpack.c.bf16 %v293_v6, %v292_v5 }
 0x165   :  { %1176 = vmatprep.mubr.msk.bf16.mxu1 %vm347_vm0, %v304_v7 }
 0x166   :  { %v294_v8 = vpop.trf.xlu1 }
 0x16a   :  { %v295_v9 = vpop.trf.xlu1 }
 0x16b   :  { %v305_v10 = vpack.c.bf16 %v295_v9, %v294_v8 }
 0x16d   :  { %1177 = vmatmul.mubr.msk.bf16.vlgmr.msra.gmra.mxu1 %vm347_vm0, %v305_v10 }
 0x16e   :  { %v296_v11 = vpop.trf.xlu1  ;;  %1185 = vmatpush3.bf16.msra.mxu1 %v1289_v28 }
 0x16f   :  { %1186 = vmatprep.subr.bf16.mxu1 %v1290_v17 }
 0x172   :  { %v297_v12 = vpop.trf.xlu1  ;;  %1187 = vmatpush3.bf16.msra.mxu1 %v1290_v17 }
 0x173   :  { %v306_v13 = vpack.c.bf16 %v297_v12, %v296_v11  ;;  %1188 = vmatprep.subr.bf16.mxu1 %v1291_v18 }
 0x175   :  { %1180 = vmatprep.mubr.msk.bf16.mxu1 %vm347_vm0, %v306_v13 }
 0x176   :  { %v298_v14 = vpop.trf.xlu1  ;;  %1189 = vmatpush3.bf16.msra.mxu1 %v1291_v18 }
 0x177   :  { %1190 = vmatprep.subr.bf16.mxu1 %v1292_v19 }
 0x17a   :  { %v299_v15 = vpop.trf.xlu1  ;;  %1191 = vmatpush3.bf16.msra.mxu1 %v1292_v19  ;;  %v1080_v19 = vld [vmem:[%s1592_s6] ss:$0 sm:$0xff] }
 0x17b   :  { %v307_v16 = vpack.c.bf16 %v299_v15, %v298_v14  ;;  %v1294_v14 = vld [vmem:[%s1590_s7 + $0x10] sm:$0xff]   ;;  %v1295_v15 = vld [vmem:[%s1590_s7 + $0x8] sm:$0xff]  }
 0x17c   :  { %1210 = vmatprep.subr.bf16.mxu0 %v1294_v14 }
 0x17d   :  { %1181 = vmatmul.mubr.msk.bf16.gmra.mxu1 %vm347_vm0, %v307_v16  ;;  %1211 = vmatpush3.bf16.msra.mxu0 %v1294_v14  ;;  %v1296_v16 = vld [vmem:[%s1590_s7] sm:$0xff]  }
 0x17e   :  { %1212 = vmatprep.subr.bf16.mxu0 %v1295_v15  ;;  %v1300_v14 = vld [vmem:[%s1593_s9 + $0x20] sm:$0xff]  }
 0x181   :  { %1213 = vmatpush3.bf16.msra.mxu0 %v1295_v15  ;;  %v1301_v15 = vld [vmem:[%s1593_s9 + $0x18] sm:$0xff]  }
 0x182   :  { %1214 = vmatprep.subr.bf16.mxu0 %v1296_v16 }
 0x185   :  { %1215 = vmatpush3.bf16.msra.mxu0 %v1296_v16  ;;  %v1302_v16 = vld [vmem:[%s1593_s9 + $0x10] sm:$0xff]  }
 0x20d   :  { %v1170_v21 = vpop.f32.mrf.mxu0 }
 0x20e   :  { %v415_v27 = vadd.f32 %v1170_v21, %v1067_v23 }
 0x20f   :  { %v406_v22 = vpop.f32.mrf.mxu0 }
 0x210   :  { %v407_v25 = vadd.f32 %v1067_v23, %v406_v22  ;;  %v471_v35 = vmax.f32 %v415_v27, 0.0 }
 0x211   :  { %v1171_v24 = vpop.f32.mrf.mxu0 }
 0x212   :  { %v418_v26 = vadd.f32 %v1171_v24, %v1067_v23  ;;  %v469_v32 = vmax.f32 %v407_v25, 0.0 }
 0x213   :  { %v409_v29 = vpop.f32.mrf.mxu0 }
 0x214   :  { %v410_v30 = vadd.f32 %v1067_v23, %v409_v29  ;;  %v472_v31 = vmax.f32 %v418_v26, 0.0 }
 0x216   :  { %v470_v33 = vmax.f32 %v410_v30, 0.0  ;;  %v486_v38 = vpack.c.bf16 %v472_v31, %v471_v35 }
 0x218   :  { %v485_v37 = vpack.c.bf16 %v470_v33, %v469_v32 }
 0x21a   :  { %1192 = vmatprep.mubr.msk.bf16.mxu1 %vm347_vm0, %v485_v37 }
 0x21b   :  { %1193 = vmatmul.mubr.msk.bf16.vlgmr.msra.gmra.mxu1 %vm347_vm0, %v486_v38 }
 0x21d   :  { %v1174_v39 = vpop.f32.mrf.mxu0 }
 0x21e   :  { %v431_v45 = vadd.f32 %v1174_v39, %v1067_v23 }
 0x21f   :  { %v422_v41 = vpop.f32.mrf.mxu0 }
 0x220   :  { %v423_v43 = vadd.f32 %v1067_v23, %v422_v41  ;;  %v475_v51 = vmax.f32 %v431_v45, 0.0 }
 0x221   :  { %v1175_v42 = vpop.f32.mrf.mxu0 }
 0x222   :  { %v434_v44 = vadd.f32 %v1175_v42, %v1067_v23  ;;  %v473_v49 = vmax.f32 %v423_v43, 0.0 }
 0x223   :  { %v425_v46 = vpop.f32.mrf.mxu0 }
 0x224   :  { %v426_v47 = vadd.f32 %v1067_v23, %v425_v46  ;;  %v476_v48 = vmax.f32 %v434_v44, 0.0 }
 0x226   :  { %v474_v50 = vmax.f32 %v426_v47, 0.0  ;;  %v488_v53 = vpack.c.bf16 %v476_v48, %v475_v51 }
 0x228   :  { %v487_v52 = vpack.c.bf16 %v474_v50, %v473_v49 }
 0x22a   :  { %1196 = vmatprep.mubr.msk.bf16.mxu1 %vm347_vm0, %v487_v52 }
 0x22b   :  { %1197 = vmatmul.mubr.msk.bf16.gmra.mxu1 %vm347_vm0, %v488_v53 }
 0x22d   :  { %v1178_v54 = vpop.f32.mrf.mxu1 }
 0x22e   :  { %v447_v59 = vadd.f32 %v1178_v54, %v1067_v23 }
 0x22f   :  { %v438_v55 = vpop.f32.mrf.mxu1 }
 0x230   :  { %v439_v57 = vadd.f32 %v1067_v23, %v438_v55  ;;  %v479_v61 = vmax.f32 %v447_v59, 0.0 }
 0x231   :  { %v1179_v56 = vpop.f32.mrf.mxu1 }
 0x232   :  { %v450_v58 = vadd.f32 %v1179_v56, %v1067_v23  ;;  %v477_v40 = vmax.f32 %v439_v57, 0.0 }
 0x233   :  { %v441_v28 = vpop.f32.mrf.mxu1 }
 0x234   :  { %v442_v34 = vadd.f32 %v1067_v23, %v441_v28  ;;  %v480_v36 = vmax.f32 %v450_v58, 0.0 }
 0x236   :  { %v478_v60 = vmax.f32 %v442_v34, 0.0  ;;  %v490_v63 = vpack.c.bf16 %v480_v36, %v479_v61 }
 0x238   :  { %v489_v62 = vpack.c.bf16 %v478_v60, %v477_v40 }
 0x23a   :  { %1200 = vmatprep.mubr.msk.bf16.mxu1 %vm347_vm0, %v489_v62 }
 0x23b   :  { %1201 = vmatmul.mubr.msk.bf16.gmra.mxu1 %vm347_vm0, %v490_v63 }
 0x23d   :  { %v1182_v0 = vpop.f32.mrf.mxu1 }
 0x23e   :  { %v463_v5 = vadd.f32 %v1182_v0, %v1067_v23 }
 0x23f   :  { %v454_v1 = vpop.f32.mrf.mxu1 }
 0x240   :  { %v455_v3 = vadd.f32 %v1067_v23, %v454_v1  ;;  %v483_v11 = vmax.f32 %v463_v5, 0.0 }
 0x241   :  { %v1183_v2 = vpop.f32.mrf.mxu1 }
 0x242   :  { %v466_v4 = vadd.f32 %v1183_v2, %v1067_v23  ;;  %v481_v9 = vmax.f32 %v455_v3, 0.0 }
 0x243   :  { %v457_v6 = vpop.f32.mrf.mxu1 }
 0x244   :  { %v458_v7 = vadd.f32 %v1067_v23, %v457_v6  ;;  %v484_v8 = vmax.f32 %v466_v4, 0.0 }
 0x246   :  { %v482_v10 = vmax.f32 %v458_v7, 0.0  ;;  %v492_v13 = vpack.c.bf16 %v484_v8, %v483_v11  ;;  %v1308_v11 = vmov 0.0  }
 0x247   :  { %1232 = vmatprep.subr.bf16.mxu1 %v1308_v11 }
 0x248   :  { %v491_v12 = vpack.c.bf16 %v482_v10, %v481_v9  ;;  %v1297_v10 = vld [vmem:[%s1593_s9 + $0x38] sm:$0xff]  }
 0x249   :  { %1233 = vmatpush3.bf16.msra.mxu1 %v1297_v10 }
 0x24a   :  { %1204 = vmatprep.mubr.msk.bf16.mxu1 %vm347_vm0, %v491_v12  ;;  %1234 = vmatprep.subr.bf16.mxu1 %v1308_v11  ;;  %v1298_v12 = vld [vmem:[%s1593_s9 + $0x30] sm:$0xff]  }
 0x24b   :  { %1205 = vmatmul.mubr.msk.bf16.gmra.mxu1 %vm347_vm0, %v492_v13  ;;  %v1299_v13 = vld [vmem:[%s1593_s9 + $0x28] sm:$0xff]  }
 0x24c   :  { %1248 = vmatprep.mubr.msk.bf16.mxu1 %vm1309_vm1, %v1308_v11 }
 0x24d   :  { %1235 = vmatpush3.bf16.msra.mxu1 %v1298_v12 }
 0x24e   :  { %1236 = vmatprep.subr.bf16.mxu1 %v1308_v11 }
 0x251   :  { %1237 = vmatpush3.bf16.msra.mxu1 %v1299_v13 }
 0x252   :  { %1238 = vmatprep.subr.bf16.mxu1 %v1308_v11 }
 0x255   :  { %1239 = vmatpush3.bf16.msra.mxu1 %v1300_v14 }
 0x256   :  { %1240 = vmatprep.subr.bf16.mxu1 %v1308_v11 }
 0x259   :  { %1241 = vmatpush3.bf16.msra.mxu1 %v1301_v15 }
 0x25a   :  { %1242 = vmatprep.subr.bf16.mxu1 %v1308_v11 }
 0x25d   :  { %1243 = vmatpush3.bf16.msra.mxu1 %v1302_v16 }
 0x25e   :  { %1244 = vmatprep.subr.bf16.mxu1 %v1308_v11 }
 0x2db   :  { %v1194_v17 = vpop.f32.mrf.mxu1 }
 0x2dc   :  { %v599_v23 = vadd.f32 %v1194_v17, %v1080_v19  ;;  %v1303_v17 = vld [vmem:[%s1593_s9 + $0x8] sm:$0xff]  }
 0x2dd   :  { %v590_v18 = vpop.f32.mrf.mxu1  ;;  %1245 = vmatpush3.bf16.msra.mxu1 %v1303_v17 }
 0x2de   :  { %v591_v21 = vadd.f32 %v1080_v19, %v590_v18  ;;  %v655_v30 = vmax.f32 %v599_v23, 0.0  ;;  %1246 = vmatprep.subr.bf16.mxu1 %v1308_v11  ;;  %v1304_v18 = vld [vmem:[%s1593_s9] sm:$0xff]  }
 0x2df   :  { %v1195_v20 = vpop.f32.mrf.mxu1 }
 0x2e0   :  { %v602_v22 = vadd.f32 %v1195_v20, %v1080_v19  ;;  %v653_v27 = vmax.f32 %v591_v21, 0.0 }
 0x2e1   :  { %v593_v24 = vpop.f32.mrf.mxu1  ;;  %1247 = vmatpush3.bf16.msra.mxu1 %v1304_v18 }
 0x2e2   :  { %v594_v25 = vadd.f32 %v1080_v19, %v593_v24  ;;  %v656_v26 = vmax.f32 %v602_v22, 0.0 }
 0x2e4   :  { %v654_v29 = vmax.f32 %v594_v25, 0.0  ;;  %v670_v32 = vpack.c.bf16 %v656_v26, %v655_v30 }
 0x2e6   :  { %v669_v31 = vpack.c.bf16 %v654_v29, %v653_v27  ;;  %v1561_v27 = vld [vmem:[%s1594_s8] ss:$0 sm:$0xff] }
 0x2e8   :  { %1216 = vmatprep.mubr.msk.bf16.mxu0 %vm347_vm0, %v669_v31 }
 0x2e9   :  { %1217 = vmatmul.mubr.msk.bf16.vlgmr.msra.gmra.mxu0 %vm347_vm0, %v670_v32 }
 0x2eb   :  { %v1198_v33 = vpop.f32.mrf.mxu1 }
 0x2ec   :  { %v615_v41 = vadd.f32 %v1198_v33, %v1080_v19 }
 0x2ed   :  { %v606_v35 = vpop.f32.mrf.mxu1 }
 0x2ee   :  { %v607_v38 = vadd.f32 %v1080_v19, %v606_v35  ;;  %v659_v47 = vmax.f32 %v615_v41, 0.0 }
 0x2ef   :  { %v1199_v37 = vpop.f32.mrf.mxu1 }
 0x2f0   :  { %v618_v39 = vadd.f32 %v1199_v37, %v1080_v19  ;;  %v657_v45 = vmax.f32 %v607_v38, 0.0 }
 0x2f1   :  { %v609_v42 = vpop.f32.mrf.mxu1 }
 0x2f2   :  { %v610_v43 = vadd.f32 %v1080_v19, %v609_v42  ;;  %v660_v44 = vmax.f32 %v618_v39, 0.0 }
 0x2f4   :  { %v658_v46 = vmax.f32 %v610_v43, 0.0  ;;  %v672_v49 = vpack.c.bf16 %v660_v44, %v659_v47 }
 0x2f6   :  { %v671_v48 = vpack.c.bf16 %v658_v46, %v657_v45 }
 0x2f8   :  { %1220 = vmatprep.mubr.msk.bf16.mxu0 %vm347_vm0, %v671_v48 }
 0x2f9   :  { %1221 = vmatmul.mubr.msk.bf16.gmra.mxu0 %vm347_vm0, %v672_v49 }
 0x2fb   :  { %v1202_v50 = vpop.f32.mrf.mxu1 }
 0x2fc   :  { %v631_v55 = vadd.f32 %v1202_v50, %v1080_v19 }
 0x2fd   :  { %v622_v51 = vpop.f32.mrf.mxu1 }
 0x2fe   :  { %v623_v53 = vadd.f32 %v1080_v19, %v622_v51  ;;  %v663_v34 = vmax.f32 %v631_v55, 0.0 }
 0x2ff   :  { %v1203_v52 = vpop.f32.mrf.mxu1 }
 0x300   :  { %v634_v54 = vadd.f32 %v1203_v52, %v1080_v19  ;;  %v661_v59 = vmax.f32 %v623_v53, 0.0 }
 0x301   :  { %v625_v56 = vpop.f32.mrf.mxu1 }
 0x302   :  { %v626_v57 = vadd.f32 %v1080_v19, %v625_v56  ;;  %v664_v58 = vmax.f32 %v634_v54, 0.0 }
 0x304   :  { %v662_v28 = vmax.f32 %v626_v57, 0.0  ;;  %v674_v40 = vpack.c.bf16 %v664_v58, %v663_v34 }
 0x306   :  { %v673_v36 = vpack.c.bf16 %v662_v28, %v661_v59 }
 0x308   :  { %1224 = vmatprep.mubr.msk.bf16.mxu0 %vm347_vm0, %v673_v36 }
 0x309   :  { %1225 = vmatmul.mubr.msk.bf16.gmra.mxu0 %vm347_vm0, %v674_v40 }
 0x30b   :  { %v1206_v60 = vpop.f32.mrf.mxu1 }
 0x30c   :  { %v647_v1 = vadd.f32 %v1206_v60, %v1080_v19 }
 0x30d   :  { %v638_v61 = vpop.f32.mrf.mxu1 }
 0x30e   :  { %v639_v63 = vadd.f32 %v1080_v19, %v638_v61  ;;  %v667_v7 = vmax.f32 %v647_v1, 0.0 }
 0x30f   :  { %v1207_v62 = vpop.f32.mrf.mxu1 }
 0x310   :  { %v650_v0 = vadd.f32 %v1207_v62, %v1080_v19  ;;  %v665_v5 = vmax.f32 %v639_v63, 0.0 }
 0x311   :  { %v641_v2 = vpop.f32.mrf.mxu1 }
 0x312   :  { %v642_v3 = vadd.f32 %v1080_v19, %v641_v2  ;;  %v668_v4 = vmax.f32 %v650_v0, 0.0 }
 0x314   :  { %v666_v6 = vmax.f32 %v642_v3, 0.0  ;;  %v676_v9 = vpack.c.bf16 %v668_v4, %v667_v7 }
 0x316   :  { %v675_v8 = vpack.c.bf16 %v666_v6, %v665_v5 }
 0x318   :  { %1228 = vmatprep.mubr.msk.bf16.mxu0 %vm347_vm0, %v675_v8 }
 0x319   :  { %1229 = vmatmul.mubr.msk.bf16.gmra.mxu0 %vm347_vm0, %v676_v9 }
 0x3a9   :  { %v1218_v19 = vpop.f32.mrf.mxu0 }
 0x3aa   :  { %v783_v35 = vadd.f32 %v1218_v19, %v1561_v27 }
 0x3ab   :  { %v774_v20 = vpop.f32.mrf.mxu0 }
 0x3ac   :  { %v775_v31 = vadd.f32 %v1561_v27, %v774_v20  ;;  %v839_v44 = vmax.f32 %v783_v35, 0.0 }
 0x3ad   :  { %v1219_v21 = vpop.f32.mrf.mxu0 }
 0x3ae   :  { %v786_v32 = vadd.f32 %v1219_v21, %v1561_v27  ;;  %v837_v39 = vmax.f32 %v775_v31, 0.0 }
 0x3af   :  { %v777_v22 = vpop.f32.mrf.mxu0 }
 0x3b0   :  { %v778_v29 = vadd.f32 %v1561_v27, %v777_v22  ;;  %v840_v41 = vmax.f32 %v786_v32, 0.0 }
 0x3b2   :  { %v838_v37 = vmax.f32 %v778_v29, 0.0  ;;  %v860_v49 = vmax.f32 %v839_v44, %v840_v41 }
 0x3b4   :  { %v853_v45 = vmax.f32 %v837_v39, %v838_v37  ;;  %v861_v59 = vrot.slane %v860_v49, 4 }
 0x3b6   :  { %v854_v52 = vrot.slane %v853_v45, 4  ;;  %v862_v1 = vmax.f32 %v860_v49, %v861_v59 }
 0x3b8   :  { %v855_v60 = vmax.f32 %v853_v45, %v854_v52  ;;  %v863_v8 = vrot.slane %v862_v1, 2 }
 0x3b9   :  { %v1222_v23 = vpop.f32.mrf.mxu0 }
 0x3ba   :  { %v799_v46 = vadd.f32 %v1222_v23, %v1561_v27  ;;  %v856_v5 = vrot.slane %v855_v60, 2  ;;  %v864_v16 = vmax.f32 %v862_v1, %v863_v8 }
 0x3bb   :  { %v790_v24 = vpop.f32.mrf.mxu0 }
 0x3bc   :  { %v791_v33 = vadd.f32 %v1561_v27, %v790_v24  ;;  %v843_v53 = vmax.f32 %v799_v46, 0.0  ;;  %v857_v12 = vmax.f32 %v855_v60, %v856_v5  ;;  %v865_v29 = vrot.slane %v864_v16, 1 }
 0x3bd   :  { %v1223_v25 = vpop.f32.mrf.mxu0 }
 0x3be   :  { %v841_v42 = vmax.f32 %v791_v33, 0.0  ;;  %v802_v43 = vadd.f32 %v1223_v25, %v1561_v27  ;;  %v858_v21 = vrot.slane %v857_v12, 1  ;;  %v866_v45 = vmax.f32 %v864_v16, %v865_v29 }
 0x3bf   :  { %v793_v26 = vpop.f32.mrf.mxu0 }
 0x3c0   :  { %v794_v30 = vadd.f32 %v1561_v27, %v793_v26  ;;  %v844_v50 = vmax.f32 %v802_v43, 0.0 }
 0x3c2   :  { %v842_v38 = vmax.f32 %v794_v30, 0.0  ;;  %v874_v28 = vmax.f32 %v843_v53, %v844_v50 }
 0x3c4   :  { %v867_v47 = vmax.f32 %v841_v42, %v842_v38  ;;  %v875_v2 = vrot.slane %v874_v28, 4  ;;  %v859_v38 = vmax.f32 %v857_v12, %v858_v21 }
 0x3c6   :  { %v868_v54 = vrot.slane %v867_v47, 4  ;;  %v876_v9 = vmax.f32 %v874_v28, %v875_v2  ;;  %v909_v50 = vpack.c.bf16 %v859_v38, %v859_v38 }
 0x3c8   :  { %v869_v61 = vmax.f32 %v867_v47, %v868_v54  ;;  %v877_v17 = vrot.slane %v876_v9, 2  ;;  %v948_v59 = vunpack.c.l.b16 %v909_v50 }
 0x3c9   :  { %v1226_v48 = vpop.f32.mrf.mxu0 }
 0x3ca   :  { %v815_v55 = vadd.f32 %v1226_v48, %v1561_v27  ;;  %v870_v6 = vrot.slane %v869_v61, 2  ;;  %v878_v30 = vmax.f32 %v876_v9, %v877_v17 }
 0x3cb   :  { %v806_v51 = vpop.f32.mrf.mxu0 }
 0x3cc   :  { %v807_v57 = vadd.f32 %v1561_v27, %v806_v51  ;;  %v847_v62 = vmax.f32 %v815_v55, 0.0  ;;  %v871_v13 = vmax.f32 %v869_v61, %v870_v6  ;;  %v879_v46 = vrot.slane %v878_v30, 1 }
 0x3cd   :  { %v1227_v56 = vpop.f32.mrf.mxu0  ;;  %v910_v55 = vpack.c.bf16 %v866_v45, %v866_v45 }
 0x3ce   :  { %v818_v58 = vadd.f32 %v1227_v56, %v1561_v27  ;;  %v845_v63 = vmax.f32 %v807_v57, 0.0  ;;  %v872_v22 = vrot.slane %v871_v13, 1  ;;  %v880_v56 = vmax.f32 %v878_v30, %v879_v46 }
 0x3cf   :  { %v809_v34 = vpop.f32.mrf.mxu0  ;;  %v949_v60 = vunpack.c.l.b16 %v910_v55 }
 0x3d0   :  { %v848_v36 = vmax.f32 %v818_v58, 0.0  ;;  %v810_v40 = vadd.f32 %v1561_v27, %v809_v34  ;;  %v873_v39 = vmax.f32 %v871_v13, %v872_v22  ;;  %v912_v61 = vpack.c.bf16 %v880_v56, %v880_v56 }
 0x3d1   :  { %v957_v1 = vsel %vm956_vm2, %v949_v60, %v948_v59 }
 0x3d2   :  { %v846_v0 = vmax.f32 %v810_v40, 0.0  ;;  %v888_v3 = vmax.f32 %v847_v62, %v848_v36  ;;  %v911_v51 = vpack.c.bf16 %v873_v39, %v873_v39  ;;  %v951_v6 = vunpack.c.l.b16 %v912_v61 }
 0x3d4   :  { %v881_v4 = vmax.f32 %v845_v63, %v846_v0  ;;  %v889_v10 = vrot.slane %v888_v3, 4  ;;  %v950_v28 = vunpack.c.l.b16 %v911_v51 }
 0x3d6   :  { %v882_v7 = vrot.slane %v881_v4, 4  ;;  %v890_v18 = vmax.f32 %v888_v3, %v889_v10  ;;  %v959_v2 = vsel %vm958_vm3, %v950_v28, %v957_v1 }
 0x3d7   :  { %v961_v9 = vsel %vm960_vm4, %v951_v6, %v959_v2 }
 0x3d8   :  { %v883_v11 = vmax.f32 %v881_v4, %v882_v7  ;;  %v891_v31 = vrot.slane %v890_v18, 2 }
 0x3d9   :  { %v1230_v14 = vpop.f32.mrf.mxu0 }
 0x3da   :  { %v884_v15 = vrot.slane %v883_v11, 2  ;;  %v831_v20 = vadd.f32 %v1230_v14, %v1561_v27  ;;  %v892_v47 = vmax.f32 %v890_v18, %v891_v31 }
 0x3db   :  { %v822_v19 = vpop.f32.mrf.mxu0 }
 0x3dc   :  { %v885_v24 = vmax.f32 %v883_v11, %v884_v15  ;;  %v823_v25 = vadd.f32 %v1561_v27, %v822_v19  ;;  %v851_v33 = vmax.f32 %v831_v20, 0.0  ;;  %v893_v57 = vrot.slane %v892_v47, 1  ;;  %v1106_v20 = vld [vmem:[%s1595_s10] ss:$0 sm:$0xff] }
 0x3dd   :  { %v1231_v23 = vpop.f32.mrf.mxu0 }
 0x3de   :  { %v834_v26 = vadd.f32 %v1231_v23, %v1561_v27  ;;  %v886_v41 = vrot.slane %v885_v24, 1  ;;  %v849_v42 = vmax.f32 %v823_v25, 0.0  ;;  %v894_v62 = vmax.f32 %v892_v47, %v893_v57 }
 0x3df   :  { %v825_v32 = vpop.f32.mrf.mxu0 }
 0x3e0   :  { %v852_v35 = vmax.f32 %v834_v26, 0.0  ;;  %v826_v37 = vadd.f32 %v1561_v27, %v825_v32  ;;  %v887_v52 = vmax.f32 %v885_v24, %v886_v41  ;;  %v914_v7 = vpack.c.bf16 %v894_v62, %v894_v62 }
 0x3e2   :  { %v902_v43 = vmax.f32 %v851_v33, %v852_v35  ;;  %v850_v44 = vmax.f32 %v826_v37, 0.0  ;;  %v913_v34 = vpack.c.bf16 %v887_v52, %v887_v52  ;;  %v953_v13 = vunpack.c.l.b16 %v914_v7 }
 0x3e4   :  { %v903_v48 = vrot.slane %v902_v43, 4  ;;  %v895_v49 = vmax.f32 %v849_v42, %v850_v44  ;;  %v952_v3 = vunpack.c.l.b16 %v913_v34 }
 0x3e6   :  { %v904_v53 = vmax.f32 %v902_v43, %v903_v48  ;;  %v896_v54 = vrot.slane %v895_v49, 4  ;;  %v963_v11 = vsel %vm962_vm5, %v952_v3, %v961_v9 }
 0x3e7   :  { %v965_v16 = vsel %vm964_vm6, %v953_v13, %v963_v11 }
 0x3e8   :  { %v905_v27 = vrot.slane %v904_v53, 2  ;;  %v897_v58 = vmax.f32 %v895_v49, %v896_v54 }
 0x3ea   :  { %v906_v36 = vmax.f32 %v904_v53, %v905_v27  ;;  %v898_v40 = vrot.slane %v897_v58, 2 }
 0x3ec   :  { %v907_v63 = vrot.slane %v906_v36, 1  ;;  %v899_v0 = vmax.f32 %v897_v58, %v898_v40 }
 0x3ee   :  { %v908_v4 = vmax.f32 %v906_v36, %v907_v63  ;;  %v900_v5 = vrot.slane %v899_v0, 1 }
 0x3f0   :  { %v901_v8 = vmax.f32 %v899_v0, %v900_v5  ;;  %v916_v10 = vpack.c.bf16 %v908_v4, %v908_v4 }
 0x3f2   :  { %v915_v12 = vpack.c.bf16 %v901_v8, %v901_v8  ;;  %v955_v15 = vunpack.c.l.b16 %v916_v10 }
 0x3f4   :  { %v954_v14 = vunpack.c.l.b16 %v915_v12 }
 0x3f6   :  { %v967_v17 = vsel %vm966_vm7, %v954_v14, %v965_v16 }
 0x3f7   :  { %v969_v18 = vsel %vm968_vm8, %v955_v15, %v967_v17 }
 0x3f8   :  { %v970_v19 = vpack.c.b16 %v969_v18, %v969_v18 }
 0x3fa   :  { %1249 = vmatmul.mubr.bf16.vlgmr.msra.gmra.mxu1 %v970_v19 }
 0x4ba   :  { %v1054_v21 = vpop.f32.mrf.mxu1 }
 0x4bb   :  { %v1055_v22 = vadd.f32 %v1106_v20, %v1054_v21 }
 0x4bc   :  { %v1250_v23 = vpop.f32.mrf.mxu1 }
 0x4bd   :  { %v1060_v24 = vmax.f32 %v1055_v22, 0.0 }
 0x4be   :  { %v1057_v25 = vpop.f32.mrf.mxu1 }
 0x4bf   :  { %1062 = vst.msk [vmem:[%s1596_s11] sm:$0xff] %vm1061_vm9, %v1060_v24 }
 0x4c0   :  { %v1251_v26 = vpop.f32.mrf.mxu1 }

// kernel: network_forward.3
= control target key start
LH: loop header
LB: loop body
LE: loop exit
PB: predicated region body
PF: predicated region fallthrough
CT: control target
= control target key end

     0   :  { %s3247_s22 = smov 0   ;;  %s3249_s23 = smov 0   ;;  %s3902_s0 = inlined_call_operand.vmem [shape: f32[8,3,1,16], index: 0, kind: input, shape index: {}]   ;;  %s3903_s1 = inlined_call_operand.vmem [shape: f32[8,1,52], index: 1, kind: input, shape index: {}]   ;;  %s3904_s2 = inlined_call_operand.vmem [shape: f32[2,1,8], index: 2, kind: input, shape index: {}]   ;;  %s3905_s3 = inlined_call_operand.vmem [shape: f32[64,3], index: 3, kind: input, shape index: {}]   ;;  %s3906_s4 = inlined_call_operand.vmem [shape: f32[64,1], index: 4, kind: input, shape index: {}]   ;;  %s3907_s5 = inlined_call_operand.vmem [shape: bf16[64,64], index: 5, kind: input, shape index: {}]   ;;  %s3908_s6 = inlined_call_operand.vmem [shape: f32[1,64], index: 6, kind: input, shape index: {}]   ;;  %s3909_s7 = inlined_call_operand.vmem [shape: bf16[64,64], index: 7, kind: input, shape index: {}]   ;;  %s3910_s8 = inlined_call_operand.vmem [shape: f32[1,64], index: 8, kind: input, shape index: {}]   ;;  %s3911_s9 = inlined_call_operand.vmem [shape: bf16[64,128], index: 9, kind: input, shape index: {}]   ;;  %s3912_s10 = inlined_call_operand.vmem [shape: f32[1,128], index: 10, kind: input, shape index: {}]   ;;  %s3913_s11 = inlined_call_operand.vmem [shape: bf16[128,32], index: 11, kind: input, shape index: {}]   ;;  %s3914_s12 = inlined_call_operand.vmem [shape: f32[1,32], index: 12, kind: input, shape index: {}]   ;;  %s3915_s13 = inlined_call_operand.vmem [shape: bf16[32,512], index: 13, kind: input, shape index: {}]   ;;  %s3916_s14 = inlined_call_operand.vmem [shape: bf16[52,512], index: 14, kind: input, shape index: {}]   ;;  %s3917_s15 = inlined_call_operand.vmem [shape: f32[1,512], index: 15, kind: input, shape index: {}]   ;;  %s3918_s16 = inlined_call_operand.vmem [shape: bf16[512,256], index: 16, kind: input, shape index: {}]   ;;  %s3919_s17 = inlined_call_operand.vmem [shape: f32[1,256], index: 17, kind: input, shape index: {}]   ;;  %s3920_s18 = inlined_call_operand.vmem [shape: bf16[256,8], index: 18, kind: input, shape index: {}]   ;;  %s3921_s19 = inlined_call_operand.vmem [shape: f32[1,8], index: 19, kind: input, shape index: {}]   ;;  %s3922_s20 = inlined_call_operand.vmem [shape: f32[8,1,8], index: 20, kind: output, shape index: {}]  }
   0x1   :  { %3929 = sst [smem:[#allocation9_spill]] %s3902_s0  ;;  %s3251_s24 = smov 0  }
   0x2   :  { %3930 = sst [smem:[#allocation10_spill]] %s3903_s1  ;;  %s3245_s1 = smov 0  }
   0x3   :  { %3931 = sst [smem:[#allocation11_spill]] %s3904_s2  ;;  %s3253_s2 = smov 0  }
   0x4   :  { %3932 = sst [smem:[#allocation12_spill]] %s3905_s3 }
   0x5   :  { %3933 = sst [smem:[#allocation13_spill]] %s3906_s4 }
   0x6   :  { %3934 = sst [smem:[#allocation14_spill]] %s3908_s6 }
   0x7   :  { %3935 = sst [smem:[#allocation15_spill]] %s3910_s8 }
   0x8   :  { %3936 = sst [smem:[#allocation16_spill]] %s3911_s9 }
   0x9   :  { %3937 = sst [smem:[#allocation17_spill]] %s3912_s10 }
   0xa LB: > { %3938 = sst [smem:[#allocation4_spill]] %s3117_s23  ;;  %s39_s25 = sadd.s32 1, %s3117_s23  ;;  %s3125_s2 = sphi %s3253_s2, %s30_s2   ;;  %s3121_s24 = sphi %s3251_s24, %s3959_s24   ;;  %s3117_s23 = sphi %s3249_s23, %s3958_s23   ;;  %s3113_s22 = sphi %s3247_s22, %s3957_s22   ;;  %s3109_s1 = sphi %s3245_s1, %s3956_s1  }
   0xb   : > { %3939 = sst [smem:[#allocation5_spill]] %s3121_s24  ;;  %s42_s3 = sadd.s32 1, %s3121_s24 }
   0xc   : > { %3940 = sst [smem:[#allocation6_spill]] %s3125_s2  ;;  %p40_p0 = scmp.ge.s32.totalorder %s39_s25, 4 }
   0xd   : > { %p2587_p1 = scmp.ge.s32.totalorder %s3125_s2, 1  ;;  %p609_p2 = scmp.lt.s32.totalorder %s3125_s2, 9 }
   0xe   : > { %s3961_s25 = smov (%p40_p0, %s39_s25), 0  ;;  %s3963_s3 = smov (!%p40_p0, %s42_s3), %s3121_s24 }
   0xf   : > { %3941 = sst [smem:[#allocation7_spill]] %s3961_s25  ;;  %p610_p3 = pnand %p2587_p1, %p609_p2 }
  0x10   : > { %p44_p4 = scmp.ge.s32.totalorder %s3963_s3, 2  ;;  %s2588_s26 = sshll.u32 (!%p610_p3), %s3109_s1, 1 }
  0x11   : > { %613 = sbr.rel (%p610_p3) target bundleno = 2028 (0x7ec), region = 100  ;;  %p691_p5 = scmp.lt.s32.totalorder (!%p610_p3), %s3113_s22, 1 }
  0x12   : > { %s3965_s3 = smov (%p44_p4, %s3963_s3), 0  ;;  %s677_s27 = sadd.s32 (!%p610_p3), %s3113_s22, %s2588_s26 }
  0x13   : > { %3942 = sst [smem:[#allocation8_spill]] %s3965_s3  ;;  %p678_p6 = scmp.lt.s32.totalorder (!%p610_p3), %s677_s27, 7 }
  0x14   : > { %s3943_s29 = sld [smem:[#allocation11_spill]] (!%p610_p3)  ;;  %p2591_p7 = scmp.ne.s32.totalorder (!%p610_p3), %s3109_s1, 0 }
  0x15   : > { %s3944_s3 = sld [smem:[#allocation10_spill]] (!%p610_p3) }
  0x16   : > { %s3967_s22 = smov (!%p691_p5, %s3113_s22), 1  ;;  %s3969_s27 = smov (!%p678_p6, %s677_s27), 7 }
  0x17   : > { %s2836_s0 = smul.u32 3, %s3969_s27  ;;  %s698_s26 = scalar_lea.vmem %s3922_s20, %s3969_s27 }
  0x18   : > { %s3945_s6 = sld [smem:[#allocation9_spill]] }
  0x1a   : > { %s693_s30 = scalar_lea.vmem %s3943_s29, %s3967_s22  ;;  %705 = sbr.rel (%p2591_p7) target bundleno = 33 (0x21), region = 104 }
  0x1b   : > { %s688_s24 = scalar_lea.vmem %s3944_s3, %s3969_s27 }
  0x1e   : > { %s3295_s9 = scalar_lea.vmem %s3945_s6, %s2836_s0 }
  0x1f   : > { %v707_v0 = vld [vmem:[%s693_s30] sm:$0x1]  ;;  %vm708_vm0 = vcmask 57344   ;;  %v3127_v1 = vmov -inf  }
  0x20   : > { %706 = vst [vmem:[#allocation2] sm:$0x1] %v3127_v1  ;;  %709 = vst.msk [vmem:[#allocation3] sm:$0x1] %vm708_vm0, %v707_v0 }
  0x21 PF: > { %p2592_p8 = scmp.le.s32.totalorder %s3109_s1, 0 }
  0x23   : > { %713 = sbr.rel (%p2592_p8) target bundleno = 1048 (0x418), region = 108 }
  0x28   : > { %v2890_v2 = vld [vmem:[%s3913_s11 + $0x38] sm:$0xff]   ;;  %v3128_v3 = vmov 0.0   ;;  %v2891_v4 = vld [vmem:[%s3913_s11 + $0x30] sm:$0xff]   ;;  %vm3129_vm1 = vmmov 0   ;;  %v3130_v5 = vmov 0   ;;  %v2892_v6 = vld [vmem:[%s3913_s11 + $0x28] sm:$0xff]  }
  0x29   : > { %2780 = vmatprep.subr.bf16.mxu0 %v3128_v3  ;;  %2796 = vmatprep.mubr.msk.bf16.mxu0 %vm3129_vm1, %v3128_v3  ;;  %v845_v7 = vld [vmem:[%s3916_s14 + $0x60] sm:$0x33]  ;;  %vm921_vm2 = vcmask 1041408   ;;  %v2894_v15 = vld [vmem:[%s3913_s11 + $0x18] sm:$0xff]   ;;  %v2895_v16 = vld [vmem:[%s3913_s11 + $0x10] sm:$0xff]   ;;  %vm917_vm3 = vcmask 424960  }
  0x2a   : > { %2781 = vmatpush3.bf16.msra.mxu0 %v2890_v2  ;;  %966 = vmatprep.mubr.bf16.mxu1 %v3130_v5  ;;  %v2614_v8 = vcombine.high %v845_v7, %v845_v7  ;;  %v2613_v9 = vcombine.low %v845_v7, %v845_v7  ;;  %v2900_v10 = vld [vmem:[%s3916_s14 + $0x44] ss:$16 sps:$4 sm:$0xff]   ;;  %v2902_v13 = vld [vmem:[%s3916_s14 + $0x40] ss:$16 sps:$4 sm:$0xff]   ;;  %v846_v21 = vld [vmem:[%s3916_s14 + $0x68] sm:$0x33] }
  0x2b   : > { %2782 = vmatprep.subr.bf16.mxu0 %v3128_v3  ;;  %v2893_v11 = vld [vmem:[%s3913_s11 + $0x20] sm:$0xff]   ;;  %v2896_v22 = vld [vmem:[%s3913_s11 + $0x8] sm:$0xff]   ;;  %v2616_v23 = vcombine.high %v846_v21, %v846_v21  ;;  %v2615_v24 = vcombine.low %v846_v21, %v846_v21  ;;  %v2932_v41 = vld [vmem:[%s3918_s16 + $0x70] ss:$8 sps:$4 sm:$0xff]   ;;  %vm1056_vm4 = vcmask 261120   ;;  %vm1834_vm8 = vcmask 57344  }
  0x2c   : > { %2617 = vmatprep.subr.msk.bf16.mxu1 %vm921_vm2, %v2614_v8  ;;  %v923_v12 = vsel %vm921_vm2, %v2613_v9, 0  ;;  %v2903_v14 = vld [vmem:[%s3916_s14 + $0x24] ss:$16 sps:$4 sm:$0xff]   ;;  %v2905_v17 = vld [vmem:[%s3916_s14 + $0x20] ss:$16 sps:$4 sm:$0xff]  }
  0x2d   : > { %943 = vmatpush1.bf16.msra.mxu1 %v923_v12  ;;  %v2906_v18 = vld [vmem:[%s3916_s14 + $0x4] ss:$16 sps:$4 sm:$0xff]   ;;  %v2908_v19 = vld [vmem:[%s3916_s14] ss:$16 sps:$4 sm:$0xff]   ;;  %v2913_v26 = vld [vmem:[%s3916_s14 + $0x4c] ss:$16 sps:$4 sm:$0xff]  }
  0x2e   : > { %2783 = vmatpush3.bf16.msra.mxu0 %v2891_v4  ;;  %944 = vmatprep.subr.bf16.mxu1 %v2900_v10  ;;  %v822_v20 = vld [vmem:[%s688_s24] sm:$0x1]  ;;  %v929_v29 = vsel %vm921_vm2, %v2615_v24, 0  ;;  %v2911_v30 = vld [vmem:[%s3916_s14 + $0x48] ss:$16 sps:$4 sm:$0xff]  }
  0x2f   : > { %2784 = vmatprep.subr.bf16.mxu0 %v3128_v3  ;;  %v832_v25 = vpack.c.bf16 %v822_v20, %v822_v20  ;;  %v2897_v27 = vld [vmem:[%s3913_s11] sm:$0xff]   ;;  %v2916_v31 = vld [vmem:[%s3916_s14 + $0x2c] ss:$16 sps:$4 sm:$0xff]   ;;  %v2914_v33 = vld [vmem:[%s3916_s14 + $0x28] ss:$16 sps:$4 sm:$0xff]  }
  0x30   : > { %v714_v28 = vld [vmem:[#allocation2] sm:$0x1]  ;;  %v2919_v34 = vld [vmem:[%s3916_s14 + $0xc] ss:$16 sps:$4 sm:$0xff]   ;;  %v2917_v35 = vld [vmem:[%s3916_s14 + $0x8] ss:$16 sps:$4 sm:$0xff]  }
  0x31   : > { %945 = vmatpush1.bf16.msra.mxu1 %v2902_v13  ;;  %v715_v32 = vpack.c.bf16 %v714_v28, %v714_v28  ;;  %v2922_v36 = vld [vmem:[%s3915_s13 + $0x24] ss:$16 sps:$4 sm:$0xff]   ;;  %v2920_v37 = vld [vmem:[%s3915_s13 + $0x20] ss:$16 sps:$4 sm:$0xff]   ;;  %v2928_v40 = vld [vmem:[%s3915_s13 + $0x2c] ss:$16 sps:$4 sm:$0xff]  }
  0x32   : > { %2785 = vmatpush3.bf16.msra.mxu0 %v2892_v6  ;;  %946 = vmatprep.subr.bf16.mxu1 %v2903_v14  ;;  %v2925_v38 = vld [vmem:[%s3915_s13 + $0x4] ss:$16 sps:$4 sm:$0xff]   ;;  %v2923_v39 = vld [vmem:[%s3915_s13] ss:$16 sps:$4 sm:$0xff]   ;;  %v2926_v14 = vld [vmem:[%s3915_s13 + $0x28] ss:$16 sps:$4 sm:$0xff]  }
  0x33   : > { %2786 = vmatprep.subr.bf16.mxu0 %v3128_v3  ;;  %v2934_v42 = vld [vmem:[%s3918_s16 + $0x74] ss:$8 sps:$4 sm:$0xff]   ;;  %v2937_v43 = vld [vmem:[%s3918_s16 + $0x64] ss:$8 sps:$4 sm:$0xff]   ;;  %v2935_v44 = vld [vmem:[%s3918_s16 + $0x60] ss:$8 sps:$4 sm:$0xff]  }
  0x34   : > { %v2940_v45 = vld [vmem:[%s3918_s16 + $0x54] ss:$8 sps:$4 sm:$0xff]   ;;  %v2938_v46 = vld [vmem:[%s3918_s16 + $0x50] ss:$8 sps:$4 sm:$0xff]   ;;  %v2946_v47 = vld [vmem:[%s3918_s16 + $0x44] ss:$8 sps:$4 sm:$0xff]  }
  0x35   : > { %947 = vmatpush1.bf16.msra.mxu1 %v2905_v17  ;;  %v2944_v48 = vld [vmem:[%s3918_s16 + $0x40] ss:$8 sps:$4 sm:$0xff]   ;;  %v2952_v49 = vld [vmem:[%s3918_s16 + $0x34] ss:$8 sps:$4 sm:$0xff]   ;;  %v2950_v50 = vld [vmem:[%s3918_s16 + $0x30] ss:$8 sps:$4 sm:$0xff]  }
  0x36   : > { %2787 = vmatpush3.bf16.msra.mxu0 %v2893_v11  ;;  %948 = vmatprep.subr.bf16.mxu1 %v2906_v18  ;;  %v2958_v51 = vld [vmem:[%s3918_s16 + $0x24] ss:$8 sps:$4 sm:$0xff]   ;;  %v2956_v52 = vld [vmem:[%s3918_s16 + $0x20] ss:$8 sps:$4 sm:$0xff]   ;;  %v2964_v53 = vld [vmem:[%s3918_s16 + $0x14] ss:$8 sps:$4 sm:$0xff]  }
  0x37   : > { %2788 = vmatprep.subr.bf16.mxu0 %v3128_v3  ;;  %v2962_v54 = vld [vmem:[%s3918_s16 + $0x10] ss:$8 sps:$4 sm:$0xff]   ;;  %v2970_v55 = vld [vmem:[%s3918_s16 + $0x4] ss:$8 sps:$4 sm:$0xff]   ;;  %v2968_v56 = vld [vmem:[%s3918_s16] ss:$8 sps:$4 sm:$0xff]  }
  0x38   : > { %v2976_v57 = vld [vmem:[%s3918_s16 + $0xf4] ss:$8 sps:$4 sm:$0xff]   ;;  %v2974_v58 = vld [vmem:[%s3918_s16 + $0xf0] ss:$8 sps:$4 sm:$0xff]   ;;  %v2982_v59 = vld [vmem:[%s3918_s16 + $0xe4] ss:$8 sps:$4 sm:$0xff]  }
  0x39   : > { %949 = vmatpush1.bf16.msra.mxu1 %v2908_v19  ;;  %v2980_v60 = vld [vmem:[%s3918_s16 + $0xe0] ss:$8 sps:$4 sm:$0xff]   ;;  %v2988_v61 = vld [vmem:[%s3918_s16 + $0xd4] ss:$8 sps:$4 sm:$0xff]   ;;  %v2986_v62 = vld [vmem:[%s3918_s16 + $0xd0] ss:$8 sps:$4 sm:$0xff]  }
  0x3a   : > { %2789 = vmatpush3.bf16.msra.mxu0 %v2894_v15  ;;  %2619 = vmatprep.subr.msk.bf16.mxu1 %vm921_vm2, %v2616_v23  ;;  %v2994_v63 = vld [vmem:[%s3918_s16 + $0xc4] ss:$8 sps:$4 sm:$0xff]   ;;  %v2992_v0 = vld [vmem:[%s3918_s16 + $0xc0] ss:$8 sps:$4 sm:$0xff]   ;;  %v3000_v1 = vld [vmem:[%s3918_s16 + $0xb4] ss:$8 sps:$4 sm:$0xff]  }
  0x3b   : > { %2790 = vmatprep.subr.bf16.mxu0 %v3128_v3  ;;  %v2998_v2 = vld [vmem:[%s3918_s16 + $0xb0] ss:$8 sps:$4 sm:$0xff]   ;;  %v732_v6 = vld [vmem:[%s3914_s12] sm:$0x1]  ;;  %v2943_v19 = vld [vmem:[%s3918_s16 + $0x174] ss:$8 sps:$4 sm:$0xff]  }
  0x3c   : > { %2618 = vmatmul.mubr.msk.bf16.vlgmr.msra.gmra.mxu1 %vm917_vm3, %v832_v25  ;;  %v2929_v18 = vld [vmem:[%s3915_s13 + $0x8] ss:$16 sps:$4 sm:$0xff]   ;;  %v2949_v23 = vld [vmem:[%s3918_s16 + $0x164] ss:$8 sps:$4 sm:$0xff]  }
  0x3d   : > { %984 = vmatpush1.bf16.msra.mxu1 %v929_v29  ;;  %1007 = vmatprep.mubr.bf16.mxu1 %v3130_v5  ;;  %v2941_v21 = vld [vmem:[%s3918_s16 + $0x170] ss:$8 sps:$4 sm:$0xff]   ;;  %v2947_v24 = vld [vmem:[%s3918_s16 + $0x160] ss:$8 sps:$4 sm:$0xff]   ;;  %v2961_v28 = vld [vmem:[%s3918_s16 + $0x144] ss:$8 sps:$4 sm:$0xff]  }
  0x3e   : > { %2791 = vmatpush3.bf16.msra.mxu0 %v2895_v16  ;;  %985 = vmatprep.subr.bf16.mxu1 %v2913_v26  ;;  %v2931_v16 = vld [vmem:[%s3915_s13 + $0xc] ss:$16 sps:$4 sm:$0xff]   ;;  %v2959_v29 = vld [vmem:[%s3918_s16 + $0x140] ss:$8 sps:$4 sm:$0xff]  }
  0x3f   : > { %2792 = vmatprep.subr.bf16.mxu0 %v3128_v3  ;;  %v2955_v26 = vld [vmem:[%s3918_s16 + $0x154] ss:$8 sps:$4 sm:$0xff]  }
  0x41   : > { %986 = vmatpush1.bf16.msra.mxu1 %v2911_v30  ;;  %v2967_v30 = vld [vmem:[%s3918_s16 + $0x134] ss:$8 sps:$4 sm:$0xff]  }
  0x42   : > { %2793 = vmatpush3.bf16.msra.mxu0 %v2896_v22  ;;  %987 = vmatprep.subr.bf16.mxu1 %v2916_v31  ;;  %v2965_v31 = vld [vmem:[%s3918_s16 + $0x130] ss:$8 sps:$4 sm:$0xff]  }
  0x43   : > { %2794 = vmatprep.subr.bf16.mxu0 %v3128_v3 }
  0x45   : > { %988 = vmatpush1.bf16.msra.mxu1 %v2914_v33  ;;  %v2971_v33 = vld [vmem:[%s3918_s16 + $0x120] ss:$8 sps:$4 sm:$0xff]  }
  0x46   : > { %2795 = vmatpush3.bf16.msra.mxu0 %v2897_v27  ;;  %989 = vmatprep.subr.bf16.mxu1 %v2919_v34  ;;  %v2953_v27 = vld [vmem:[%s3918_s16 + $0x150] ss:$8 sps:$4 sm:$0xff]   ;;  %v2979_v34 = vld [vmem:[%s3918_s16 + $0x114] ss:$8 sps:$4 sm:$0xff]  }
  0x47   : > { %1572 = vmatprep.subr.bf16.mxu0 %v2934_v42  ;;  %v3003_v42 = vld [vmem:[%s3918_s16 + $0x1d4] ss:$8 sps:$4 sm:$0xff]  }
  0x49   : > { %2797 = vmatmul.mubr.bf16.vlgmr.msra.gmra.mxu0 %v715_v32  ;;  %990 = vmatpush1.bf16.msra.mxu1 %v2917_v35  ;;  %v2973_v32 = vld [vmem:[%s3918_s16 + $0x124] ss:$8 sps:$4 sm:$0xff]   ;;  %v2977_v35 = vld [vmem:[%s3918_s16 + $0x110] ss:$8 sps:$4 sm:$0xff]  }
  0x4a   : > { %1072 = vmatprep.subr.bf16.mxu1 %v2922_v36  ;;  %1573 = vmatpush1.bf16.msra.mxu0 %v2932_v41  ;;  %v2985_v36 = vld [vmem:[%s3918_s16 + $0x104] ss:$8 sps:$4 sm:$0xff]   ;;  %v2995_v41 = vld [vmem:[%s3918_s16 + $0x1e0] ss:$8 sps:$4 sm:$0xff]  }
  0x4b   : > { %1574 = vmatprep.subr.bf16.mxu0 %v2937_v43  ;;  %v3001_v43 = vld [vmem:[%s3918_s16 + $0x1d0] ss:$8 sps:$4 sm:$0xff]  }
  0x4c   : > { %2620 = vmatmul.mubr.msk.bf16.vlgmr.msra.gmra.mxu1 %vm917_vm3, %v832_v25 }
  0x4d   : > { %1073 = vmatpush1.bf16.msra.mxu1 %v2920_v37  ;;  %1092 = vmatprep.mubr.bf16.mxu1 %v3130_v5  ;;  %v2983_v37 = vld [vmem:[%s3918_s16 + $0x100] ss:$8 sps:$4 sm:$0xff]  }
  0x4e   : > { %1074 = vmatprep.subr.bf16.mxu1 %v2925_v38  ;;  %1575 = vmatpush1.bf16.msra.mxu0 %v2935_v44  ;;  %v2991_v38 = vld [vmem:[%s3918_s16 + $0x1f4] ss:$8 sps:$4 sm:$0xff]   ;;  %v3006_v44 = vld [vmem:[%s3918_s16 + $0xa4] ss:$8 sps:$4 sm:$0xff]  }
  0x4f   : > { %1576 = vmatprep.subr.bf16.mxu0 %v2940_v45  ;;  %v3009_v45 = vld [vmem:[%s3918_s16 + $0x1c4] ss:$8 sps:$4 sm:$0xff]  }
  0x51   : > { %1075 = vmatpush1.bf16.msra.mxu1 %v2923_v39  ;;  %v2989_v39 = vld [vmem:[%s3918_s16 + $0x1f0] ss:$8 sps:$4 sm:$0xff]  }
  0x52   : > { %1113 = vmatprep.subr.bf16.mxu1 %v2928_v40  ;;  %1577 = vmatpush1.bf16.msra.mxu0 %v2938_v46  ;;  %v2997_v40 = vld [vmem:[%s3918_s16 + $0x1e4] ss:$8 sps:$4 sm:$0xff]   ;;  %v3004_v46 = vld [vmem:[%s3918_s16 + $0xa0] ss:$8 sps:$4 sm:$0xff]  }
  0x53   : > { %1578 = vmatprep.subr.bf16.mxu0 %v2946_v47  ;;  %v3007_v47 = vld [vmem:[%s3918_s16 + $0x1c0] ss:$8 sps:$4 sm:$0xff]  }
  0x56   : > { %1579 = vmatpush1.bf16.msra.mxu0 %v2944_v48  ;;  %v3012_v48 = vld [vmem:[%s3918_s16 + $0x94] ss:$8 sps:$4 sm:$0xff]  }
  0x57   : > { %1580 = vmatprep.subr.bf16.mxu0 %v2952_v49  ;;  %v3015_v49 = vld [vmem:[%s3918_s16 + $0x1b4] ss:$8 sps:$4 sm:$0xff]  }
  0x5a   : > { %1581 = vmatpush1.bf16.msra.mxu0 %v2950_v50  ;;  %v3010_v50 = vld [vmem:[%s3918_s16 + $0x90] ss:$8 sps:$4 sm:$0xff]  }
  0x5b   : > { %1582 = vmatprep.subr.bf16.mxu0 %v2958_v51  ;;  %v3013_v51 = vld [vmem:[%s3918_s16 + $0x1b0] ss:$8 sps:$4 sm:$0xff]  }
  0x5e   : > { %1583 = vmatpush1.bf16.msra.mxu0 %v2956_v52  ;;  %v3018_v52 = vld [vmem:[%s3918_s16 + $0x84] ss:$8 sps:$4 sm:$0xff]  }
  0x5f   : > { %1584 = vmatprep.subr.bf16.mxu0 %v2964_v53  ;;  %v3021_v53 = vld [vmem:[%s3918_s16 + $0x1a4] ss:$8 sps:$4 sm:$0xff]  }
  0x62   : > { %1585 = vmatpush1.bf16.msra.mxu0 %v2962_v54  ;;  %v3016_v54 = vld [vmem:[%s3918_s16 + $0x80] ss:$8 sps:$4 sm:$0xff]  }
  0x63   : > { %1586 = vmatprep.subr.bf16.mxu0 %v2970_v55  ;;  %v3019_v55 = vld [vmem:[%s3918_s16 + $0x1a0] ss:$8 sps:$4 sm:$0xff]  }
  0x66   : > { %1587 = vmatpush1.bf16.msra.mxu0 %v2968_v56  ;;  %v3024_v56 = vld [vmem:[%s3918_s16 + $0x194] ss:$8 sps:$4 sm:$0xff]  }
  0x67   : > { %1588 = vmatprep.subr.bf16.mxu0 %v2976_v57  ;;  %v3022_v57 = vld [vmem:[%s3918_s16 + $0x190] ss:$8 sps:$4 sm:$0xff]  }
  0x6a   : > { %1589 = vmatpush2.bf16.msra.mxu0 %v2974_v58  ;;  %v3027_v58 = vld [vmem:[%s3918_s16 + $0x184] ss:$8 sps:$4 sm:$0xff]  }
  0x6b   : > { %1590 = vmatprep.subr.bf16.mxu0 %v2982_v59  ;;  %v3025_v59 = vld [vmem:[%s3918_s16 + $0x180] ss:$8 sps:$4 sm:$0xff]  }
  0x6e   : > { %1591 = vmatpush2.bf16.msra.mxu0 %v2980_v60  ;;  %v3028_v60 = vld [vmem:[%s3920_s18 + $0x78] sm:$0xff]  }
  0x6f   : > { %1592 = vmatprep.subr.bf16.mxu0 %v2988_v61  ;;  %v1144_v61 = vlaneseq }
  0x72   : > { %1593 = vmatpush2.bf16.msra.mxu0 %v2986_v62  ;;  %v3613_v62 = vshrl.u32 %v1144_v61, 7 }
  0x73   : > { %1594 = vmatprep.subr.bf16.mxu0 %v2994_v63 }
  0x74   : > { %v1146_v63 = vsub.s32 0, %v3613_v62 }
  0x76   : > { %1595 = vmatpush2.bf16.msra.mxu0 %v2992_v0  ;;  %v1142_v0 = vld [vmem:[%s3917_s15] sm:$0xf] }
  0x77   : > { %1596 = vmatprep.subr.bf16.mxu0 %v3000_v1  ;;  %v1150_v1 = vsub.s32 1, %v3613_v62 }
  0x7a   : > { %1597 = vmatpush2.bf16.msra.mxu0 %v2998_v2  ;;  %v1147_v2 = vrot.slane %v1142_v0, %v1146_v63 }
  0x7b   : > { %1598 = vmatprep.subr.bf16.mxu0 %v3006_v44  ;;  %v3041_v44 = vld [vmem:[%s3920_s18 + $0x8] sm:$0xff]  }
  0x7e   : > { %1599 = vmatpush2.bf16.msra.mxu0 %v3004_v46  ;;  %v3043_v46 = vld [vmem:[%s3920_s18] sm:$0xff]  }
  0x7f   : > { %1600 = vmatprep.subr.bf16.mxu0 %v3012_v48 }
  0x82   : > { %1601 = vmatpush2.bf16.msra.mxu0 %v3010_v50 }
  0x83   : > { %1602 = vmatprep.subr.bf16.mxu0 %v3018_v52 }
  0x86   : > { %1603 = vmatpush2.bf16.msra.mxu0 %v3016_v54 }
  0x87   : > { %2743 = vmatprep.subr.bf16.mxu0 %v3028_v60 }
  0xfc   : > { %v3472_v3 = vpop.f32.mrf.mxu1 }
  0xfe   : > { %v3474_v4 = vpop.f32.mrf.mxu1 }
 0x100   : > { %v972_v7 = vpop.f32.mrf.mxu1 }
 0x102   : > { %v973_v9 = vpop.f32.mrf.mxu1 }
 0x109   : > { %v815_v8 = vpop.f32.mrf.mxu0 }
 0x10a   : > { %v816_v10 = vadd.f32 %v815_v8, %v732_v6  ;;  %v1151_v8 = vrot.slane %v1142_v0, %v1150_v1 }
 0x10b   : > { %v2798_v11 = vpop.f32.mrf.mxu0 }
 0x10c   : > { %v821_v12 = vmax.f32 %v816_v10, 0.0  ;;  %v3493_v20 = vpop.f32.mrf.mxu1 }
 0x10d   : > { %v818_v13 = vpop.f32.mrf.mxu0 }
 0x10e   : > { %v823_v15 = vpack.c.bf16 %v821_v12, %v821_v12  ;;  %v3498_v22 = vpop.f32.mrf.mxu1  ;;  %v1154_v12 = vsub.s32 2, %v3613_v62 }
 0x10f   : > { %v2799_v17 = vpop.f32.mrf.mxu0 }
 0x110   : > { %2629 = vmatmul.mubr.msk.bf16.vlgmr.msra.gmra.mxu1 %vm1056_vm4, %v823_v15 }
 0x111   : > { %1114 = vmatpush1.bf16.msra.mxu1 %v2926_v14  ;;  %1133 = vmatprep.mubr.bf16.mxu1 %v3130_v5  ;;  %v1013_v5 = vpop.f32.mrf.mxu1 }
 0x112   : > { %1115 = vmatprep.subr.bf16.mxu1 %v2931_v16 }
 0x113   : > { %v1014_v25 = vpop.f32.mrf.mxu1 }
 0x115   : > { %1116 = vmatpush1.bf16.msra.mxu1 %v2929_v18 }
 0x116   : > { %1613 = vmatprep.subr.bf16.mxu1 %v2943_v19  ;;  %v1155_v19 = vrot.slane %v1142_v0, %v1154_v12 }
 0x118   : > { %2630 = vmatmul.mubr.msk.bf16.vlgmr.msra.gmra.mxu1 %vm1056_vm4, %v823_v15  ;;  %v1158_v15 = vsub.s32 3, %v3613_v62  ;;  %v1690_v62 = vld [vmem:[%s3921_s19] sm:$0x1] }
 0x119   : > { %1614 = vmatpush1.bf16.msra.mxu1 %v2941_v21 }
 0x11a   : > { %1615 = vmatprep.subr.bf16.mxu1 %v2949_v23  ;;  %v1159_v5 = vrot.slane %v1142_v0, %v1158_v15 }
 0x11d   : > { %1616 = vmatpush1.bf16.msra.mxu1 %v2947_v24  ;;  %v3029_v24 = vld [vmem:[%s3920_s18 + $0x38] sm:$0xff]  }
 0x11e   : > { %1617 = vmatprep.subr.bf16.mxu1 %v2955_v26  ;;  %v3030_v26 = vld [vmem:[%s3920_s18 + $0x70] sm:$0xff]  }
 0x121   : > { %1618 = vmatpush1.bf16.msra.mxu1 %v2953_v27 }
 0x122   : > { %1619 = vmatprep.subr.bf16.mxu1 %v2961_v28 }
 0x125   : > { %1620 = vmatpush1.bf16.msra.mxu1 %v2959_v29 }
 0x126   : > { %1621 = vmatprep.subr.bf16.mxu1 %v2967_v30 }
 0x129   : > { %1622 = vmatpush1.bf16.msra.mxu1 %v2965_v31 }
 0x12a   : > { %1623 = vmatprep.subr.bf16.mxu1 %v2973_v32 }
 0x12d   : > { %1624 = vmatpush1.bf16.msra.mxu1 %v2971_v33  ;;  %v3032_v33 = vld [vmem:[%s3920_s18 + $0x68] sm:$0xff]  }
 0x12e   : > { %1625 = vmatprep.subr.bf16.mxu1 %v2979_v34 }
 0x131   : > { %1626 = vmatpush1.bf16.msra.mxu1 %v2977_v35 }
 0x132   : > { %1627 = vmatprep.subr.bf16.mxu1 %v2985_v36 }
 0x135   : > { %1628 = vmatpush1.bf16.msra.mxu1 %v2983_v37  ;;  %v3034_v37 = vld [vmem:[%s3920_s18 + $0x60] sm:$0xff]  }
 0x136   : > { %1629 = vmatprep.subr.bf16.mxu1 %v2991_v38  ;;  %v3035_v38 = vld [vmem:[%s3920_s18 + $0x20] sm:$0xff]  }
 0x139   : > { %1630 = vmatpush2.bf16.msra.mxu1 %v2989_v39  ;;  %v3036_v39 = vld [vmem:[%s3920_s18 + $0x58] sm:$0xff]  }
 0x13a   : > { %1631 = vmatprep.subr.bf16.mxu1 %v2997_v40  ;;  %v3037_v40 = vld [vmem:[%s3920_s18 + $0x18] sm:$0xff]  }
 0x13d   : > { %1632 = vmatpush2.bf16.msra.mxu1 %v2995_v41  ;;  %v3038_v41 = vld [vmem:[%s3920_s18 + $0x50] sm:$0xff]  }
 0x13e   : > { %1633 = vmatprep.subr.bf16.mxu1 %v3003_v42  ;;  %v3039_v42 = vld [vmem:[%s3920_s18 + $0x10] sm:$0xff]  }
 0x141   : > { %1634 = vmatpush2.bf16.msra.mxu1 %v3001_v43  ;;  %v3040_v43 = vld [vmem:[%s3920_s18 + $0x48] sm:$0xff]  }
 0x142   : > { %1635 = vmatprep.subr.bf16.mxu1 %v3009_v45  ;;  %v3042_v45 = vld [vmem:[%s3920_s18 + $0x40] sm:$0xff]  }
 0x145   : > { %1636 = vmatpush2.bf16.msra.mxu1 %v3007_v47  ;;  %v1240_v47 = vld [vmem:[%s3919_s17] sm:$0x3] }
 0x146   : > { %1637 = vmatprep.subr.bf16.mxu1 %v3015_v49  ;;  %v1565_v50 = vrot.slane %v1240_v47, %v1146_v63  ;;  %v1569_v52 = vrot.slane %v1240_v47, %v1150_v1  ;;  %v1828_v63 = vand.u32 127, %v1144_v61 }
 0x148   : > { %vm1829_vm5 = vcmp.ge.s32.totalorder %v1828_v63, 3  ;;  %vm1830_vm6 = vcmp.lt.s32.totalorder %v1828_v63, 7  ;;  %vm1840_vm9 = vcmp.lt.s32.totalorder %v1828_v63, 3 }
 0x149   : > { %1638 = vmatpush2.bf16.msra.mxu1 %v3013_v51  ;;  %vm3686_vm7 = vmand %vm1829_vm5, %vm1830_vm6 }
 0x14a   : > { %1639 = vmatprep.subr.bf16.mxu1 %v3021_v53 }
 0x14d   : > { %1640 = vmatpush2.bf16.msra.mxu1 %v3019_v55 }
 0x14e   : > { %1641 = vmatprep.subr.bf16.mxu1 %v3024_v56 }
 0x151   : > { %1642 = vmatpush2.bf16.msra.mxu1 %v3022_v57 }
 0x152   : > { %1643 = vmatprep.subr.bf16.mxu1 %v3027_v58 }
 0x155   : > { %1644 = vmatpush2.bf16.msra.mxu1 %v3025_v59 }
 0x1d0   : > { %v1094_v6 = vpop.f32.mrf.mxu1 }
 0x1d1   : > { %v1095_v7 = vadd.f32 %v1094_v6, %v3472_v3 }
 0x1d2   : > { %v1096_v9 = vpop.f32.mrf.mxu1 }
 0x1d3   : > { %v1164_v10 = vadd.f32 %v1147_v2, %v1095_v7  ;;  %v1097_v11 = vadd.f32 %v1096_v9, %v3474_v4 }
 0x1d4   : > { %v1098_v13 = vpop.f32.mrf.mxu1 }
 0x1d5   : > { %v1165_v14 = vadd.f32 %v1151_v8, %v1097_v11  ;;  %v1168_v16 = vmax.f32 %v1164_v10, 0.0 }
 0x1d6   : > { %v1099_v17 = vpop.f32.mrf.mxu1 }
 0x1d7   : > { %v1169_v18 = vmax.f32 %v1165_v14, 0.0  ;;  %v1172_v4 = vpack.c.bf16 %v1168_v16, %v1168_v16 }
 0x1d8   : > { %v1135_v21 = vpop.f32.mrf.mxu1 }
 0x1d9   : > { %v1173_v23 = vpack.c.bf16 %v1169_v18, %v1169_v18  ;;  %v1136_v3 = vadd.f32 %v1135_v21, %v3493_v20  ;;  %v3031_v20 = vld [vmem:[%s3920_s18 + $0x30] sm:$0xff]  }
 0x1da   : > { %v1137_v25 = vpop.f32.mrf.mxu1 }
 0x1db   : > { %v1166_v27 = vadd.f32 %v1155_v19, %v1136_v3  ;;  %v1138_v28 = vadd.f32 %v1137_v25, %v3498_v22  ;;  %1604 = vmatprep.mubr.bf16.mxu0 %v1173_v23  ;;  %v3033_v22 = vld [vmem:[%s3920_s18 + $0x28] sm:$0xff]  }
 0x1dc   : > { %v1139_v29 = vpop.f32.mrf.mxu1  ;;  %1605 = vmatmul.mubr.bf16.vlgmr.msra.gmra.mxu0 %v1172_v4 }
 0x1dd   : > { %v1167_v30 = vadd.f32 %v1159_v5, %v1138_v28  ;;  %2744 = vmatpush3.bf16.msra.mxu0 %v3029_v24  ;;  %v1170_v31 = vmax.f32 %v1166_v27, 0.0 }
 0x1de   : > { %v1140_v32 = vpop.f32.mrf.mxu1  ;;  %2745 = vmatprep.subr.bf16.mxu0 %v3030_v26 }
 0x1df   : > { %v1171_v34 = vmax.f32 %v1167_v30, 0.0  ;;  %v1174_v36 = vpack.c.bf16 %v1170_v31, %v1170_v31 }
 0x1e1   : > { %v1175_v35 = vpack.c.bf16 %v1171_v34, %v1171_v34  ;;  %2746 = vmatpush3.bf16.msra.mxu0 %v3031_v20 }
 0x1e2   : > { %2747 = vmatprep.subr.bf16.mxu0 %v3032_v33 }
 0x1e3   : > { %1645 = vmatprep.mubr.bf16.mxu1 %v1175_v35 }
 0x1e4   : > { %1646 = vmatmul.mubr.bf16.vlgmr.msra.gmra.mxu1 %v1174_v36 }
 0x1e5   : > { %2748 = vmatpush3.bf16.msra.mxu0 %v3033_v22 }
 0x1e6   : > { %2749 = vmatprep.subr.bf16.mxu0 %v3034_v37 }
 0x1e9   : > { %2750 = vmatpush3.bf16.msra.mxu0 %v3035_v38 }
 0x1ea   : > { %2751 = vmatprep.subr.bf16.mxu0 %v3036_v39 }
 0x1ed   : > { %2752 = vmatpush3.bf16.msra.mxu0 %v3037_v40 }
 0x1ee   : > { %2753 = vmatprep.subr.bf16.mxu0 %v3038_v41 }
 0x1f1   : > { %2754 = vmatpush3.bf16.msra.mxu0 %v3039_v42 }
 0x1f2   : > { %2755 = vmatprep.subr.bf16.mxu0 %v3040_v43 }
 0x1f5   : > { %2756 = vmatpush3.bf16.msra.mxu0 %v3041_v44 }
 0x1f6   : > { %2757 = vmatprep.subr.bf16.mxu0 %v3042_v45 }
 0x1f9   : > { %2758 = vmatpush3.bf16.msra.mxu0 %v3043_v46 }
 0x29c   : > { %v1606_v48 = vpop.f32.mrf.mxu0 }
 0x29d   : > { %v1607_v54 = vadd.f32 %v1606_v48, %v1565_v50 }
 0x29e   : > { %v1608_v49 = vpop.f32.mrf.mxu0 }
 0x29f   : > { %v1609_v56 = vadd.f32 %v1608_v49, %v1569_v52 }
 0x2a0   : > { %v1610_v51 = vpop.f32.mrf.mxu0 }
 0x2a2   : > { %v1611_v53 = vpop.f32.mrf.mxu0 }
 0x2a4   : > { %v1647_v55 = vpop.f32.mrf.mxu1 }
 0x2a5   : > { %v1648_v57 = vadd.f32 %v1647_v55, %v1607_v54 }
 0x2a6   : > { %v1649_v58 = vpop.f32.mrf.mxu1 }
 0x2a7   : > { %v1650_v59 = vadd.f32 %v1649_v58, %v1609_v56  ;;  %v1654_v60 = vmax.f32 %v1648_v57, 0.0 }
 0x2a8   : > { %v1651_v0 = vpop.f32.mrf.mxu1 }
 0x2a9   : > { %v1655_v2 = vmax.f32 %v1650_v59, 0.0  ;;  %v1656_v8 = vpack.c.bf16 %v1654_v60, %v1654_v60 }
 0x2aa   : > { %v1652_v6 = vpop.f32.mrf.mxu1 }
 0x2ab   : > { %v1657_v7 = vpack.c.bf16 %v1655_v2, %v1655_v2 }
 0x2ad   : > { %1819 = vmatprep.mubr.bf16.mxu0 %v1657_v7 }
 0x2ae   : > { %1820 = vmatmul.mubr.bf16.vlgmr.msra.gmra.mxu0 %v1656_v8 }
 0x36e   : > { %v2759_v9 = vpop.f32.mrf.mxu0 }
 0x370   : > { %v2760_v1 = vpop.f32.mrf.mxu0 }
 0x371   : > { %v2761_v10 = vadd.f32 %v2760_v1, %v2759_v9 }
 0x372   : > { %v2762_v11 = vpop.f32.mrf.mxu0 }
 0x373   : > { %v1822_v12 = vadd.f32 %v2761_v10, %v1690_v62 }
 0x374   : > { %v2763_v13 = vpop.f32.mrf.mxu0 }
 0x375   : > { %v1832_v15 = vmul.f32 %v1822_v12, %v1822_v12 }
 0x377   : > { %v1833_v61 = vsel %vm3686_vm7, %v1832_v15, 0.0 }
 0x378   : > { %v1835_v16 = vsel %vm1834_vm8, %v1833_v61, 0.0 }
 0x379   : > { %1836 = vadd.xlane.f32.xlu0 %v1835_v16 }
 0x402   : > { %v1837_v17 = vpop.xlane.xlu0 %1836 }
 0x403   : > { %v1838_v18 = vadd.f32 1e-12, %v1837_v17 }
 0x405   : > { %3044 = vrsqrt.f32 %v1838_v18 }
 0x406   : > { %3046 = vtanh.f32 %v1822_v12 }
 0x412   : > { %v3045_v19 = vpop.eup %3044 }
 0x413   : > { %v1842_v21 = vmul.f32 %v3045_v19, %v1822_v12  ;;  %v3047_v23 = vpop.eup %3046 }
 0x415   : > { %v1843_v3 = vsel %vm3686_vm7, %v1842_v21, 0.0 }
 0x416   : > { %v1844_v5 = vsel %vm1840_vm9, %v3047_v23, %v1843_v3 }
 0x417   : > { %1845 = vst.msk [vmem:[#allocation3] sm:$0x1] %vm1834_vm8, %v1844_v5 }
 0x418 PF: > { %vm1847_vm10 = vcmask 57344   ;;  %s1849_s3 = sadd.s32 1, %s3109_s1 }
 0x419   : > { %p2711_p9 = scmp.ge.s32.totalorder %s1849_s3, 4 }
 0x41a   : > { %s3950_s6 = sld [smem:[#allocation13_spill]] (!%p2711_p9) }
 0x41b   : > { %1853 = sbr.rel (%p2711_p9) target bundleno = 2028 (0x7ec), region = 112  ;;  %s3951_s27 = sld [smem:[#allocation16_spill]] (!%p2711_p9) }
 0x41c   : > { %s3952_s0 = sld [smem:[#allocation14_spill]] (!%p2711_p9) }
 0x41d   : > { %s3953_s24 = sld [smem:[#allocation15_spill]] (!%p2711_p9) }
 0x41e   : > { %v1846_v24 = vld [vmem:[#allocation3] sm:$0x1]  ;;  %s3954_s4 = sld [smem:[#allocation17_spill]] (!%p2711_p9) }
 0x41f   : > { %1848 = vst.msk [vmem:[%s698_s26] sm:$0x1] %vm1847_vm10, %v1846_v24  ;;  %s3949_s26 = sld [smem:[#allocation12_spill]] (!%p2711_p9) }
 0x420   : > { %v3131_v4 = vmov 4   ;;  %v3132_v25 = vmov 5   ;;  %v3133_v26 = vmov 3   ;;  %v3134_v27 = vmov 6   ;;  %v2130_v33 = vld [vmem:[%s3950_s6 + $0x8] sm:$0xff]  ;;  %v2132_v22 = vld [vmem:[%s3950_s6 + $0x18] sm:$0xff] }
 0x421   : > { %3050 = vset.pattern.permute.xlu1 %v3131_v4  ;;  %3048 = vset.pattern.permute.xlu0 %v3132_v25  ;;  %v3135_v28 = vmov 1   ;;  %v3136_v29 = vmov 2   ;;  %v3137_v20 = vmov 0   ;;  %v2129_v39 = vld [vmem:[%s3950_s6] sm:$0xff]  ;;  %v2136_v40 = vld [vmem:[%s3950_s6 + $0x38] sm:$0xff]  ;;  %v2131_v41 = vld [vmem:[%s3950_s6 + $0x10] sm:$0xff]  ;;  %v1864_v45 = vlaneseq }
 0x422   : > { %1881 = vperm.xlu1 %3050, %v1846_v24   ;;  %1861 = vperm.xlu0 %3048, %v1846_v24   ;;  %v2133_v42 = vld [vmem:[%s3950_s6 + $0x20] sm:$0xff]  ;;  %v2134_v43 = vld [vmem:[%s3950_s6 + $0x28] sm:$0xff]  ;;  %v2135_v44 = vld [vmem:[%s3950_s6 + $0x30] sm:$0xff]  ;;  %v3138_v48 = vmov 0.0   ;;  %vm1961_vm11 = vcmask 1040384   ;;  %vm1963_vm12 = vcmask 1041408  }
 0x423   : > { %v3075_v46 = vld [vmem:[%s3907_s5 + $0x18] sm:$0xff]   ;;  %v3768_v47 = vshrl.u32 %v1864_v45, 7  ;;  %2800 = vmatprep.subr.bf16.mxu0 %v3138_v48  ;;  %2812 = vmatprep.subr.bf16.mxu1 %v3138_v48  ;;  %v3076_v49 = vld [vmem:[%s3907_s5 + $0x10] sm:$0xff]   ;;  %v3077_v51 = vld [vmem:[%s3907_s5 + $0x8] sm:$0xff]   ;;  %vm3139_vm13 = vmmov 0   ;;  %vm2265_vm14 = vcmask 523264  }
 0x424   : > { %2801 = vmatpush3.bf16.msra.mxu0 %v3075_v46  ;;  %v1854_v55 = vld [vmem:[%s3295_s9] sm:$0x1]  ;;  %v2712_v57 = vld [vmem:[%s3295_s9 + $0x1] sm:$0x1]  ;;  %v2713_v2 = vld [vmem:[%s3295_s9 + $0x2] sm:$0x1]  ;;  %2808 = vmatprep.mubr.msk.bf16.mxu0 %vm3139_vm13, %v3138_v48 }
 0x425   : > { %v1965_v30 = vld [vmem:[%s3949_s26] sm:$0xff]  ;;  %v1966_v31 = vld [vmem:[%s3949_s26 + $0x8] sm:$0xff]  ;;  %v1971_v34 = vld [vmem:[%s3949_s26 + $0x30] sm:$0xff]  ;;  %2802 = vmatprep.subr.bf16.mxu0 %v3138_v48  ;;  %v3777_v50 = vsub.s32 0, %v3768_v47  ;;  %2820 = vmatprep.mubr.msk.bf16.mxu1 %vm3139_vm13, %v3138_v48 }
 0x426   : > { %3051 = vset.pattern.permute.xlu1 %v3133_v26  ;;  %3049 = vset.pattern.permute.xlu0 %v3134_v27  ;;  %v1969_v32 = vld [vmem:[%s3949_s26 + $0x20] sm:$0xff]  ;;  %v1967_v35 = vld [vmem:[%s3949_s26 + $0x10] sm:$0xff]  ;;  %v1968_v36 = vld [vmem:[%s3949_s26 + $0x18] sm:$0xff] }
 0x427   : > { %1903 = vperm.xlu1 %3051, %v1846_v24   ;;  %1870 = vperm.xlu0 %3049, %v1846_v24   ;;  %v1970_v37 = vld [vmem:[%s3949_s26 + $0x28] sm:$0xff]  ;;  %v1972_v38 = vld [vmem:[%s3949_s26 + $0x38] sm:$0xff] }
 0x428   : > { %2803 = vmatpush3.bf16.msra.mxu0 %v3076_v49 }
 0x429   : > { %2804 = vmatprep.subr.bf16.mxu0 %v3138_v48 }
 0x42b   : > { %3052 = vset.pattern.permute.xlu1 %v3135_v28  ;;  %3053 = vset.pattern.permute.xlu0 %v3136_v29 }
 0x42c   : > { %1928 = vperm.xlu1 %3052, %v1846_v24   ;;  %1941 = vperm.xlu0 %3053, %v1846_v24  }
 0x42d   : > { %2805 = vmatpush3.bf16.msra.mxu0 %v3077_v51 }
 0x42e   : > { %2806 = vmatprep.subr.bf16.mxu0 %v3138_v48 }
 0x430   : > { %3054 = vset.pattern.permute.xlu1 %v3137_v20  ;;  %2078 = vperm.xlu0 %3053, %v1965_v30  }
 0x431   : > { %1915 = vperm.xlu1 %3054, %v1846_v24  }
 0x434   : > { %2082 = vperm.xlu0 %3053, %v1966_v31  }
 0x435   : > { %1975 = vperm.xlu1 %3054, %v1965_v30  }
 0x438   : > { %3061 = vset.pattern.permute.xlu0 %v3137_v20 }
 0x439   : > { %1980 = vperm.xlu1 %3054, %v1966_v31   ;;  %1995 = vperm.xlu0 %3061, %v1969_v32  }
 0x43d   : > { %3055 = vset.pattern.permute.xlu1 %v3135_v28  ;;  %2144 = vperm.xlu0 %3061, %v2130_v33  }
 0x43e   : > { %2030 = vperm.xlu1 %3055, %v1966_v31  }
 0x441   : > { %2005 = vperm.xlu0 %3061, %v1971_v34  }
 0x442   : > { %3056 = vset.pattern.permute.xlu1 %v3137_v20 }
 0x443   : > { %1985 = vperm.xlu1 %3056, %v1967_v35  }
 0x445   : > { %2154 = vperm.xlu0 %3061, %v2132_v22  }
 0x447   : > { %3057 = vset.pattern.permute.xlu1 %v3135_v28 }
 0x448   : > { %2034 = vperm.xlu1 %3057, %v1967_v35  }
 0x449   : > { %3069 = vset.pattern.permute.xlu0 %v3135_v28 }
 0x44a   : > { %2026 = vperm.xlu0 %3069, %v1965_v30  }
 0x44c   : > { %3058 = vset.pattern.permute.xlu1 %v3137_v20 }
 0x44d   : > { %1990 = vperm.xlu1 %3058, %v1968_v36  }
 0x44e   : > { %2038 = vperm.xlu0 %3069, %v1968_v36  }
 0x451   : > { %3059 = vset.pattern.permute.xlu1 %v3136_v29 }
 0x452   : > { %2086 = vperm.xlu1 %3059, %v1967_v35   ;;  %2046 = vperm.xlu0 %3069, %v1970_v37  }
 0x456   : > { %3060 = vset.pattern.permute.xlu1 %v3137_v20  ;;  %2054 = vperm.xlu0 %3069, %v1972_v38  }
 0x457   : > { %2139 = vperm.xlu1 %3060, %v2129_v39  }
 0x45a   : > { %3073 = vset.pattern.permute.xlu0 %v3136_v29 }
 0x45b   : > { %3062 = vset.pattern.permute.xlu1 %v3135_v28  ;;  %2106 = vperm.xlu0 %3073, %v1972_v38  }
 0x45c   : > { %2042 = vperm.xlu1 %3062, %v1969_v32  }
 0x45f   : > { %3074 = vset.pattern.permute.xlu0 %v3137_v20 }
 0x460   : > { %3063 = vset.pattern.permute.xlu1 %v3136_v29  ;;  %2174 = vperm.xlu0 %3074, %v2136_v40  }
 0x461   : > { %2090 = vperm.xlu1 %3063, %v1968_v36  }
 0x465   : > { %3064 = vset.pattern.permute.xlu1 %v3137_v20 }
 0x466   : > { %2000 = vperm.xlu1 %3064, %v1970_v37  }
 0x46a   : > { %3065 = vset.pattern.permute.xlu1 %v3136_v29 }
 0x46b   : > { %2094 = vperm.xlu1 %3065, %v1969_v32  }
 0x46f   : > { %3066 = vset.pattern.permute.xlu1 %v3137_v20 }
 0x470   : > { %2149 = vperm.xlu1 %3066, %v2131_v41  }
 0x474   : > { %3067 = vset.pattern.permute.xlu1 %v3135_v28 }
 0x475   : > { %2050 = vperm.xlu1 %3067, %v1971_v34  }
 0x479   : > { %3068 = vset.pattern.permute.xlu1 %v3136_v29 }
 0x47a   : > { %2098 = vperm.xlu1 %3068, %v1970_v37  }
 0x47e   : > { %3070 = vset.pattern.permute.xlu1 %v3137_v20 }
 0x47f   : > { %2010 = vperm.xlu1 %3070, %v1972_v38  }
 0x483   : > { %3071 = vset.pattern.permute.xlu1 %v3136_v29 }
 0x484   : > { %2102 = vperm.xlu1 %3071, %v1971_v34  }
 0x488   : > { %3072 = vset.pattern.permute.xlu1 %v3137_v20 }
 0x489   : > { %2159 = vperm.xlu1 %3072, %v2133_v42  }
 0x48d   : > { %2164 = vperm.xlu1 %3072, %v2134_v43  }
 0x491   : > { %2169 = vperm.xlu1 %3072, %v2135_v44  }
 0x49d   : > { %v1882_v52 = vpop.permute.xlu1 %1881  ;;  %v1862_v53 = vpop.permute.xlu0 %1861 }
 0x49e   : > { %v1887_v54 = vrot.slane %v1882_v52, %v3777_v50  ;;  %v1867_v56 = vrot.slane %v1862_v53, %v3777_v50 }
 0x4a0   : > { %v1891_v58 = vmul.f32 %v1867_v56, %v1854_v55  ;;  %v1890_v59 = vmul.f32 %v2712_v57, %v1887_v54  ;;  %v1868_v7 = vmul.f32 %v2713_v2, %v1867_v56  ;;  %v1888_v62 = vmul.f32 %v2713_v2, %v1887_v54 }
 0x4a2   : > { %v1904_v60 = vpop.permute.xlu1 %1903  ;;  %v1871_v0 = vpop.permute.xlu0 %1870  ;;  %v1892_v8 = vsub.f32 %v1890_v59, %v1891_v58 }
 0x4a3   : > { %v1876_v6 = vrot.slane %v1871_v0, %v3777_v50  ;;  %v1909_v13 = vrot.slane %v1904_v60, %v3777_v50  ;;  %v2111_v60 = vsub.s32 2, %v3768_v47 }
 0x4a4   : > { %v1897_v15 = vmul.f32 %v1892_v8, %v1887_v54  ;;  %v1893_v23 = vmul.f32 %v1892_v8, %v1867_v56 }
 0x4a5   : > { %v1877_v63 = vmul.f32 %v2712_v57, %v1876_v6  ;;  %v1879_v9 = vmul.f32 %v1876_v6, %v1854_v55  ;;  %v1936_v5 = vmul.f32 %v1909_v13, %v1892_v8 }
 0x4a7   : > { %v1929_v1 = vpop.permute.xlu1 %1928  ;;  %v1878_v10 = vsub.f32 %v1868_v7, %v1877_v63  ;;  %v1889_v11 = vsub.f32 %v1879_v9, %v1888_v62  ;;  %v1942_v12 = vpop.permute.xlu0 %1941 }
 0x4a8   : > { %v1934_v35 = vrot.slane %v1929_v1, %v3777_v50  ;;  %v1947_v37 = vrot.slane %v1942_v12, %v3777_v50 }
 0x4a9   : > { %v1896_v14 = vmul.f32 %v1878_v10, %v1876_v6  ;;  %v1899_v61 = vmul.f32 %v1889_v11, %v1887_v54  ;;  %v1900_v16 = vmul.f32 %v1878_v10, %v1867_v56  ;;  %v1894_v17 = vmul.f32 %v1889_v11, %v1876_v6 }
 0x4aa   : > { %v1923_v19 = vmul.f32 %v1909_v13, %v1889_v11  ;;  %v1910_v28 = vmul.f32 %v1909_v13, %v1878_v10  ;;  %v2059_v54 = vsub.s32 1, %v3768_v47 }
 0x4ab   : > { %v1898_v18 = vsub.f32 %v1896_v14, %v1897_v15  ;;  %v1901_v21 = vsub.f32 %v1899_v61, %v1900_v16  ;;  %v2079_v3 = vpop.permute.xlu0 %2078  ;;  %v1895_v25 = vsub.f32 %v1893_v23, %v1894_v17 }
 0x4ac   : > { %v1916_v24 = vpop.permute.xlu1 %1915 }
 0x4ad   : > { %v1924_v4 = vadd.f32 %v1923_v19, %v1898_v18  ;;  %v1937_v26 = vadd.f32 %v1936_v5, %v1901_v21  ;;  %v1911_v20 = vadd.f32 %v1910_v28, %v1895_v25  ;;  %v1921_v44 = vrot.slane %v1916_v24, %v3777_v50 }
 0x4af   : > { %v1925_v27 = vmul.f32 2.0, %v1924_v4  ;;  %v2083_v29 = vpop.permute.xlu0 %2082  ;;  %v1938_v31 = vmul.f32 2.0, %v1937_v26  ;;  %v1912_v22 = vmul.f32 2.0, %v1911_v20 }
 0x4b0   : > { %v1976_v30 = vpop.permute.xlu1 %1975 }
 0x4b1   : > { %v1926_v32 = vadd.f32 %v2712_v57, %v1925_v27  ;;  %v1939_v36 = vadd.f32 %v2713_v2, %v1938_v31  ;;  %v1913_v40 = vadd.f32 %v1912_v22, %v1854_v55 }
 0x4b3   : > { %v1935_v38 = vadd.f32 %v1934_v35, %v1926_v32  ;;  %v1948_v42 = vadd.f32 %v1947_v37, %v1939_v36  ;;  %v1922_v46 = vadd.f32 %v1921_v44, %v1913_v40  ;;  %v3078_v36 = vld [vmem:[%s3907_s5] sm:$0xff]  }
 0x4b4   : > { %v1981_v33 = vpop.permute.xlu1 %1980  ;;  %v3791_v34 = vpop.permute.xlu0 %1995  ;;  %2807 = vmatpush3.bf16.msra.mxu0 %v3078_v36 }
 0x4b5   : > { %v1953_v43 = vrot.slane %v1935_v38, %v3777_v50  ;;  %v1959_v49 = vrot.slane %v1948_v42, %v3777_v50  ;;  %2824 = vmatprep.subr.bf16.mxu0 %v3138_v48 }
 0x4b7   : > { %v1962_v52 = vsel %vm1961_vm11, %v1922_v46, %v1953_v43 }
 0x4b8   : > { %v2145_v39 = vpop.permute.xlu0 %2144  ;;  %v1964_v56 = vsel %vm1963_vm12, %v1962_v52, %v1959_v49 }
 0x4b9   : > { %v2031_v41 = vpop.permute.xlu1 %2030  ;;  %v3802_v57 = vrot.slane %v1964_v56, %v3777_v50  ;;  %v3804_v58 = vrot.slane %v1964_v56, %v2059_v54  ;;  %v3810_v8 = vrot.slane %v1964_v56, %v2111_v60 }
 0x4bb   : > { %v2018_v2 = vmul.f32 %v3802_v57, %v1981_v33  ;;  %v2062_v6 = vmul.f32 %v3804_v58, %v2031_v41  ;;  %v2017_v63 = vmul.f32 %v3802_v57, %v1976_v30  ;;  %v2113_v1 = vmul.f32 %v3810_v8, %v2079_v3 }
 0x4bc   : > { %v3797_v45 = vpop.permute.xlu0 %2005  ;;  %v2114_v10 = vmul.f32 %v3810_v8, %v2083_v29  ;;  %v2021_v41 = vmul.f32 %v3802_v57, %v3791_v34 }
 0x4bd   : > { %v2070_v9 = vadd.f32 %v2062_v6, %v2018_v2 }
 0x4be   : > { %v1986_v51 = vpop.permute.xlu1 %1985 }
 0x4bf   : > { %v2122_v11 = vadd.f32 %v2114_v10, %v2070_v9  ;;  %v2019_v5 = vmul.f32 %v3802_v57, %v1986_v51 }
 0x4c0   : > { %v2155_v53 = vpop.permute.xlu0 %2154 }
 0x4c1   : > { %v2178_v14 = vadd.f32 %v2145_v39, %v2122_v11  ;;  %v3079_v39 = vld [vmem:[%s3909_s7 + $0x18] sm:$0xff]  }
 0x4c2   : > { %2813 = vmatpush3.bf16.msra.mxu1 %v3079_v39 }
 0x4c3   : > { %v2035_v55 = vpop.permute.xlu1 %2034  ;;  %v2186_v16 = vmax.f32 %v2178_v14, 0.0  ;;  %2814 = vmatprep.subr.bf16.mxu1 %v3138_v48 }
 0x4c4   : > { %v2063_v21 = vmul.f32 %v3804_v58, %v2035_v55 }
 0x4c5   : > { %v2027_v59 = vpop.permute.xlu0 %2026 }
 0x4c6   : > { %v2061_v7 = vmul.f32 %v3804_v58, %v2027_v59  ;;  %v2071_v26 = vadd.f32 %v2063_v21, %v2019_v5  ;;  %v3083_v21 = vld [vmem:[%s3951_s27 + $0x18] sm:$0xff]  }
 0x4c8   : > { %v1991_v0 = vpop.permute.xlu1 %1990  ;;  %v2069_v62 = vadd.f32 %v2061_v7, %v2017_v63 }
 0x4c9   : > { %v2039_v18 = vpop.permute.xlu0 %2038  ;;  %v2020_v23 = vmul.f32 %v3802_v57, %v1991_v0  ;;  %v2023_v0 = vmul.f32 %v3802_v57, %v3797_v45 }
 0x4ca   : > { %v2121_v47 = vadd.f32 %v2113_v1, %v2069_v62  ;;  %v2064_v3 = vmul.f32 %v3804_v58, %v2039_v18  ;;  %v3081_v18 = vld [vmem:[%s3909_s7 + $0x8] sm:$0xff]  }
 0x4cc   : > { %v2072_v27 = vadd.f32 %v2064_v3, %v2020_v23  ;;  %v2714_v23 = vld [vmem:[%s3952_s0] ss:$0 sm:$0xff] }
 0x4cd   : > { %v2087_v50 = vpop.permute.xlu1 %2086  ;;  %v2047_v37 = vpop.permute.xlu0 %2046 }
 0x4ce   : > { %v2115_v24 = vmul.f32 %v3810_v8, %v2087_v50  ;;  %v2066_v51 = vmul.f32 %v3804_v58, %v2047_v37 }
 0x4d0   : > { %v2123_v29 = vadd.f32 %v2115_v24, %v2071_v26 }
 0x4d1   : > { %v2055_v44 = vpop.permute.xlu0 %2054 }
 0x4d2   : > { %v2140_v12 = vpop.permute.xlu1 %2139  ;;  %v2068_v55 = vmul.f32 %v3804_v58, %v2055_v44 }
 0x4d3   : > { %v2177_v13 = vadd.f32 %v2140_v12, %v2121_v47 }
 0x4d5   : > { %v2185_v15 = vmax.f32 %v2177_v13, 0.0 }
 0x4d6   : > { %v2107_v2 = vpop.permute.xlu0 %2106 }
 0x4d7   : > { %v2043_v61 = vpop.permute.xlu1 %2042  ;;  %2193 = vxpose.xlu1.b32.start [1/8] (short) (narrow) %v2185_v15, 16  ;;  %v2120_v50 = vmul.f32 %v3810_v8, %v2107_v2 }
 0x4d8   : > { %v2065_v40 = vmul.f32 %v3804_v58, %v2043_v61 }
 0x4da   : > { %v2073_v46 = vadd.f32 %v2065_v40, %v2021_v41 }
 0x4db   : > { %2194 = vxpose.xlu1.b32.cont [2/8] (short) (narrow) %v2186_v16, 16 }
 0x4dc   : > { %v2091_v17 = vpop.permute.xlu1 %2090 }
 0x4dd   : > { %v2116_v4 = vmul.f32 %v3810_v8, %v2091_v17 }
 0x4df   : > { %v2124_v28 = vadd.f32 %v2116_v4, %v2072_v27 }
 0x4e1   : > { %v2001_v19 = vpop.permute.xlu1 %2000  ;;  %v2180_v31 = vadd.f32 %v2155_v53, %v2124_v28 }
 0x4e2   : > { %v2022_v49 = vmul.f32 %v3802_v57, %v2001_v19  ;;  %v3082_v19 = vld [vmem:[%s3909_s7] sm:$0xff]  }
 0x4e3   : > { %v2188_v35 = vmax.f32 %v2180_v31, 0.0  ;;  %v3086_v31 = vld [vmem:[%s3951_s27] sm:$0xff]  }
 0x4e4   : > { %v2074_v34 = vadd.f32 %v2066_v51, %v2022_v49 }
 0x4e6   : > { %v2095_v25 = vpop.permute.xlu1 %2094 }
 0x4e7   : > { %v2117_v42 = vmul.f32 %v3810_v8, %v2095_v25 }
 0x4e9   : > { %v2125_v54 = vadd.f32 %v2117_v42, %v2073_v46 }
 0x4eb   : > { %v2150_v30 = vpop.permute.xlu1 %2149 }
 0x4ec   : > { %v2179_v20 = vadd.f32 %v2150_v30, %v2123_v29  ;;  %v3084_v30 = vld [vmem:[%s3951_s27 + $0x10] sm:$0xff]  }
 0x4ee   : > { %v2187_v32 = vmax.f32 %v2179_v20, 0.0  ;;  %v3085_v20 = vld [vmem:[%s3951_s27 + $0x8] sm:$0xff]  }
 0x4f0   : > { %v2051_v33 = vpop.permute.xlu1 %2050  ;;  %2195 = vxpose.xlu1.b32.cont [3/8] (short) (narrow) %v2187_v32, 16  ;;  %v2720_v32 = vld [vmem:[%s3953_s24] ss:$0 sm:$0xff] }
 0x4f1   : > { %v2067_v59 = vmul.f32 %v3804_v58, %v2051_v33  ;;  %v2175_v58 = vpop.permute.xlu0 %2174 }
 0x4f3   : > { %v2075_v1 = vadd.f32 %v2067_v59, %v2023_v0  ;;  %v2491_v0 = vld [vmem:[#allocation2] sm:$0x1] }
 0x4f4   : > { %2196 = vxpose.xlu1.b32.cont [4/8] (short) (narrow) %v2188_v35, 16 }
 0x4f5   : > { %v2099_v22 = vpop.permute.xlu1 %2098 }
 0x4f6   : > { %v2118_v52 = vmul.f32 %v3810_v8, %v2099_v22 }
 0x4f8   : > { %v2126_v9 = vadd.f32 %v2118_v52, %v2074_v34 }
 0x4fa   : > { %v2011_v38 = vpop.permute.xlu1 %2010 }
 0x4fb   : > { %v2024_v53 = vmul.f32 %v3802_v57, %v2011_v38 }
 0x4fd   : > { %v2076_v6 = vadd.f32 %v2068_v55, %v2024_v53 }
 0x4ff   : > { %v2103_v43 = vpop.permute.xlu1 %2102  ;;  %v2128_v11 = vadd.f32 %v2120_v50, %v2076_v6 }
 0x500   : > { %v2119_v7 = vmul.f32 %v3810_v8, %v2103_v43  ;;  %v3080_v8 = vld [vmem:[%s3909_s7 + $0x10] sm:$0xff]  }
 0x501   : > { %v2184_v45 = vadd.f32 %v2175_v58, %v2128_v11  ;;  %2815 = vmatpush3.bf16.msra.mxu1 %v3080_v8 }
 0x502   : > { %v2127_v12 = vadd.f32 %v2119_v7, %v2075_v1  ;;  %2816 = vmatprep.subr.bf16.mxu1 %v3138_v48 }
 0x503   : > { %v2192_v15 = vmax.f32 %v2184_v45, 0.0 }
 0x504   : > { %v2160_v56 = vpop.permute.xlu1 %2159 }
 0x505   : > { %v2181_v60 = vadd.f32 %v2160_v56, %v2125_v54  ;;  %2817 = vmatpush3.bf16.msra.mxu1 %v3081_v18 }
 0x506   : > { %2818 = vmatprep.subr.bf16.mxu1 %v3138_v48 }
 0x507   : > { %v2189_v63 = vmax.f32 %v2181_v60, 0.0 }
 0x508   : > { %v2165_v62 = vpop.permute.xlu1 %2164 }
 0x509   : > { %v2182_v10 = vadd.f32 %v2165_v62, %v2126_v9  ;;  %2197 = vxpose.xlu1.b32.cont [5/8] (short) (narrow) %v2189_v63, 16  ;;  %2819 = vmatpush3.bf16.msra.mxu1 %v3082_v19 }
 0x50b   : > { %v2190_v47 = vmax.f32 %v2182_v10, 0.0 }
 0x50c   : > { %v2170_v13 = vpop.permute.xlu1 %2169 }
 0x50d   : > { %v2183_v14 = vadd.f32 %v2170_v13, %v2127_v12  ;;  %2198 = vxpose.xlu1.b32.cont [6/8] (short) (narrow) %v2190_v47, 16 }
 0x50f   : > { %v2191_v57 = vmax.f32 %v2183_v14, 0.0 }
 0x511   : > { %2199 = vxpose.xlu1.b32.cont [7/8] (short) (narrow) %v2191_v57, 16 }
 0x515   : > { %2200 = vxpose.xlu1.b32.end [8/8] (short) (narrow) %v2192_v15, 16 }
 0x575   : > { %v2209_v61 = vpop.trf.xlu1 }
 0x579   : > { %v2210_v16 = vpop.trf.xlu1 }
 0x57a   : > { %v2225_v17 = vpack.c.bf16 %v2210_v16, %v2209_v61 }
 0x57c   : > { %2809 = vmatmul.mubr.msk.bf16.vlgmr.msra.gmra.mxu0 %vm2265_vm14, %v2225_v17 }
 0x57d   : > { %2832 = vmatprep.mubr.msk.bf16.mxu0 %vm3139_vm13, %v3138_v48  ;;  %2825 = vmatpush3.bf16.msra.mxu0 %v3083_v21 }
 0x57e   : > { %2826 = vmatprep.subr.bf16.mxu0 %v3138_v48 }
 0x581   : > { %2827 = vmatpush3.bf16.msra.mxu0 %v3084_v30 }
 0x582   : > { %2828 = vmatprep.subr.bf16.mxu0 %v3138_v48 }
 0x585   : > { %2829 = vmatpush3.bf16.msra.mxu0 %v3085_v20 }
 0x586   : > { %2830 = vmatprep.subr.bf16.mxu0 %v3138_v48  ;;  %v2726_v48 = vld [vmem:[%s3954_s4] ss:$0 sm:$0xff] }
 0x589   : > { %2831 = vmatpush3.bf16.msra.mxu0 %v3086_v31 }
 0x63c   : > { %v2303_v3 = vpop.f32.mrf.mxu0 }
 0x63d   : > { %v2304_v24 = vadd.f32 %v2714_v23, %v2303_v3 }
 0x63e   : > { %v2810_v5 = vpop.f32.mrf.mxu0 }
 0x63f   : > { %v2310_v27 = vmax.f32 %v2304_v24, 0.0 }
 0x640   : > { %v2306_v4 = vpop.f32.mrf.mxu0 }
 0x641   : > { %v2307_v25 = vadd.f32 %v2714_v23, %v2306_v4 }
 0x642   : > { %v2811_v26 = vpop.f32.mrf.mxu0 }
 0x643   : > { %v2311_v28 = vmax.f32 %v2307_v25, 0.0 }
 0x645   : > { %v2312_v29 = vpack.c.bf16 %v2311_v28, %v2310_v27 }
 0x647   : > { %2821 = vmatmul.mubr.msk.bf16.vlgmr.msra.gmra.mxu1 %vm2265_vm14, %v2312_v29 }
 0x707   : > { %v2389_v33 = vpop.f32.mrf.mxu1 }
 0x708   : > { %v2390_v22 = vadd.f32 %v2720_v32, %v2389_v33 }
 0x709   : > { %v2822_v35 = vpop.f32.mrf.mxu1 }
 0x70a   : > { %v2396_v39 = vmax.f32 %v2390_v22, 0.0 }
 0x70b   : > { %v2392_v36 = vpop.f32.mrf.mxu1 }
 0x70c   : > { %v2393_v37 = vadd.f32 %v2720_v32, %v2392_v36 }
 0x70d   : > { %v2823_v38 = vpop.f32.mrf.mxu1 }
 0x70e   : > { %v2397_v40 = vmax.f32 %v2393_v37, 0.0 }
 0x710   : > { %v2398_v41 = vpack.c.bf16 %v2397_v40, %v2396_v39 }
 0x712   : > { %2833 = vmatmul.mubr.msk.bf16.vlgmr.msra.gmra.mxu0 %vm2265_vm14, %v2398_v41 }
 0x7d2   : > { %v2475_v42 = vpop.f32.mrf.mxu0 }
 0x7d3   : > { %v2476_v44 = vadd.f32 %v2726_v48, %v2475_v42 }
 0x7d4   : > { %v2834_v43 = vpop.f32.mrf.mxu0 }
 0x7d5   : > { %v2482_v52 = vmax.f32 %v2476_v44, 0.0 }
 0x7d6   : > { %v2478_v46 = vpop.f32.mrf.mxu0 }
 0x7d7   : > { %v2479_v49 = vadd.f32 %v2726_v48, %v2478_v46 }
 0x7d8   : > { %v2835_v51 = vpop.f32.mrf.mxu0 }
 0x7d9   : > { %v2483_v53 = vmax.f32 %v2479_v49, 0.0 }
 0x7db   : > { %v2484_v54 = vmax.f32 %v2482_v52, %v2483_v53 }
 0x7dd   : > { %v2485_v56 = vrot.slane %v2484_v54, 4 }
 0x7df   : > { %v2486_v55 = vmax.f32 %v2484_v54, %v2485_v56 }
 0x7e1   : > { %v2487_v34 = vrot.slane %v2486_v55, 2 }
 0x7e3   : > { %v2488_v59 = vmax.f32 %v2486_v55, %v2487_v34 }
 0x7e5   : > { %v2489_v60 = vrot.slane %v2488_v59, 1 }
 0x7e7   : > { %v2490_v2 = vmax.f32 %v2488_v59, %v2489_v60 }
 0x7e9   : > { %v2492_v6 = vmax.f32 %v2491_v0, %v2490_v2 }
 0x7eb   : > { %2493 = vst [vmem:[#allocation2] sm:$0x1] %v2492_v6 }
 0x7ec PF: > { %s3955_s1 = sld [smem:[#allocation6_spill]] }
 0x7ed   : > { %s3957_s22 = sld [smem:[#allocation5_spill]] }
 0x7ee   : > { %s3958_s23 = sld [smem:[#allocation7_spill]] }
 0x7ef   : > { %s3959_s24 = sld [smem:[#allocation8_spill]] }
 0x7f2   : > { %s30_s2 = sadd.s32 1, %s3955_s1   ;;  %s3956_s1 = sld [smem:[#allocation4_spill]] }
 0x7f3   : > { %p27_p10 = scmp.ge.s32.totalorder %s30_s2, 10  }
 0x7f5   :  { %29 = sbr.rel (!%p27_p10) target bundleno = 10 (0xa), region = 150 }

</bundles_post_ra>
